<compile_context>
chip_gen: v6e
topology: v6e:2x2x1
jax: 0.10.0
libtpu: 0.0.40
codegen_flags: <defaults>
</compile_context>

<pallas_src>
import jax
import jax.numpy as jnp
from jax.experimental import pallas as pl
from jax.experimental.pallas import tpu as pltpu

C_PAD = 128  # lane-dense padded classifier width


# ----------------------------------------------------------------------------
# Fused head kernel: two projections + concat-fusion MLP + classifier.
# ----------------------------------------------------------------------------
def fused_head_kernel(t_ref, v_ref,
                      wt_ref, bt_ref,            # text projection 768 -> 512 (bf16 W, f32 b)
                      wi_ref, bi_ref,            # image projection 2048 -> 512
                      w1t_ref, w1v_ref, b1_ref,  # fusion Linear(1024, 512), split rows
                      w2_ref, b2_ref,            # fusion Linear(512, C_PAD), zero-padded
                      o_ref):
    # Projections: bf16 x bf16 -> f32 accumulate, f32 bias epilogue.
    t = jnp.dot(t_ref[...], wt_ref[...], preferred_element_type=jnp.float32) + bt_ref[...]
    v = jnp.dot(v_ref[...], wi_ref[...], preferred_element_type=jnp.float32) + bi_ref[...]

    # Fusion layer: feed bf16 activations back into the MXU, accumulate in f32.
    h = (jnp.dot(t.astype(jnp.bfloat16), w1t_ref[...], preferred_element_type=jnp.float32)
         + jnp.dot(v.astype(jnp.bfloat16), w1v_ref[...], preferred_element_type=jnp.float32)
         + b1_ref[...])
    h = jnp.maximum(h, 0.0)                      # ReLU; Dropout(0.5) == identity (eval)

    # Classifier: lane-dense (B, C_PAD) store.
    o_ref[...] = (jnp.dot(h.astype(jnp.bfloat16), w2_ref[...],
                          preferred_element_type=jnp.float32)
                  + b2_ref[...]).astype(o_ref.dtype)


def multimodal_head(text_feat, image_feat, hp, num_classes=3):
    """hp: bf16/padded head params from head_params_bf16()."""
    B = text_feat.shape[0]
    tf16 = text_feat.astype(jnp.bfloat16)
    vf16 = image_feat.astype(jnp.bfloat16)

    operands = (tf16, vf16,
                hp["wt"], hp["bt"],
                hp["wi"], hp["bi"],
                hp["w1t"], hp["w1v"], hp["b1"],
                hp["w2"], hp["b2"])

    flops = 2 * B * (768 * 512 + 2048 * 512 + 2 * 512 * 512 + 512 * C_PAD)
    bytes_accessed = int(sum(x.size * x.dtype.itemsize for x in operands)
                         + B * C_PAD * 4)

    out = pl.pallas_call(
        fused_head_kernel,
        out_shape=jax.ShapeDtypeStruct((B, C_PAD), jnp.float32),
        # Whole (small) operands resident in VMEM; explicit specs, no grid.
        in_specs=[pl.BlockSpec(memory_space=pltpu.MemorySpace.VMEM)] * len(operands),
        out_specs=pl.BlockSpec(memory_space=pltpu.MemorySpace.VMEM),
        compiler_params=pltpu.CompilerParams(vmem_limit_bytes=32 * 1024 * 1024),
        cost_estimate=pl.CostEstimate(flops=flops, transcendentals=0,
                                      bytes_accessed=bytes_accessed),
    )(*operands)
    return out[:, :num_classes]


# ----------------------------------------------------------------------------
# Parameter initialization (synthetic deterministic weights, no checkpoint).
# ----------------------------------------------------------------------------
def init_params(key, num_classes=3, vocab_size=32):
    ks = jax.random.split(key, 12)
    s = 0.02
    return {
        # text projection Linear(768, 512): stored pre-transposed as (in, out)
        "wt": jax.random.normal(ks[0], (768, 512), jnp.float32) * s,
        "bt": jax.random.normal(ks[1], (1, 512), jnp.float32) * s,
        # image projection Linear(2048, 512)
        "wi": jax.random.normal(ks[2], (2048, 512), jnp.float32) * s,
        "bi": jax.random.normal(ks[3], (1, 512), jnp.float32) * s,
        # fusion Linear(1024, 512), split into text-half / image-half rows
        "w1t": jax.random.normal(ks[4], (512, 512), jnp.float32) * s,
        "w1v": jax.random.normal(ks[5], (512, 512), jnp.float32) * s,
        "b1": jax.random.normal(ks[6], (1, 512), jnp.float32) * s,
        # fusion Linear(512, num_classes)
        "w2": jax.random.normal(ks[7], (512, num_classes), jnp.float32) * s,
        "b2": jax.random.normal(ks[8], (1, num_classes), jnp.float32) * s,
        # stub backbone params
        "tok_emb": jax.random.normal(ks[9], (vocab_size, 768), jnp.float32) * s,
        "pooler_w": jax.random.normal(ks[10], (768, 768), jnp.float32) * s,
        "img_stub_w": jax.random.normal(ks[11], (3, 2048), jnp.float32) * s,
    }


def head_params_bf16(params, num_classes=3):
    """bf16 weights (halved HBM traffic), f32 biases, zero-padded classifier."""
    w2 = jnp.zeros((512, C_PAD), jnp.bfloat16)
    w2 = w2.at[:, :num_classes].set(params["w2"].astype(jnp.bfloat16))
    b2 = jnp.zeros((1, C_PAD), jnp.float32)
    b2 = b2.at[:, :num_classes].set(params["b2"])
    return {
        "wt": params["wt"].astype(jnp.bfloat16), "bt": params["bt"],
        "wi": params["wi"].astype(jnp.bfloat16), "bi": params["bi"],
        "w1t": params["w1t"].astype(jnp.bfloat16),
        "w1v": params["w1v"].astype(jnp.bfloat16),
        "b1": params["b1"],
        "w2": w2, "b2": b2,
    }


# ----------------------------------------------------------------------------
# Stub backbones (glue, plain JAX).
# ----------------------------------------------------------------------------
def text_backbone_stub(input_ids, attention_mask, params):
    # TODO(synk): full bert-base-chinese encoder not implemented; stub produces
    # a (B, 768) pooled feature via masked mean pooling + tanh pooler.
    emb = params["tok_emb"][input_ids]                         # (B, S, 768)
    m = attention_mask[..., None].astype(jnp.float32)          # (B, S, 1)
    pooled = (emb * m).sum(axis=1) / jnp.maximum(m.sum(axis=1), 1.0)
    return jnp.tanh(pooled @ params["pooler_w"])               # (B, 768)


def image_backbone_stub(images, params):
    # TODO(synk): ResNet50 conv stack not implemented; stub mimics the
    # (B, 2048, 1, 1) -> flatten -> (B, 2048) output via global average pool
    # over NCHW spatial dims and a 3 -> 2048 linear lift.
    gap = images.mean(axis=(2, 3))                             # (B, 3)  NCHW pool
    return gap @ params["img_stub_w"]                          # (B, 2048)


def multimodal_forward(input_ids, attention_mask, images, params, hp, num_classes=3):
    text_feat = text_backbone_stub(input_ids, attention_mask, params)
    image_feat = image_backbone_stub(images, params)
    return multimodal_head(text_feat, image_feat, hp, num_classes)


# ----------------------------------------------------------------------------
# Pure-JAX reference mirroring the kernel math exactly (bf16 in, f32 acc).
# ----------------------------------------------------------------------------
def head_reference(text_feat, image_feat, hp, num_classes=3):
    tf16 = text_feat.astype(jnp.bfloat16)
    vf16 = image_feat.astype(jnp.bfloat16)
    t = jnp.dot(tf16, hp["wt"], preferred_element_type=jnp.float32) + hp["bt"]
    v = jnp.dot(vf16, hp["wi"], preferred_element_type=jnp.float32) + hp["bi"]
    h = (jnp.dot(t.astype(jnp.bfloat16), hp["w1t"], preferred_element_type=jnp.float32)
         + jnp.dot(v.astype(jnp.bfloat16), hp["w1v"], preferred_element_type=jnp.float32)
         + hp["b1"])
    h = jnp.maximum(h, 0.0)
    out = (jnp.dot(h.astype(jnp.bfloat16), hp["w2"], preferred_element_type=jnp.float32)
           + hp["b2"])
    return out[:, :num_classes]


if __name__ == "__main__":
    num_classes = 3
    B, S, H, W = 2, 8, 16, 16
    vocab = 32

    key = jax.random.PRNGKey(0)
    k_param, k_ids, k_img = jax.random.split(key, 3)

    params = init_params(k_param, num_classes=num_classes, vocab_size=vocab)
    hp = head_params_bf16(params, num_classes=num_classes)

    input_ids = jax.random.randint(k_ids, (B, S), 0, vocab, dtype=jnp.int32)
    attention_mask = jnp.ones((B, S), dtype=jnp.int32)
    images = jax.random.normal(k_img, (B, 3, H, W), jnp.float32)   # NCHW

    out = multimodal_forward(input_ids, attention_mask, images, params, hp, num_classes)
    out = jax.block_until_ready(out)

    # Verify the Pallas head against the pure-JAX reference (same bf16 math).
    tf = text_backbone_stub(input_ids, attention_mask, params)
    vf = image_backbone_stub(images, params)
    ref = head_reference(tf, vf, hp, num_classes)
    assert out.shape == (B, num_classes)
    assert jnp.allclose(out, ref, atol=2e-2, rtol=2e-2), (out, ref)

    print("KERNEL_OK")
</pallas_src>

<mosaic_0001>
module attributes {stable_mosaic.version = 11 : i64} {
  func.func @fused_head_kernel(%arg0: memref<2x768xbf16, #tpu.memory_space<vmem>>, %arg1: memref<2x2048xbf16, #tpu.memory_space<vmem>>, %arg2: memref<768x512xbf16, #tpu.memory_space<vmem>>, %arg3: memref<1x512xf32, #tpu.memory_space<vmem>>, %arg4: memref<2048x512xbf16, #tpu.memory_space<vmem>>, %arg5: memref<1x512xf32, #tpu.memory_space<vmem>>, %arg6: memref<512x512xbf16, #tpu.memory_space<vmem>>, %arg7: memref<512x512xbf16, #tpu.memory_space<vmem>>, %arg8: memref<1x512xf32, #tpu.memory_space<vmem>>, %arg9: memref<512x128xbf16, #tpu.memory_space<vmem>>, %arg10: memref<1x128xf32, #tpu.memory_space<vmem>>, %arg11: memref<2x128xf32, #tpu.memory_space<vmem>>) attributes {dimension_semantics = [], scalar_prefetch = 0 : i64, scratch_operands = 0 : i64, tpu.core_type = #tpu.core_type<tc>} {
    %c0 = arith.constant 0 : index
    %c0_0 = arith.constant 0 : index
    %0 = vector.load %arg0[%c0, %c0_0] : memref<2x768xbf16, #tpu.memory_space<vmem>>, vector<2x768xbf16>
    %c0_1 = arith.constant 0 : index
    %c0_2 = arith.constant 0 : index
    %1 = vector.load %arg2[%c0_1, %c0_2] : memref<768x512xbf16, #tpu.memory_space<vmem>>, vector<768x512xbf16>
    %cst = arith.constant dense<0.000000e+00> : vector<2x512xf32>
    %2 = tpu.matmul %0, %1, %cst {dimension_numbers = #tpu.dot_dimension_numbers<[1], [0], [0], [1], [0, 0, 1, 1], [], []>} : vector<2x768xbf16>, vector<768x512xbf16>, vector<2x512xf32> -> vector<2x512xf32>
    %c0_3 = arith.constant 0 : index
    %c0_4 = arith.constant 0 : index
    %3 = vector.load %arg3[%c0_3, %c0_4] : memref<1x512xf32, #tpu.memory_space<vmem>>, vector<1x512xf32>
    %4 = vector.broadcast %3 : vector<1x512xf32> to vector<2x512xf32>
    %5 = arith.addf %2, %4 : vector<2x512xf32>
    %c0_5 = arith.constant 0 : index
    %c0_6 = arith.constant 0 : index
    %6 = vector.load %arg1[%c0_5, %c0_6] : memref<2x2048xbf16, #tpu.memory_space<vmem>>, vector<2x2048xbf16>
    %c0_7 = arith.constant 0 : index
    %c0_8 = arith.constant 0 : index
    %7 = vector.load %arg4[%c0_7, %c0_8] : memref<2048x512xbf16, #tpu.memory_space<vmem>>, vector<2048x512xbf16>
    %cst_9 = arith.constant dense<0.000000e+00> : vector<2x512xf32>
    %8 = tpu.matmul %6, %7, %cst_9 {dimension_numbers = #tpu.dot_dimension_numbers<[1], [0], [0], [1], [0, 0, 1, 1], [], []>} : vector<2x2048xbf16>, vector<2048x512xbf16>, vector<2x512xf32> -> vector<2x512xf32>
    %c0_10 = arith.constant 0 : index
    %c0_11 = arith.constant 0 : index
    %9 = vector.load %arg5[%c0_10, %c0_11] : memref<1x512xf32, #tpu.memory_space<vmem>>, vector<1x512xf32>
    %10 = vector.broadcast %9 : vector<1x512xf32> to vector<2x512xf32>
    %11 = arith.addf %8, %10 : vector<2x512xf32>
    %12 = arith.truncf %5 : vector<2x512xf32> to vector<2x512xbf16>
    %c0_12 = arith.constant 0 : index
    %c0_13 = arith.constant 0 : index
    %13 = vector.load %arg6[%c0_12, %c0_13] : memref<512x512xbf16, #tpu.memory_space<vmem>>, vector<512x512xbf16>
    %cst_14 = arith.constant dense<0.000000e+00> : vector<2x512xf32>
    %14 = tpu.matmul %12, %13, %cst_14 {dimension_numbers = #tpu.dot_dimension_numbers<[1], [0], [0], [1], [0, 0, 1, 1], [], []>} : vector<2x512xbf16>, vector<512x512xbf16>, vector<2x512xf32> -> vector<2x512xf32>
    %15 = arith.truncf %11 : vector<2x512xf32> to vector<2x512xbf16>
    %c0_15 = arith.constant 0 : index
    %c0_16 = arith.constant 0 : index
    %16 = vector.load %arg7[%c0_15, %c0_16] : memref<512x512xbf16, #tpu.memory_space<vmem>>, vector<512x512xbf16>
    %cst_17 = arith.constant dense<0.000000e+00> : vector<2x512xf32>
    %17 = tpu.matmul %15, %16, %cst_17 {dimension_numbers = #tpu.dot_dimension_numbers<[1], [0], [0], [1], [0, 0, 1, 1], [], []>} : vector<2x512xbf16>, vector<512x512xbf16>, vector<2x512xf32> -> vector<2x512xf32>
    %18 = arith.addf %14, %17 : vector<2x512xf32>
    %c0_18 = arith.constant 0 : index
    %c0_19 = arith.constant 0 : index
    %19 = vector.load %arg8[%c0_18, %c0_19] : memref<1x512xf32, #tpu.memory_space<vmem>>, vector<1x512xf32>
    %20 = vector.broadcast %19 : vector<1x512xf32> to vector<2x512xf32>
    %21 = arith.addf %18, %20 : vector<2x512xf32>
    %cst_20 = arith.constant 0.000000e+00 : f32
    %22 = vector.broadcast %cst_20 : f32 to vector<2x512xf32>
    %23 = arith.maximumf %21, %22 : vector<2x512xf32>
    %24 = arith.truncf %23 : vector<2x512xf32> to vector<2x512xbf16>
    %c0_21 = arith.constant 0 : index
    %c0_22 = arith.constant 0 : index
    %25 = vector.load %arg9[%c0_21, %c0_22] : memref<512x128xbf16, #tpu.memory_space<vmem>>, vector<512x128xbf16>
    %cst_23 = arith.constant dense<0.000000e+00> : vector<2x128xf32>
    %26 = tpu.matmul %24, %25, %cst_23 {dimension_numbers = #tpu.dot_dimension_numbers<[1], [0], [0], [1], [0, 0, 1, 1], [], []>} : vector<2x512xbf16>, vector<512x128xbf16>, vector<2x128xf32> -> vector<2x128xf32>
    %c0_24 = arith.constant 0 : index
    %c0_25 = arith.constant 0 : index
    %27 = vector.load %arg10[%c0_24, %c0_25] : memref<1x128xf32, #tpu.memory_space<vmem>>, vector<1x128xf32>
    %28 = vector.broadcast %27 : vector<1x128xf32> to vector<2x128xf32>
    %29 = arith.addf %26, %28 : vector<2x128xf32>
    %c0_26 = arith.constant 0 : index
    %c0_27 = arith.constant 0 : index
    %30 = vector.load %arg11[%c0_26, %c0_27] : memref<2x128xf32, #tpu.memory_space<vmem>>, vector<2x128xf32>
    tpu.vector_store %arg11[%c0_26, %c0_27], %29 {strides = array<i32>} : memref<2x128xf32, #tpu.memory_space<vmem>>, vector<2x128xf32>,
    return
  }
}

</mosaic_0001>

<bundles_post_ra>
// kernel: tpu_custom_call.1
= control target key start
LH: loop header
LB: loop body
LE: loop exit
PB: predicated region body
PF: predicated region fallthrough
CT: control target
= control target key end

     0   :  { %16 = vsyncpa [#allocation3], 0  ;;  %s11006_s0 = inlined_call_operand.hbm [shape: bf16[2,768], index: 0, kind: input, shape index: {}]   ;;  %s11007_s1 = inlined_call_operand.hbm [shape: bf16[2,2048], index: 1, kind: input, shape index: {}]   ;;  %s11008_s2 = inlined_call_operand.hbm [shape: bf16[768,512], index: 2, kind: input, shape index: {}]   ;;  %s11009_s3 = inlined_call_operand.hbm [shape: f32[1,512], index: 3, kind: input, shape index: {}]   ;;  %s11010_s4 = inlined_call_operand.hbm [shape: bf16[2048,512], index: 4, kind: input, shape index: {}]   ;;  %s11011_s5 = inlined_call_operand.hbm [shape: f32[1,512], index: 5, kind: input, shape index: {}]   ;;  %s11012_s6 = inlined_call_operand.hbm [shape: bf16[512,512], index: 6, kind: input, shape index: {}]   ;;  %s11013_s7 = inlined_call_operand.hbm [shape: bf16[512,512], index: 7, kind: input, shape index: {}]   ;;  %s11014_s8 = inlined_call_operand.hbm [shape: f32[1,512], index: 8, kind: input, shape index: {}]   ;;  %s11015_s9 = inlined_call_operand.hbm [shape: bf16[512,128], index: 9, kind: input, shape index: {}]   ;;  %s11016_s10 = inlined_call_operand.hbm [shape: f32[1,128], index: 10, kind: input, shape index: {}]   ;;  %s11017_s11 = inlined_call_operand.hbm [shape: f32[2,128], index: 11, kind: output, shape index: {}]  }
   0x1   :  { %17 = vsyncpa [#allocation6], 0 }
   0x2   :  { %18 = vsyncpa [#allocation9], 0 }
   0x3   :  { %19 = vsyncpa [#allocation12], 0 }
   0x4   :  { %20 = vsyncpa [#allocation15], 0 }
   0x5   :  { %21 = vsyncpa [#allocation18], 0 }
   0x6   :  { %22 = vsyncpa [#allocation4], 0  ;;  %s10574_s17 = smov [#allocation5]   ;;  %s10575_s19 = smov [#allocation8]  }
   0x7   :  { %s39_s18 = sshll.u32 %s10574_s17, 4  ;;  %s61_s20 = sshll.u32 %s10575_s19, 4  ;;  %s40_s18 = int_to_ptr.vmem [resolvable:$true] %s39_s18  ;;  %s62_s20 = int_to_ptr.vmem [resolvable:$true] %s61_s20 }
   0x8   :  { %s10328_s21 = scalar_lea.vmem %s40_s18, 256  ;;  %p10333_p1 = scmp.lt.s32.totalorder %s40_s18, %s40_s18 }
   0x9   :  { %p10329_p0 = scmp.ne.s32.totalorder %s40_s18, %s10328_s21  ;;  %p10334_p2 = scmp.lt.s32.totalorder %s10328_s21, %s10328_s21 }
   0xb   :  { %p10335_p3 = por %p10334_p2, %p10333_p1 }
   0xd   :  { %p10336_p4 = pnand %p10335_p3, %p10329_p0 }
   0xf   :  { %10339 = shalt.err (!%p10336_p4)
}
  0x10   :  { %42 = dma.hbm_to_vmem [thread:$0]  %s11007_s1, 256, %s40_s18, [#allocation6]  }
  0x11   :  { %s10348_s24 = scalar_lea.vmem %s62_s20, 64  ;;  %p10353_p6 = scmp.lt.s32.totalorder %s62_s20, %s62_s20 }
  0x12   :  { %p10349_p5 = scmp.ne.s32.totalorder %s62_s20, %s10348_s24  ;;  %p10354_p7 = scmp.lt.s32.totalorder %s10348_s24, %s10348_s24 }
  0x14   :  { %p10355_p8 = por %p10354_p7, %p10353_p6 }
  0x16   :  { %p10356_p9 = pnand %p10355_p8, %p10349_p5 }
  0x18   :  { %10359 = shalt.err (!%p10356_p9)
}
  0x19   :  { %64 = dma.hbm_to_vmem [thread:$0]  %s11009_s3, 64, %s62_s20, [#allocation9]  }
  0x1a   :  { %s10576_s27 = smov [#allocation11]  }
  0x1b   :  { %s83_s28 = sshll.u32 %s10576_s27, 4  ;;  %s84_s28 = int_to_ptr.vmem [resolvable:$true] %s83_s28 }
  0x1c   :  { %s10368_s29 = scalar_lea.vmem %s84_s28, 64  ;;  %p10373_p11 = scmp.lt.s32.totalorder %s84_s28, %s84_s28 }
  0x1d   :  { %p10369_p10 = scmp.ne.s32.totalorder %s84_s28, %s10368_s29  ;;  %p10374_p12 = scmp.lt.s32.totalorder %s10368_s29, %s10368_s29 }
  0x1f   :  { %p10375_p13 = por %p10374_p12, %p10373_p11 }
  0x21   :  { %p10376_p0 = pnand %p10375_p13, %p10369_p10 }
  0x23   :  { %10379 = shalt.err (!%p10376_p0)
}
  0x24   :  { %86 = dma.hbm_to_vmem [thread:$0]  %s11011_s5, 64, %s84_s28, [#allocation12]  }
  0x25   :  { %s10577_s12 = smov [#allocation14]   ;;  %s10578_s14 = smov [#allocation17]  }
  0x26   :  { %s104_s13 = sshll.u32 %s10577_s12, 4  ;;  %s126_s15 = sshll.u32 %s10578_s14, 4  ;;  %s105_s13 = int_to_ptr.vmem [resolvable:$true] %s104_s13  ;;  %s127_s15 = int_to_ptr.vmem [resolvable:$true] %s126_s15 }
  0x27   :  { %s10388_s3 = scalar_lea.vmem %s105_s13, 16384  ;;  %p10393_p2 = scmp.lt.s32.totalorder %s105_s13, %s105_s13 }
  0x28   :  { %p10389_p1 = scmp.ne.s32.totalorder %s105_s13, %s10388_s3  ;;  %p10394_p3 = scmp.lt.s32.totalorder %s10388_s3, %s10388_s3 }
  0x2a   :  { %p10395_p4 = por %p10394_p3, %p10393_p2 }
  0x2c   :  { %p10396_p5 = pnand %p10395_p4, %p10389_p1 }
  0x2e   :  { %10399 = shalt.err (!%p10396_p5)
}
  0x2f   :  { %s10579_s16 = smov 256   ;;  %s10580_s17 = smov 16  }
  0x30   :  { %110 = dma.hbm_to_vmem [thread:$0]  %s11013_s7, 16384, %s105_s13, [#allocation15], %s10579_s16, %s10579_s16, %s10580_s17  }
  0x31   :  { %s10408_s5 = scalar_lea.vmem %s127_s15, 4096  ;;  %p10413_p7 = scmp.lt.s32.totalorder %s127_s15, %s127_s15 }
  0x32   :  { %p10409_p6 = scmp.ne.s32.totalorder %s127_s15, %s10408_s5  ;;  %p10414_p8 = scmp.lt.s32.totalorder %s10408_s5, %s10408_s5 }
  0x34   :  { %p10415_p9 = por %p10414_p8, %p10413_p7 }
  0x36   :  { %p10416_p10 = pnand %p10415_p9, %p10409_p6 }
  0x38   :  { %10419 = shalt.err (!%p10416_p10)
}
  0x39   :  { %s10581_s20 = smov 64   ;;  %s10582_s21 = smov 4  }
  0x3a   :  { %132 = dma.hbm_to_vmem [thread:$0]  %s11015_s9, 4096, %s127_s15, [#allocation18], %s10581_s20, %s10581_s20, %s10582_s21  }
  0x3b   :  { %s10583_s24 = smov [#allocation2]   ;;  %s10584_s26 = smov [#allocation7]  }
  0x3c   :  { %s29_s25 = sshll.u32 %s10583_s24, 4  ;;  %s48_s27 = sshll.u32 %s10584_s26, 4  ;;  %s30_s25 = int_to_ptr.vmem [resolvable:$true] %s29_s25  ;;  %s49_s27 = int_to_ptr.vmem [resolvable:$true] %s48_s27 }
  0x3d   :  { %s10428_s7 = scalar_lea.vmem %s30_s25, 96  ;;  %p10433_p12 = scmp.lt.s32.totalorder %s30_s25, %s30_s25 }
  0x3e   :  { %p10429_p11 = scmp.ne.s32.totalorder %s30_s25, %s10428_s7  ;;  %p10434_p13 = scmp.lt.s32.totalorder %s10428_s7, %s10428_s7 }
  0x40   :  { %p10435_p0 = por %p10434_p13, %p10433_p12 }
  0x42   :  { %p10436_p1 = pnand %p10435_p0, %p10429_p11 }
  0x44   :  { %10439 = shalt.err (!%p10436_p1)
}
  0x45   :  { %32 = dma.hbm_to_vmem [thread:$0]  %s11006_s0, 96, %s30_s25, [#allocation3]  }
  0x46   :  { %s10448_s1 = scalar_lea.vmem %s49_s27, 24576  ;;  %p10453_p3 = scmp.lt.s32.totalorder %s49_s27, %s49_s27 }
  0x47   :  { %p10449_p2 = scmp.ne.s32.totalorder %s49_s27, %s10448_s1  ;;  %p10454_p4 = scmp.lt.s32.totalorder %s10448_s1, %s10448_s1 }
  0x49   :  { %p10455_p5 = por %p10454_p4, %p10453_p3 }
  0x4b   :  { %p10456_p6 = pnand %p10455_p5, %p10449_p2 }
  0x4d   :  { %10459 = shalt.err (!%p10456_p6)
}
  0x4e   :  { %54 = dma.hbm_to_vmem [thread:$0]  %s11008_s2, 24576, %s49_s27, [#allocation6], %s10579_s16, %s10579_s16, %s10580_s17  }
  0x4f   :  { %s10585_s12 = smov [#allocation10]   ;;  %s10586_s14 = smov [#allocation13]  }
  0x50   :  { %s70_s13 = sshll.u32 %s10585_s12, 4  ;;  %s92_s0 = sshll.u32 %s10586_s14, 4  ;;  %s71_s13 = int_to_ptr.vmem [resolvable:$true] %s70_s13  ;;  %s93_s0 = int_to_ptr.vmem [resolvable:$true] %s92_s0 }
  0x51   :  { %s10468_s15 = scalar_lea.vmem %s71_s13, 65536  ;;  %p10473_p8 = scmp.lt.s32.totalorder %s71_s13, %s71_s13 }
  0x52   :  { %p10469_p7 = scmp.ne.s32.totalorder %s71_s13, %s10468_s15  ;;  %p10474_p9 = scmp.lt.s32.totalorder %s10468_s15, %s10468_s15 }
  0x54   :  { %p10475_p10 = por %p10474_p9, %p10473_p8 }
  0x56   :  { %p10476_p11 = pnand %p10475_p10, %p10469_p7 }
  0x58   :  { %10479 = shalt.err (!%p10476_p11)
}
  0x59   :  { %76 = dma.hbm_to_vmem [thread:$0]  %s11010_s4, 65536, %s71_s13, [#allocation9], %s10579_s16, %s10579_s16, %s10580_s17  }
  0x5a   :  { %s10488_s2 = scalar_lea.vmem %s93_s0, 16384  ;;  %p10493_p13 = scmp.lt.s32.totalorder %s93_s0, %s93_s0 }
  0x5b   :  { %p10489_p12 = scmp.ne.s32.totalorder %s93_s0, %s10488_s2  ;;  %p10494_p0 = scmp.lt.s32.totalorder %s10488_s2, %s10488_s2 }
  0x5d   :  { %p10495_p1 = por %p10494_p0, %p10493_p13 }
  0x5f   :  { %p10496_p2 = pnand %p10495_p1, %p10489_p12 }
  0x61   :  { %10499 = shalt.err (!%p10496_p2)
}
  0x62   :  { %98 = dma.hbm_to_vmem [thread:$0]  %s11012_s6, 16384, %s93_s0, [#allocation12], %s10579_s16, %s10579_s16, %s10580_s17  }
  0x63   :  { %s10587_s20 = smov [#allocation16]   ;;  %s10588_s22 = smov [#allocation19]  }
  0x64   :  { %s117_s21 = sshll.u32 %s10587_s20, 4  ;;  %s139_s4 = sshll.u32 %s10588_s22, 4  ;;  %s118_s21 = int_to_ptr.vmem [resolvable:$true] %s117_s21  ;;  %s140_s4 = int_to_ptr.vmem [resolvable:$true] %s139_s4 }
  0x65   :  { %s10508_s23 = scalar_lea.vmem %s118_s21, 64  ;;  %p10513_p4 = scmp.lt.s32.totalorder %s118_s21, %s118_s21 }
  0x66   :  { %p10509_p3 = scmp.ne.s32.totalorder %s118_s21, %s10508_s23  ;;  %p10514_p5 = scmp.lt.s32.totalorder %s10508_s23, %s10508_s23 }
  0x68   :  { %p10515_p6 = por %p10514_p5, %p10513_p4 }
  0x6a   :  { %p10516_p7 = pnand %p10515_p6, %p10509_p3 }
  0x6c   :  { %10519 = shalt.err (!%p10516_p7)
}
  0x6d   :  { %120 = dma.hbm_to_vmem [thread:$0]  %s11014_s8, 64, %s118_s21, [#allocation15]  }
  0x6e   :  { %s10528_s26 = scalar_lea.vmem %s140_s4, 16  ;;  %s10532_s6 = scalar_lea.vmem %s140_s4, 32 }
  0x6f   :  { %p10529_p8 = scmp.ne.s32.totalorder %s140_s4, %s10528_s26  ;;  %p10533_p9 = scmp.lt.s32.totalorder %s140_s4, %s140_s4 }
  0x70   :  { %p10534_p10 = scmp.lt.s32.totalorder %s10532_s6, %s10528_s26 }
  0x72   :  { %p10535_p11 = por %p10534_p10, %p10533_p9 }
  0x74   :  { %p10536_p12 = pnand %p10535_p11, %p10529_p8 }
  0x76   :  { %10539 = shalt.err (!%p10536_p12)
}
  0x77   :  { %142 = dma.hbm_to_vmem [thread:$0]  %s11016_s10, 16, %s140_s4, [#allocation18]  }
  0x78   :  { %10560 = dma.done.wait [#allocation3], 96  }
  0x79   :  { %10561 = vsyncadd [#allocation3], 4294967200 }
  0x7a   :  { %10562 = dma.done.wait [#allocation6], 24832  }
  0x7b   :  { %10563 = vsyncadd [#allocation6], 4294942464 }
  0x7c   :  { %10564 = dma.done.wait [#allocation9], 65600  }
  0x7d   :  { %10565 = vsyncadd [#allocation9], 4294901696 }
  0x7e   :  { %10566 = dma.done.wait [#allocation12], 16448  }
  0x7f   :  { %10567 = vsyncadd [#allocation12], 4294950848 }
  0x80   :  { %10568 = dma.done.wait [#allocation15], 16448  }
  0x81   :  { %10569 = vsyncadd [#allocation15], 4294950848 }
  0x82   :  { %10570 = dma.done.wait [#allocation18], 4112  }
  0x83   :  { %10571 = vsyncadd [#allocation18], 4294963184  ;;  %v8844_v0 = vld [vmem:[#allocation7 + $0xe4] ss:$16 sps:$4 sm:$0xff]   ;;  %v8848_v2 = vld [vmem:[#allocation7 + $0xe0] ss:$16 sps:$4 sm:$0xff]   ;;  %v372_v36 = vlaneseq }
  0x84   :  { %v8846_v1 = vld [vmem:[#allocation7 + $0x2e4] ss:$16 sps:$4 sm:$0xff]   ;;  %1406 = vmatprep.subr.bf16.mxu0 %v8844_v0  ;;  %v8849_v3 = vld [vmem:[#allocation7 + $0x2e0] ss:$16 sps:$4 sm:$0xff]   ;;  %v10589_v37 = vmov 1966171168  }
  0x85   :  { %1447 = vmatprep.subr.bf16.mxu1 %v8846_v1  ;;  %v8850_v4 = vld [vmem:[#allocation7 + $0xc4] ss:$16 sps:$4 sm:$0xff]   ;;  %1407 = vmatpush1.bf16.msra.mxu0 %v8848_v2  ;;  %v8854_v6 = vld [vmem:[#allocation7 + $0xc0] ss:$16 sps:$4 sm:$0xff]   ;;  %v395_v38 = vunpack.c.l.s4 %v10589_v37  ;;  %v10696_v42 = vshrl.u32 %v372_v36, 7  ;;  %s10590_s8 = smov [#allocation20]  }
  0x86   :  { %1448 = vmatpush1.bf16.msra.mxu1 %v8849_v3  ;;  %v8852_v5 = vld [vmem:[#allocation7 + $0x2c4] ss:$16 sps:$4 sm:$0xff]   ;;  %1408 = vmatprep.subr.bf16.mxu0 %v8850_v4  ;;  %v8855_v7 = vld [vmem:[#allocation7 + $0x2c0] ss:$16 sps:$4 sm:$0xff]   ;;  %v177_v52 = vld [vmem:[#allocation2] sm:$0x3f] }
  0x87   :  { %1449 = vmatprep.subr.bf16.mxu1 %v8852_v5  ;;  %v8856_v8 = vld [vmem:[#allocation7 + $0xa4] ss:$16 sps:$4 sm:$0xff]   ;;  %v8860_v10 = vld [vmem:[#allocation7 + $0xa0] ss:$16 sps:$4 sm:$0xff]   ;;  %v396_v43 = vunpack.c.0.s8 %v395_v38  ;;  %v393_v5 = vcombine.high %v177_v52, %v177_v52  ;;  %v8967_v36 = vld [vmem:[#allocation7 + $0x68] ss:$16 sps:$4 sm:$0xff]  }
  0x88   :  { %v8858_v9 = vld [vmem:[#allocation7 + $0x2a4] ss:$16 sps:$4 sm:$0xff]   ;;  %v8861_v11 = vld [vmem:[#allocation7 + $0x2a0] ss:$16 sps:$4 sm:$0xff]   ;;  %v8975_v38 = vld [vmem:[#allocation7 + $0x4c] ss:$16 sps:$4 sm:$0xff]  }
  0x89   :  { %1409 = vmatpush1.bf16.msra.mxu0 %v8854_v6  ;;  %v8862_v12 = vld [vmem:[#allocation7 + $0x84] ss:$16 sps:$4 sm:$0xff]   ;;  %v8866_v14 = vld [vmem:[#allocation7 + $0x80] ss:$16 sps:$4 sm:$0xff]   ;;  %v10699_v49 = vsub.s32 %v396_v43, %v10696_v42  ;;  %v8981_v43 = vld [vmem:[#allocation7 + $0x2c] ss:$16 sps:$4 sm:$0xff]  }
  0x8a   :  { %1450 = vmatpush1.bf16.msra.mxu1 %v8855_v7  ;;  %1410 = vmatprep.subr.bf16.mxu0 %v8856_v8  ;;  %v8864_v13 = vld [vmem:[#allocation7 + $0x284] ss:$16 sps:$4 sm:$0xff]   ;;  %v8867_v15 = vld [vmem:[#allocation7 + $0x280] ss:$16 sps:$4 sm:$0xff]   ;;  %s7776_s10 = sshll.u32 %s10590_s8, 4  ;;  %s7777_s10 = int_to_ptr.vmem [resolvable:$true] %s7776_s10 }
  0x8b   :  { %1451 = vmatprep.subr.bf16.mxu1 %v8858_v9  ;;  %v8868_v16 = vld [vmem:[#allocation7 + $0x64] ss:$16 sps:$4 sm:$0xff]   ;;  %v8872_v18 = vld [vmem:[#allocation7 + $0x60] ss:$16 sps:$4 sm:$0xff]   ;;  %v400_v54 = vrot.slane %v177_v52, %v10699_v49  ;;  %v8993_v52 = vld [vmem:[#allocation7 + $0x1ec] ss:$16 sps:$4 sm:$0xff]   ;;  %p10545_p0 = scmp.lt.s32.totalorder %s7777_s10, %s7777_s10 }
  0x8c   :  { %v8870_v17 = vld [vmem:[#allocation7 + $0x264] ss:$16 sps:$4 sm:$0xff]   ;;  %v8873_v19 = vld [vmem:[#allocation7 + $0x260] ss:$16 sps:$4 sm:$0xff]   ;;  %s10540_s27 = scalar_lea.vmem %s7777_s10, 32 }
  0x8d   :  { %1411 = vmatpush1.bf16.msra.mxu0 %v8860_v10  ;;  %v8874_v20 = vld [vmem:[#allocation7 + $0x44] ss:$16 sps:$4 sm:$0xff]   ;;  %v8878_v22 = vld [vmem:[#allocation7 + $0x40] ss:$16 sps:$4 sm:$0xff]   ;;  %v408_v58 = vcombine.high %v400_v54, %v400_v54  ;;  %v10707_v10 = vrot.slane %v393_v5, %v10699_v49  ;;  %v9017_v5 = vld [vmem:[#allocation7 + $0x16c] ss:$16 sps:$4 sm:$0xff]   ;;  %p10541_p13 = scmp.ne.s32.totalorder %s7777_s10, %s10540_s27  ;;  %p10546_p1 = scmp.lt.s32.totalorder %s10540_s27, %s10540_s27 }
  0x8e   :  { %1452 = vmatpush1.bf16.msra.mxu1 %v8861_v11  ;;  %1412 = vmatprep.subr.bf16.mxu0 %v8862_v12  ;;  %v8876_v21 = vld [vmem:[#allocation7 + $0x244] ss:$16 sps:$4 sm:$0xff]   ;;  %v8879_v23 = vld [vmem:[#allocation7 + $0x240] ss:$16 sps:$4 sm:$0xff]   ;;  %v10710_v12 = vrot.slane %v400_v54, %v10699_v49  ;;  %v8991_v54 = vld [vmem:[#allocation7 + $0x1e8] ss:$16 sps:$4 sm:$0xff]  }
  0x8f   :  { %1453 = vmatprep.subr.bf16.mxu1 %v8864_v13  ;;  %v8880_v24 = vld [vmem:[#allocation7 + $0x24] ss:$16 sps:$4 sm:$0xff]   ;;  %v8884_v26 = vld [vmem:[#allocation7 + $0x20] ss:$16 sps:$4 sm:$0xff]   ;;  %v430_v60 = vrot.slane %v408_v58, %v10699_v49  ;;  %v8997_v58 = vld [vmem:[#allocation7 + $0x1c8] ss:$16 sps:$4 sm:$0xff]   ;;  %p10547_p2 = por %p10546_p1, %p10545_p0 }
  0x90   :  { %v8882_v25 = vld [vmem:[#allocation7 + $0x224] ss:$16 sps:$4 sm:$0xff]   ;;  %v8885_v27 = vld [vmem:[#allocation7 + $0x220] ss:$16 sps:$4 sm:$0xff]  }
  0x91   :  { %1413 = vmatpush1.bf16.msra.mxu0 %v8866_v14  ;;  %v8886_v28 = vld [vmem:[#allocation7 + $0x4] ss:$16 sps:$4 sm:$0xff]   ;;  %v8890_v30 = vld [vmem:[#allocation7] ss:$16 sps:$4 sm:$0xff]   ;;  %v10703_v0 = vcombine.high %v430_v60, %v430_v60  ;;  %1438 = vmatprep.mubr.bf16.mxu0 %v430_v60  ;;  %p10548_p3 = pnand %p10547_p2, %p10541_p13 }
  0x92   :  { %1454 = vmatpush1.bf16.msra.mxu1 %v8867_v15  ;;  %1414 = vmatprep.subr.bf16.mxu0 %v8868_v16  ;;  %v8888_v29 = vld [vmem:[#allocation7 + $0x204] ss:$16 sps:$4 sm:$0xff]   ;;  %v8891_v31 = vld [vmem:[#allocation7 + $0x200] ss:$16 sps:$4 sm:$0xff]   ;;  %v8945_v15 = vld [vmem:[#allocation7 + $0xec] ss:$16 sps:$4 sm:$0xff]   ;;  %v409_v16 = vcombine.high %v10707_v10, %v10707_v10 }
  0x93   :  { %1455 = vmatprep.subr.bf16.mxu1 %v8870_v17  ;;  %v8892_v32 = vld [vmem:[#allocation7 + $0x1e4] ss:$16 sps:$4 sm:$0xff]   ;;  %v8896_v34 = vld [vmem:[#allocation7 + $0x1e0] ss:$16 sps:$4 sm:$0xff]   ;;  %1479 = vmatprep.mubr.bf16.mxu1 %v10703_v0  ;;  %v10716_v17 = vcombine.high %v10710_v12, %v10710_v12 }
  0x94   :  { %v8894_v33 = vld [vmem:[#allocation7 + $0x3e4] ss:$16 sps:$4 sm:$0xff]   ;;  %v8897_v35 = vld [vmem:[#allocation7 + $0x3e0] ss:$16 sps:$4 sm:$0xff]  }
  0x95   :  { %1415 = vmatpush1.bf16.msra.mxu0 %v8872_v18  ;;  %v8898_v39 = vld [vmem:[#allocation7 + $0x1c4] ss:$16 sps:$4 sm:$0xff]   ;;  %v8902_v41 = vld [vmem:[#allocation7 + $0x1c0] ss:$16 sps:$4 sm:$0xff]  }
  0x96   :  { %1456 = vmatpush1.bf16.msra.mxu1 %v8873_v19  ;;  %1416 = vmatprep.subr.bf16.mxu0 %v8874_v20  ;;  %v8900_v40 = vld [vmem:[#allocation7 + $0x3c4] ss:$16 sps:$4 sm:$0xff]   ;;  %v8903_v44 = vld [vmem:[#allocation7 + $0x3c0] ss:$16 sps:$4 sm:$0xff]   ;;  %v8943_v19 = vld [vmem:[#allocation7 + $0xe8] ss:$16 sps:$4 sm:$0xff]  }
  0x97   :  { %1457 = vmatprep.subr.bf16.mxu1 %v8876_v21  ;;  %v8904_v45 = vld [vmem:[#allocation7 + $0x1a4] ss:$16 sps:$4 sm:$0xff]   ;;  %v8908_v47 = vld [vmem:[#allocation7 + $0x1a0] ss:$16 sps:$4 sm:$0xff]   ;;  %v8951_v21 = vld [vmem:[#allocation7 + $0xcc] ss:$16 sps:$4 sm:$0xff]  }
  0x98   :  { %v8906_v46 = vld [vmem:[#allocation7 + $0x3a4] ss:$16 sps:$4 sm:$0xff]   ;;  %v8909_v48 = vld [vmem:[#allocation7 + $0x3a0] ss:$16 sps:$4 sm:$0xff]  }
  0x99   :  { %1417 = vmatpush1.bf16.msra.mxu0 %v8878_v22  ;;  %v8910_v50 = vld [vmem:[#allocation7 + $0x184] ss:$16 sps:$4 sm:$0xff]   ;;  %v8914_v53 = vld [vmem:[#allocation7 + $0x180] ss:$16 sps:$4 sm:$0xff]   ;;  %v10719_v22 = vrot.slane %v409_v16, %v10699_v49 }
  0x9a   :  { %1458 = vmatpush1.bf16.msra.mxu1 %v8879_v23  ;;  %1418 = vmatprep.subr.bf16.mxu0 %v8880_v24  ;;  %v8912_v51 = vld [vmem:[#allocation7 + $0x384] ss:$16 sps:$4 sm:$0xff]   ;;  %v8915_v55 = vld [vmem:[#allocation7 + $0x380] ss:$16 sps:$4 sm:$0xff]   ;;  %v8949_v24 = vld [vmem:[#allocation7 + $0xc8] ss:$16 sps:$4 sm:$0xff]  }
  0x9b   :  { %1459 = vmatprep.subr.bf16.mxu1 %v8882_v25  ;;  %v8916_v56 = vld [vmem:[#allocation7 + $0x164] ss:$16 sps:$4 sm:$0xff]   ;;  %v8920_v59 = vld [vmem:[#allocation7 + $0x160] ss:$16 sps:$4 sm:$0xff]  }
  0x9c   :  { %v8918_v57 = vld [vmem:[#allocation7 + $0x364] ss:$16 sps:$4 sm:$0xff]   ;;  %v8921_v61 = vld [vmem:[#allocation7 + $0x360] ss:$16 sps:$4 sm:$0xff]  }
  0x9d   :  { %1419 = vmatpush1.bf16.msra.mxu0 %v8884_v26  ;;  %v8922_v62 = vld [vmem:[#allocation7 + $0x144] ss:$16 sps:$4 sm:$0xff]   ;;  %v8926_v1 = vld [vmem:[#allocation7 + $0x140] ss:$16 sps:$4 sm:$0xff]   ;;  %v8957_v26 = vld [vmem:[#allocation7 + $0xac] ss:$16 sps:$4 sm:$0xff]  }
  0x9e   :  { %1460 = vmatpush1.bf16.msra.mxu1 %v8885_v27  ;;  %1420 = vmatprep.subr.bf16.mxu0 %v8886_v28  ;;  %v8924_v63 = vld [vmem:[#allocation7 + $0x344] ss:$16 sps:$4 sm:$0xff]   ;;  %v8927_v2 = vld [vmem:[#allocation7 + $0x340] ss:$16 sps:$4 sm:$0xff]   ;;  %v8955_v28 = vld [vmem:[#allocation7 + $0xa8] ss:$16 sps:$4 sm:$0xff]  }
  0x9f   :  { %1461 = vmatprep.subr.bf16.mxu1 %v8888_v29  ;;  %v8928_v3 = vld [vmem:[#allocation7 + $0x124] ss:$16 sps:$4 sm:$0xff]   ;;  %v8932_v6 = vld [vmem:[#allocation7 + $0x120] ss:$16 sps:$4 sm:$0xff]  }
  0xa0   :  { %v8930_v4 = vld [vmem:[#allocation7 + $0x324] ss:$16 sps:$4 sm:$0xff]   ;;  %v8933_v7 = vld [vmem:[#allocation7 + $0x320] ss:$16 sps:$4 sm:$0xff]  }
  0xa1   :  { %1421 = vmatpush1.bf16.msra.mxu0 %v8890_v30  ;;  %v8934_v8 = vld [vmem:[#allocation7 + $0x104] ss:$16 sps:$4 sm:$0xff]   ;;  %v8938_v11 = vld [vmem:[#allocation7 + $0x100] ss:$16 sps:$4 sm:$0xff]   ;;  %v8963_v30 = vld [vmem:[#allocation7 + $0x8c] ss:$16 sps:$4 sm:$0xff]  }
  0xa2   :  { %1462 = vmatpush1.bf16.msra.mxu1 %v8891_v31  ;;  %1422 = vmatprep.subr.bf16.mxu0 %v8892_v32  ;;  %v8936_v9 = vld [vmem:[#allocation7 + $0x304] ss:$16 sps:$4 sm:$0xff]   ;;  %v8939_v13 = vld [vmem:[#allocation7 + $0x300] ss:$16 sps:$4 sm:$0xff]   ;;  %v8961_v32 = vld [vmem:[#allocation7 + $0x88] ss:$16 sps:$4 sm:$0xff]  }
  0xa3   :  { %1463 = vmatprep.subr.bf16.mxu1 %v8894_v33  ;;  %v8942_v14 = vld [vmem:[#allocation7 + $0x4e4] ss:$16 sps:$4 sm:$0xff]   ;;  %v8940_v18 = vld [vmem:[#allocation7 + $0x4e0] ss:$16 sps:$4 sm:$0xff]  }
  0xa4   :  { %v8948_v20 = vld [vmem:[#allocation7 + $0x4c4] ss:$16 sps:$4 sm:$0xff]   ;;  %v8946_v23 = vld [vmem:[#allocation7 + $0x4c0] ss:$16 sps:$4 sm:$0xff]  }
  0xa5   :  { %1423 = vmatpush2.bf16.msra.mxu0 %v8896_v34  ;;  %v8954_v25 = vld [vmem:[#allocation7 + $0x4a4] ss:$16 sps:$4 sm:$0xff]   ;;  %v8952_v27 = vld [vmem:[#allocation7 + $0x4a0] ss:$16 sps:$4 sm:$0xff]   ;;  %v8969_v34 = vld [vmem:[#allocation7 + $0x6c] ss:$16 sps:$4 sm:$0xff]  }
  0xa6   :  { %1464 = vmatpush2.bf16.msra.mxu1 %v8897_v35  ;;  %1424 = vmatprep.subr.bf16.mxu0 %v8898_v39  ;;  %v8960_v29 = vld [vmem:[#allocation7 + $0x484] ss:$16 sps:$4 sm:$0xff]   ;;  %v8958_v31 = vld [vmem:[#allocation7 + $0x480] ss:$16 sps:$4 sm:$0xff]  }
  0xa7   :  { %1465 = vmatprep.subr.bf16.mxu1 %v8900_v40  ;;  %v8966_v33 = vld [vmem:[#allocation7 + $0x464] ss:$16 sps:$4 sm:$0xff]   ;;  %v8964_v35 = vld [vmem:[#allocation7 + $0x460] ss:$16 sps:$4 sm:$0xff]   ;;  %v8973_v40 = vld [vmem:[#allocation7 + $0x48] ss:$16 sps:$4 sm:$0xff]  }
  0xa8   :  { %v8972_v37 = vld [vmem:[#allocation7 + $0x444] ss:$16 sps:$4 sm:$0xff]   ;;  %v8970_v39 = vld [vmem:[#allocation7 + $0x440] ss:$16 sps:$4 sm:$0xff]  }
  0xa9   :  { %1425 = vmatpush2.bf16.msra.mxu0 %v8902_v41  ;;  %v8978_v41 = vld [vmem:[#allocation7 + $0x424] ss:$16 sps:$4 sm:$0xff]   ;;  %v9024_v16 = vld [vmem:[#allocation7 + $0x520] ss:$16 sps:$4 sm:$0xff]  }
  0xaa   :  { %1466 = vmatpush2.bf16.msra.mxu1 %v8903_v44  ;;  %1426 = vmatprep.subr.bf16.mxu0 %v8904_v45  ;;  %v8976_v44 = vld [vmem:[#allocation7 + $0x420] ss:$16 sps:$4 sm:$0xff]   ;;  %v8979_v45 = vld [vmem:[#allocation7 + $0x28] ss:$16 sps:$4 sm:$0xff]  }
  0xab   :  { %1467 = vmatprep.subr.bf16.mxu1 %v8906_v46  ;;  %v8984_v46 = vld [vmem:[#allocation7 + $0x404] ss:$16 sps:$4 sm:$0xff]  }
  0xad   :  { %1427 = vmatpush2.bf16.msra.mxu0 %v8908_v47  ;;  %v8987_v47 = vld [vmem:[#allocation7 + $0xc] ss:$16 sps:$4 sm:$0xff]  }
  0xae   :  { %1468 = vmatpush2.bf16.msra.mxu1 %v8909_v48  ;;  %1428 = vmatprep.subr.bf16.mxu0 %v8910_v50  ;;  %v8982_v48 = vld [vmem:[#allocation7 + $0x400] ss:$16 sps:$4 sm:$0xff]   ;;  %v8985_v50 = vld [vmem:[#allocation7 + $0x8] ss:$16 sps:$4 sm:$0xff]  }
  0xaf   :  { %1469 = vmatprep.subr.bf16.mxu1 %v8912_v51  ;;  %v8990_v51 = vld [vmem:[#allocation7 + $0x5e4] ss:$16 sps:$4 sm:$0xff]  }
  0xb1   :  { %1429 = vmatpush2.bf16.msra.mxu0 %v8914_v53  ;;  %v8988_v53 = vld [vmem:[#allocation7 + $0x5e0] ss:$16 sps:$4 sm:$0xff]  }
  0xb2   :  { %1470 = vmatpush2.bf16.msra.mxu1 %v8915_v55  ;;  %1430 = vmatprep.subr.bf16.mxu0 %v8916_v56  ;;  %v8996_v55 = vld [vmem:[#allocation7 + $0x5c4] ss:$16 sps:$4 sm:$0xff]   ;;  %v8999_v56 = vld [vmem:[#allocation7 + $0x1cc] ss:$16 sps:$4 sm:$0xff]  }
  0xb3   :  { %1471 = vmatprep.subr.bf16.mxu1 %v8918_v57  ;;  %v8994_v57 = vld [vmem:[#allocation7 + $0x5c0] ss:$16 sps:$4 sm:$0xff]  }
  0xb5   :  { %1431 = vmatpush2.bf16.msra.mxu0 %v8920_v59  ;;  %v9002_v59 = vld [vmem:[#allocation7 + $0x5a4] ss:$16 sps:$4 sm:$0xff]  }
  0xb6   :  { %1472 = vmatpush2.bf16.msra.mxu1 %v8921_v61  ;;  %1432 = vmatprep.subr.bf16.mxu0 %v8922_v62  ;;  %v9000_v61 = vld [vmem:[#allocation7 + $0x5a0] ss:$16 sps:$4 sm:$0xff]   ;;  %v9003_v62 = vld [vmem:[#allocation7 + $0x1a8] ss:$16 sps:$4 sm:$0xff]  }
  0xb7   :  { %1473 = vmatprep.subr.bf16.mxu1 %v8924_v63  ;;  %v9008_v63 = vld [vmem:[#allocation7 + $0x584] ss:$16 sps:$4 sm:$0xff]  }
  0xb9   :  { %1433 = vmatpush2.bf16.msra.mxu0 %v8926_v1  ;;  %v9011_v1 = vld [vmem:[#allocation7 + $0x18c] ss:$16 sps:$4 sm:$0xff]  }
  0xba   :  { %1474 = vmatpush2.bf16.msra.mxu1 %v8927_v2  ;;  %1434 = vmatprep.subr.bf16.mxu0 %v8928_v3  ;;  %v9006_v2 = vld [vmem:[#allocation7 + $0x580] ss:$16 sps:$4 sm:$0xff]   ;;  %v9009_v3 = vld [vmem:[#allocation7 + $0x188] ss:$16 sps:$4 sm:$0xff]  }
  0xbb   :  { %1475 = vmatprep.subr.bf16.mxu1 %v8930_v4  ;;  %v9014_v4 = vld [vmem:[#allocation7 + $0x564] ss:$16 sps:$4 sm:$0xff]  }
  0xbd   :  { %1435 = vmatpush2.bf16.msra.mxu0 %v8932_v6  ;;  %v9012_v6 = vld [vmem:[#allocation7 + $0x560] ss:$16 sps:$4 sm:$0xff]  }
  0xbe   :  { %1476 = vmatpush2.bf16.msra.mxu1 %v8933_v7  ;;  %1436 = vmatprep.subr.bf16.mxu0 %v8934_v8  ;;  %v9015_v7 = vld [vmem:[#allocation7 + $0x168] ss:$16 sps:$4 sm:$0xff]   ;;  %v9020_v8 = vld [vmem:[#allocation7 + $0x544] ss:$16 sps:$4 sm:$0xff]  }
  0xbf   :  { %1477 = vmatprep.subr.bf16.mxu1 %v8936_v9  ;;  %v9023_v9 = vld [vmem:[#allocation7 + $0x14c] ss:$16 sps:$4 sm:$0xff]  }
  0xc1   :  { %1437 = vmatpush2.bf16.msra.mxu0 %v8938_v11  ;;  %v9018_v11 = vld [vmem:[#allocation7 + $0x540] ss:$16 sps:$4 sm:$0xff]  }
  0xc2   :  { %1478 = vmatpush2.bf16.msra.mxu1 %v8939_v13  ;;  %1488 = vmatprep.subr.bf16.mxu0 %v8942_v14  ;;  %v9021_v13 = vld [vmem:[#allocation7 + $0x148] ss:$16 sps:$4 sm:$0xff]   ;;  %v9026_v14 = vld [vmem:[#allocation7 + $0x524] ss:$16 sps:$4 sm:$0xff]  }
  0xc3   :  { %1529 = vmatprep.subr.bf16.mxu1 %v8945_v15  ;;  %v9029_v15 = vld [vmem:[#allocation7 + $0x12c] ss:$16 sps:$4 sm:$0xff]  }
  0xc4   :  { %1439 = vmatmul.mubr.bf16.vlgmr.msra.gmra.mxu0 %v10710_v12 }
  0xc5   :  { %1480 = vmatmul.mubr.bf16.vlgmr.msra.gmra.mxu1 %v10716_v17  ;;  %1489 = vmatpush1.bf16.msra.mxu0 %v8940_v18  ;;  %v9027_v18 = vld [vmem:[#allocation7 + $0x128] ss:$16 sps:$4 sm:$0xff]  }
  0xc6   :  { %1530 = vmatpush1.bf16.msra.mxu1 %v8943_v19  ;;  %1490 = vmatprep.subr.bf16.mxu0 %v8948_v20  ;;  %v9032_v19 = vld [vmem:[#allocation7 + $0x504] ss:$16 sps:$4 sm:$0xff]   ;;  %v9035_v20 = vld [vmem:[#allocation7 + $0x10c] ss:$16 sps:$4 sm:$0xff]  }
  0xc7   :  { %1531 = vmatprep.subr.bf16.mxu1 %v8951_v21  ;;  %1520 = vmatprep.mubr.bf16.mxu0 %v10719_v22  ;;  %v9030_v21 = vld [vmem:[#allocation7 + $0x500] ss:$16 sps:$4 sm:$0xff]  }
  0xc8   :  { %1561 = vmatprep.mubr.bf16.mxu1 %v430_v60  ;;  %v9005_v60 = vld [vmem:[#allocation7 + $0x1ac] ss:$16 sps:$4 sm:$0xff]  }
  0xc9   :  { %1491 = vmatpush1.bf16.msra.mxu0 %v8946_v23  ;;  %v9033_v23 = vld [vmem:[#allocation7 + $0x108] ss:$16 sps:$4 sm:$0xff]  }
  0xca   :  { %1532 = vmatpush1.bf16.msra.mxu1 %v8949_v24  ;;  %1492 = vmatprep.subr.bf16.mxu0 %v8954_v25  ;;  %v9039_v24 = vld [vmem:[#allocation7 + $0x2ec] ss:$16 sps:$4 sm:$0xff]  }
  0xcb   :  { %1533 = vmatprep.subr.bf16.mxu1 %v8957_v26  ;;  %v9042_v25 = vld [vmem:[#allocation7 + $0x4ec] ss:$16 sps:$4 sm:$0xff]   ;;  %v10726_v26 = vrot.slane %v10707_v10, %v10699_v49 }
  0xcc   :  { %v9051_v10 = vld [vmem:[#allocation7 + $0x2ac] ss:$16 sps:$4 sm:$0xff]  }
  0xcd   :  { %1493 = vmatpush1.bf16.msra.mxu0 %v8952_v27  ;;  %v9037_v27 = vld [vmem:[#allocation7 + $0x2e8] ss:$16 sps:$4 sm:$0xff]  }
  0xce   :  { %1534 = vmatpush1.bf16.msra.mxu1 %v8955_v28  ;;  %1494 = vmatprep.subr.bf16.mxu0 %v8960_v29  ;;  %v9040_v28 = vld [vmem:[#allocation7 + $0x4e8] ss:$16 sps:$4 sm:$0xff]   ;;  %v9045_v29 = vld [vmem:[#allocation7 + $0x2cc] ss:$16 sps:$4 sm:$0xff]  }
  0xcf   :  { %1535 = vmatprep.subr.bf16.mxu1 %v8963_v30  ;;  %v9048_v30 = vld [vmem:[#allocation7 + $0x4cc] ss:$16 sps:$4 sm:$0xff]  }
  0xd1   :  { %1495 = vmatpush1.bf16.msra.mxu0 %v8958_v31  ;;  %v9043_v31 = vld [vmem:[#allocation7 + $0x2c8] ss:$16 sps:$4 sm:$0xff]  }
  0xd2   :  { %1536 = vmatpush1.bf16.msra.mxu1 %v8961_v32  ;;  %1496 = vmatprep.subr.bf16.mxu0 %v8966_v33  ;;  %v9046_v32 = vld [vmem:[#allocation7 + $0x4c8] ss:$16 sps:$4 sm:$0xff]   ;;  %v9054_v33 = vld [vmem:[#allocation7 + $0x4ac] ss:$16 sps:$4 sm:$0xff]  }
  0xd3   :  { %1537 = vmatprep.subr.bf16.mxu1 %v8969_v34  ;;  %v9049_v34 = vld [vmem:[#allocation7 + $0x2a8] ss:$16 sps:$4 sm:$0xff]  }
  0xd5   :  { %1497 = vmatpush1.bf16.msra.mxu0 %v8964_v35  ;;  %v9052_v35 = vld [vmem:[#allocation7 + $0x4a8] ss:$16 sps:$4 sm:$0xff]  }
  0xd6   :  { %1538 = vmatpush1.bf16.msra.mxu1 %v8967_v36  ;;  %1498 = vmatprep.subr.bf16.mxu0 %v8972_v37  ;;  %v9057_v36 = vld [vmem:[#allocation7 + $0x28c] ss:$16 sps:$4 sm:$0xff]   ;;  %v9055_v37 = vld [vmem:[#allocation7 + $0x288] ss:$16 sps:$4 sm:$0xff]  }
  0xd7   :  { %1539 = vmatprep.subr.bf16.mxu1 %v8975_v38  ;;  %v9058_v38 = vld [vmem:[#allocation7 + $0x488] ss:$16 sps:$4 sm:$0xff]  }
  0xd9   :  { %1499 = vmatpush1.bf16.msra.mxu0 %v8970_v39  ;;  %v9063_v39 = vld [vmem:[#allocation7 + $0x26c] ss:$16 sps:$4 sm:$0xff]  }
  0xda   :  { %1540 = vmatpush1.bf16.msra.mxu1 %v8973_v40  ;;  %1500 = vmatprep.subr.bf16.mxu0 %v8978_v41  ;;  %v9066_v40 = vld [vmem:[#allocation7 + $0x46c] ss:$16 sps:$4 sm:$0xff]   ;;  %v9061_v41 = vld [vmem:[#allocation7 + $0x268] ss:$16 sps:$4 sm:$0xff]  }
  0xdb   :  { %1541 = vmatprep.subr.bf16.mxu1 %v8981_v43  ;;  %v9072_v43 = vld [vmem:[#allocation7 + $0x44c] ss:$16 sps:$4 sm:$0xff]  }
  0xdd   :  { %1501 = vmatpush1.bf16.msra.mxu0 %v8976_v44  ;;  %v9067_v44 = vld [vmem:[#allocation7 + $0x248] ss:$16 sps:$4 sm:$0xff]  }
  0xde   :  { %1542 = vmatpush1.bf16.msra.mxu1 %v8979_v45  ;;  %1502 = vmatprep.subr.bf16.mxu0 %v8984_v46  ;;  %v9070_v45 = vld [vmem:[#allocation7 + $0x448] ss:$16 sps:$4 sm:$0xff]   ;;  %v9075_v46 = vld [vmem:[#allocation7 + $0x22c] ss:$16 sps:$4 sm:$0xff]  }
  0xdf   :  { %1543 = vmatprep.subr.bf16.mxu1 %v8987_v47  ;;  %v9078_v47 = vld [vmem:[#allocation7 + $0x42c] ss:$16 sps:$4 sm:$0xff]  }
  0xe1   :  { %1503 = vmatpush1.bf16.msra.mxu0 %v8982_v48  ;;  %v9073_v48 = vld [vmem:[#allocation7 + $0x228] ss:$16 sps:$4 sm:$0xff]  }
  0xe2   :  { %1544 = vmatpush1.bf16.msra.mxu1 %v8985_v50  ;;  %1504 = vmatprep.subr.bf16.mxu0 %v8990_v51  ;;  %v9076_v50 = vld [vmem:[#allocation7 + $0x428] ss:$16 sps:$4 sm:$0xff]   ;;  %v9081_v51 = vld [vmem:[#allocation7 + $0x20c] ss:$16 sps:$4 sm:$0xff]  }
  0xe3   :  { %1545 = vmatprep.subr.bf16.mxu1 %v8993_v52  ;;  %v9084_v52 = vld [vmem:[#allocation7 + $0x40c] ss:$16 sps:$4 sm:$0xff]  }
  0xe5   :  { %1505 = vmatpush2.bf16.msra.mxu0 %v8988_v53  ;;  %v9079_v53 = vld [vmem:[#allocation7 + $0x208] ss:$16 sps:$4 sm:$0xff]  }
  0xe6   :  { %1546 = vmatpush2.bf16.msra.mxu1 %v8991_v54  ;;  %1506 = vmatprep.subr.bf16.mxu0 %v8996_v55  ;;  %v9082_v54 = vld [vmem:[#allocation7 + $0x408] ss:$16 sps:$4 sm:$0xff]   ;;  %v9087_v55 = vld [vmem:[#allocation7 + $0x3ec] ss:$16 sps:$4 sm:$0xff]  }
  0xe7   :  { %1547 = vmatprep.subr.bf16.mxu1 %v8999_v56  ;;  %v9090_v56 = vld [vmem:[#allocation7 + $0x5ec] ss:$16 sps:$4 sm:$0xff]  }
  0xe9   :  { %1507 = vmatpush2.bf16.msra.mxu0 %v8994_v57  ;;  %v9085_v57 = vld [vmem:[#allocation7 + $0x3e8] ss:$16 sps:$4 sm:$0xff]  }
  0xea   :  { %1548 = vmatpush2.bf16.msra.mxu1 %v8997_v58  ;;  %1508 = vmatprep.subr.bf16.mxu0 %v9002_v59  ;;  %v9088_v58 = vld [vmem:[#allocation7 + $0x5e8] ss:$16 sps:$4 sm:$0xff]   ;;  %v9093_v59 = vld [vmem:[#allocation7 + $0x3cc] ss:$16 sps:$4 sm:$0xff]  }
  0xeb   :  { %1549 = vmatprep.subr.bf16.mxu1 %v9005_v60  ;;  %v9096_v60 = vld [vmem:[#allocation7 + $0x5cc] ss:$16 sps:$4 sm:$0xff]  }
  0xed   :  { %1509 = vmatpush2.bf16.msra.mxu0 %v9000_v61  ;;  %v9091_v61 = vld [vmem:[#allocation7 + $0x3c8] ss:$16 sps:$4 sm:$0xff]  }
  0xee   :  { %1550 = vmatpush2.bf16.msra.mxu1 %v9003_v62  ;;  %1510 = vmatprep.subr.bf16.mxu0 %v9008_v63  ;;  %v9094_v62 = vld [vmem:[#allocation7 + $0x5c8] ss:$16 sps:$4 sm:$0xff]   ;;  %v9099_v63 = vld [vmem:[#allocation7 + $0x3ac] ss:$16 sps:$4 sm:$0xff]  }
  0xef   :  { %1551 = vmatprep.subr.bf16.mxu1 %v9011_v1  ;;  %v9102_v1 = vld [vmem:[#allocation7 + $0x5ac] ss:$16 sps:$4 sm:$0xff]  }
  0xf1   :  { %1511 = vmatpush2.bf16.msra.mxu0 %v9006_v2  ;;  %v9097_v2 = vld [vmem:[#allocation7 + $0x3a8] ss:$16 sps:$4 sm:$0xff]  }
  0xf2   :  { %1552 = vmatpush2.bf16.msra.mxu1 %v9009_v3  ;;  %1512 = vmatprep.subr.bf16.mxu0 %v9014_v4  ;;  %v9100_v3 = vld [vmem:[#allocation7 + $0x5a8] ss:$16 sps:$4 sm:$0xff]   ;;  %v9105_v4 = vld [vmem:[#allocation7 + $0x38c] ss:$16 sps:$4 sm:$0xff]  }
  0xf3   :  { %1553 = vmatprep.subr.bf16.mxu1 %v9017_v5  ;;  %v9108_v5 = vld [vmem:[#allocation7 + $0x58c] ss:$16 sps:$4 sm:$0xff]  }
  0xf5   :  { %1513 = vmatpush2.bf16.msra.mxu0 %v9012_v6  ;;  %v9103_v6 = vld [vmem:[#allocation7 + $0x388] ss:$16 sps:$4 sm:$0xff]  }
  0xf6   :  { %1554 = vmatpush2.bf16.msra.mxu1 %v9015_v7  ;;  %1514 = vmatprep.subr.bf16.mxu0 %v9020_v8  ;;  %v9106_v7 = vld [vmem:[#allocation7 + $0x588] ss:$16 sps:$4 sm:$0xff]   ;;  %v9111_v8 = vld [vmem:[#allocation7 + $0x36c] ss:$16 sps:$4 sm:$0xff]  }
  0xf7   :  { %1555 = vmatprep.subr.bf16.mxu1 %v9023_v9  ;;  %v9114_v9 = vld [vmem:[#allocation7 + $0x56c] ss:$16 sps:$4 sm:$0xff]  }
  0xf9   :  { %1515 = vmatpush2.bf16.msra.mxu0 %v9018_v11  ;;  %v9109_v11 = vld [vmem:[#allocation7 + $0x368] ss:$16 sps:$4 sm:$0xff]  }
  0xfa   :  { %1556 = vmatpush2.bf16.msra.mxu1 %v9021_v13  ;;  %1516 = vmatprep.subr.bf16.mxu0 %v9026_v14  ;;  %v9112_v13 = vld [vmem:[#allocation7 + $0x568] ss:$16 sps:$4 sm:$0xff]   ;;  %v9117_v14 = vld [vmem:[#allocation7 + $0x34c] ss:$16 sps:$4 sm:$0xff]  }
  0xfb   :  { %1557 = vmatprep.subr.bf16.mxu1 %v9029_v15  ;;  %v9120_v15 = vld [vmem:[#allocation7 + $0x54c] ss:$16 sps:$4 sm:$0xff]  }
  0xfd   :  { %1517 = vmatpush2.bf16.msra.mxu0 %v9024_v16  ;;  %v9115_v16 = vld [vmem:[#allocation7 + $0x348] ss:$16 sps:$4 sm:$0xff]  }
  0xfe   :  { %1558 = vmatpush2.bf16.msra.mxu1 %v9027_v18  ;;  %1518 = vmatprep.subr.bf16.mxu0 %v9032_v19  ;;  %v10732_v18 = vld [vmem:[#allocation5] sm:$0xff]  ;;  %v9118_v19 = vld [vmem:[#allocation7 + $0x548] ss:$16 sps:$4 sm:$0xff]  }
  0xff   :  { %1559 = vmatprep.subr.bf16.mxu1 %v9035_v20  ;;  %v9123_v20 = vld [vmem:[#allocation7 + $0x32c] ss:$16 sps:$4 sm:$0xff]  }
 0x101   :  { %1519 = vmatpush2.bf16.msra.mxu0 %v9030_v21  ;;  %v9126_v21 = vld [vmem:[#allocation7 + $0x52c] ss:$16 sps:$4 sm:$0xff]  }
 0x102   :  { %1560 = vmatpush2.bf16.msra.mxu1 %v9033_v23  ;;  %1570 = vmatprep.subr.bf16.mxu0 %v9039_v24  ;;  %v10736_v23 = vrot.slane %v10732_v18, %v10699_v49  ;;  %v9121_v24 = vld [vmem:[#allocation7 + $0x328] ss:$16 sps:$4 sm:$0xff]  }
 0x103   :  { %1611 = vmatprep.subr.bf16.mxu1 %v9042_v25  ;;  %v9124_v25 = vld [vmem:[#allocation7 + $0x528] ss:$16 sps:$4 sm:$0xff]  }
 0x104   :  { %1521 = vmatmul.mubr.bf16.vlgmr.msra.gmra.mxu0 %v10726_v26 }
 0x105   :  { %1562 = vmatmul.mubr.bf16.vlgmr.msra.gmra.mxu1 %v10710_v12  ;;  %1571 = vmatpush1.bf16.msra.mxu0 %v9037_v27  ;;  %v9060_v12 = vld [vmem:[#allocation7 + $0x48c] ss:$16 sps:$4 sm:$0xff]  }
 0x106   :  { %1612 = vmatpush1.bf16.msra.mxu1 %v9040_v28  ;;  %1572 = vmatprep.subr.bf16.mxu0 %v9045_v29  ;;  %v9129_v27 = vld [vmem:[#allocation7 + $0x30c] ss:$16 sps:$4 sm:$0xff]   ;;  %v2205_v29 = vcombine.high %v10736_v23, %v10736_v23 }
 0x107   :  { %1613 = vmatprep.subr.bf16.mxu1 %v9048_v30  ;;  %1602 = vmatprep.mubr.bf16.mxu0 %v10703_v0  ;;  %v9064_v0 = vld [vmem:[#allocation7 + $0x468] ss:$16 sps:$4 sm:$0xff]   ;;  %v9132_v28 = vld [vmem:[#allocation7 + $0x50c] ss:$16 sps:$4 sm:$0xff]  }
 0x108   :  { %1643 = vmatprep.mubr.bf16.mxu1 %v10719_v22  ;;  %v9069_v22 = vld [vmem:[#allocation7 + $0x24c] ss:$16 sps:$4 sm:$0xff]   ;;  %v9127_v30 = vld [vmem:[#allocation7 + $0x308] ss:$16 sps:$4 sm:$0xff]  }
 0x109   :  { %1573 = vmatpush1.bf16.msra.mxu0 %v9043_v31  ;;  %v9130_v31 = vld [vmem:[#allocation7 + $0x508] ss:$16 sps:$4 sm:$0xff]  }
 0x10a   :  { %1614 = vmatpush1.bf16.msra.mxu1 %v9046_v32  ;;  %1574 = vmatprep.subr.bf16.mxu0 %v9051_v10  ;;  %v9135_v32 = vld [vmem:[#allocation10 + $0xe4] ss:$16 sps:$4 sm:$0xff]  }
 0x10b   :  { %1615 = vmatprep.subr.bf16.mxu1 %v9054_v33  ;;  %v9138_v10 = vld [vmem:[#allocation10 + $0x2e4] ss:$16 sps:$4 sm:$0xff]   ;;  %v10741_v33 = vrot.slane %v2205_v29, %v10699_v49  ;;  %v9211_v29 = vld [vmem:[#allocation10 + $0x140] ss:$16 sps:$4 sm:$0xff]  }
 0x10d   :  { %1575 = vmatpush1.bf16.msra.mxu0 %v9049_v34  ;;  %v9133_v34 = vld [vmem:[#allocation10 + $0xe0] ss:$16 sps:$4 sm:$0xff]  }
 0x10e   :  { %1616 = vmatpush1.bf16.msra.mxu1 %v9052_v35  ;;  %1576 = vmatprep.subr.bf16.mxu0 %v9057_v36  ;;  %v9136_v35 = vld [vmem:[#allocation10 + $0x2e0] ss:$16 sps:$4 sm:$0xff]   ;;  %v9141_v36 = vld [vmem:[#allocation10 + $0xc4] ss:$16 sps:$4 sm:$0xff]  }
 0x10f   :  { %1617 = vmatprep.subr.bf16.mxu1 %v9060_v12  ;;  %v9144_v12 = vld [vmem:[#allocation10 + $0x2c4] ss:$16 sps:$4 sm:$0xff]  }
 0x111   :  { %1577 = vmatpush1.bf16.msra.mxu0 %v9055_v37  ;;  %v10745_v37 = vcombine.high %v10741_v33, %v10741_v33 }
 0x112   :  { %1618 = vmatpush1.bf16.msra.mxu1 %v9058_v38  ;;  %1578 = vmatprep.subr.bf16.mxu0 %v9063_v39  ;;  %v9139_v38 = vld [vmem:[#allocation10 + $0xc0] ss:$16 sps:$4 sm:$0xff]  }
 0x113   :  { %1619 = vmatprep.subr.bf16.mxu1 %v9066_v40  ;;  %v9142_v39 = vld [vmem:[#allocation10 + $0x2c0] ss:$16 sps:$4 sm:$0xff]   ;;  %v9147_v40 = vld [vmem:[#allocation10 + $0xa4] ss:$16 sps:$4 sm:$0xff]  }
 0x115   :  { %1579 = vmatpush1.bf16.msra.mxu0 %v9061_v41  ;;  %v9150_v41 = vld [vmem:[#allocation10 + $0x2a4] ss:$16 sps:$4 sm:$0xff]  }
 0x116   :  { %1620 = vmatpush1.bf16.msra.mxu1 %v9064_v0  ;;  %1580 = vmatprep.subr.bf16.mxu0 %v9069_v22  ;;  %v9145_v0 = vld [vmem:[#allocation10 + $0xa0] ss:$16 sps:$4 sm:$0xff]  }
 0x117   :  { %1621 = vmatprep.subr.bf16.mxu1 %v9072_v43  ;;  %v9148_v22 = vld [vmem:[#allocation10 + $0x2a0] ss:$16 sps:$4 sm:$0xff]   ;;  %v9153_v43 = vld [vmem:[#allocation10 + $0x84] ss:$16 sps:$4 sm:$0xff]  }
 0x119   :  { %1581 = vmatpush1.bf16.msra.mxu0 %v9067_v44  ;;  %v9154_v44 = vld [vmem:[#allocation10 + $0x280] ss:$16 sps:$4 sm:$0xff]  }
 0x11a   :  { %1622 = vmatpush1.bf16.msra.mxu1 %v9070_v45  ;;  %1582 = vmatprep.subr.bf16.mxu0 %v9075_v46  ;;  %v9159_v45 = vld [vmem:[#allocation10 + $0x64] ss:$16 sps:$4 sm:$0xff]  }
 0x11b   :  { %1623 = vmatprep.subr.bf16.mxu1 %v9078_v47  ;;  %v9162_v46 = vld [vmem:[#allocation10 + $0x264] ss:$16 sps:$4 sm:$0xff]   ;;  %v9157_v47 = vld [vmem:[#allocation10 + $0x60] ss:$16 sps:$4 sm:$0xff]  }
 0x11d   :  { %1583 = vmatpush1.bf16.msra.mxu0 %v9073_v48  ;;  %v9160_v48 = vld [vmem:[#allocation10 + $0x260] ss:$16 sps:$4 sm:$0xff]  }
 0x11e   :  { %1624 = vmatpush1.bf16.msra.mxu1 %v9076_v50  ;;  %1584 = vmatprep.subr.bf16.mxu0 %v9081_v51  ;;  %v9165_v50 = vld [vmem:[#allocation10 + $0x44] ss:$16 sps:$4 sm:$0xff]  }
 0x11f   :  { %1625 = vmatprep.subr.bf16.mxu1 %v9084_v52  ;;  %v9168_v51 = vld [vmem:[#allocation10 + $0x244] ss:$16 sps:$4 sm:$0xff]   ;;  %v9163_v52 = vld [vmem:[#allocation10 + $0x40] ss:$16 sps:$4 sm:$0xff]  }
 0x121   :  { %1585 = vmatpush1.bf16.msra.mxu0 %v9079_v53  ;;  %v9166_v53 = vld [vmem:[#allocation10 + $0x240] ss:$16 sps:$4 sm:$0xff]  }
 0x122   :  { %1626 = vmatpush1.bf16.msra.mxu1 %v9082_v54  ;;  %1586 = vmatprep.subr.bf16.mxu0 %v9087_v55  ;;  %v9171_v54 = vld [vmem:[#allocation10 + $0x24] ss:$16 sps:$4 sm:$0xff]  }
 0x123   :  { %1627 = vmatprep.subr.bf16.mxu1 %v9090_v56  ;;  %v9174_v55 = vld [vmem:[#allocation10 + $0x224] ss:$16 sps:$4 sm:$0xff]   ;;  %v9169_v56 = vld [vmem:[#allocation10 + $0x20] ss:$16 sps:$4 sm:$0xff]  }
 0x125   :  { %1587 = vmatpush2.bf16.msra.mxu0 %v9085_v57  ;;  %v9172_v57 = vld [vmem:[#allocation10 + $0x220] ss:$16 sps:$4 sm:$0xff]  }
 0x126   :  { %1628 = vmatpush2.bf16.msra.mxu1 %v9088_v58  ;;  %1588 = vmatprep.subr.bf16.mxu0 %v9093_v59  ;;  %v9177_v58 = vld [vmem:[#allocation10 + $0x4] ss:$16 sps:$4 sm:$0xff]  }
 0x127   :  { %1629 = vmatprep.subr.bf16.mxu1 %v9096_v60  ;;  %v9180_v59 = vld [vmem:[#allocation10 + $0x204] ss:$16 sps:$4 sm:$0xff]   ;;  %v9175_v60 = vld [vmem:[#allocation10] ss:$16 sps:$4 sm:$0xff]  }
 0x129   :  { %1589 = vmatpush2.bf16.msra.mxu0 %v9091_v61  ;;  %v9178_v61 = vld [vmem:[#allocation10 + $0x200] ss:$16 sps:$4 sm:$0xff]  }
 0x12a   :  { %1630 = vmatpush2.bf16.msra.mxu1 %v9094_v62  ;;  %1590 = vmatprep.subr.bf16.mxu0 %v9099_v63  ;;  %v9183_v62 = vld [vmem:[#allocation10 + $0x1e4] ss:$16 sps:$4 sm:$0xff]  }
 0x12b   :  { %1631 = vmatprep.subr.bf16.mxu1 %v9102_v1  ;;  %v9186_v63 = vld [vmem:[#allocation10 + $0x3e4] ss:$16 sps:$4 sm:$0xff]   ;;  %v9181_v1 = vld [vmem:[#allocation10 + $0x1e0] ss:$16 sps:$4 sm:$0xff]  }
 0x12d   :  { %1591 = vmatpush2.bf16.msra.mxu0 %v9097_v2  ;;  %v9184_v2 = vld [vmem:[#allocation10 + $0x3e0] ss:$16 sps:$4 sm:$0xff]  }
 0x12e   :  { %1632 = vmatpush2.bf16.msra.mxu1 %v9100_v3  ;;  %1592 = vmatprep.subr.bf16.mxu0 %v9105_v4  ;;  %v9189_v3 = vld [vmem:[#allocation10 + $0x1c4] ss:$16 sps:$4 sm:$0xff]  }
 0x12f   :  { %1633 = vmatprep.subr.bf16.mxu1 %v9108_v5  ;;  %v9192_v4 = vld [vmem:[#allocation10 + $0x3c4] ss:$16 sps:$4 sm:$0xff]   ;;  %v9187_v5 = vld [vmem:[#allocation10 + $0x1c0] ss:$16 sps:$4 sm:$0xff]  }
 0x131   :  { %1593 = vmatpush2.bf16.msra.mxu0 %v9103_v6  ;;  %v9190_v6 = vld [vmem:[#allocation10 + $0x3c0] ss:$16 sps:$4 sm:$0xff]  }
 0x132   :  { %1634 = vmatpush2.bf16.msra.mxu1 %v9106_v7  ;;  %1594 = vmatprep.subr.bf16.mxu0 %v9111_v8  ;;  %v9195_v7 = vld [vmem:[#allocation10 + $0x1a4] ss:$16 sps:$4 sm:$0xff]  }
 0x133   :  { %1635 = vmatprep.subr.bf16.mxu1 %v9114_v9  ;;  %v9198_v8 = vld [vmem:[#allocation10 + $0x3a4] ss:$16 sps:$4 sm:$0xff]   ;;  %v9193_v9 = vld [vmem:[#allocation10 + $0x1a0] ss:$16 sps:$4 sm:$0xff]  }
 0x135   :  { %1595 = vmatpush2.bf16.msra.mxu0 %v9109_v11  ;;  %v9196_v11 = vld [vmem:[#allocation10 + $0x3a0] ss:$16 sps:$4 sm:$0xff]  }
 0x136   :  { %1636 = vmatpush2.bf16.msra.mxu1 %v9112_v13  ;;  %1596 = vmatprep.subr.bf16.mxu0 %v9117_v14  ;;  %v9201_v13 = vld [vmem:[#allocation10 + $0x184] ss:$16 sps:$4 sm:$0xff]  }
 0x137   :  { %1637 = vmatprep.subr.bf16.mxu1 %v9120_v15  ;;  %v9204_v14 = vld [vmem:[#allocation10 + $0x384] ss:$16 sps:$4 sm:$0xff]   ;;  %v9199_v15 = vld [vmem:[#allocation10 + $0x180] ss:$16 sps:$4 sm:$0xff]  }
 0x139   :  { %1597 = vmatpush2.bf16.msra.mxu0 %v9115_v16  ;;  %v9202_v16 = vld [vmem:[#allocation10 + $0x380] ss:$16 sps:$4 sm:$0xff]  }
 0x13a   :  { %1638 = vmatpush2.bf16.msra.mxu1 %v9118_v19  ;;  %1598 = vmatprep.subr.bf16.mxu0 %v9123_v20  ;;  %v9207_v19 = vld [vmem:[#allocation10 + $0x164] ss:$16 sps:$4 sm:$0xff]  }
 0x13b   :  { %1639 = vmatprep.subr.bf16.mxu1 %v9126_v21  ;;  %v9210_v20 = vld [vmem:[#allocation10 + $0x364] ss:$16 sps:$4 sm:$0xff]   ;;  %v9205_v21 = vld [vmem:[#allocation10 + $0x160] ss:$16 sps:$4 sm:$0xff]  }
 0x13d   :  { %1599 = vmatpush2.bf16.msra.mxu0 %v9121_v24  ;;  %v9208_v24 = vld [vmem:[#allocation10 + $0x360] ss:$16 sps:$4 sm:$0xff]  }
 0x13e   :  { %1640 = vmatpush2.bf16.msra.mxu1 %v9124_v25  ;;  %1600 = vmatprep.subr.bf16.mxu0 %v9129_v27  ;;  %v9213_v25 = vld [vmem:[#allocation10 + $0x144] ss:$16 sps:$4 sm:$0xff]  }
 0x13f   :  { %1641 = vmatprep.subr.bf16.mxu1 %v9132_v28  ;;  %v9216_v27 = vld [vmem:[#allocation10 + $0x344] ss:$16 sps:$4 sm:$0xff]   ;;  %v2190_v28 = vcombine.high %v10732_v18, %v10732_v18 }
 0x141   :  { %1601 = vmatpush2.bf16.msra.mxu0 %v9127_v30  ;;  %v9214_v30 = vld [vmem:[#allocation10 + $0x340] ss:$16 sps:$4 sm:$0xff]  }
 0x142   :  { %1642 = vmatpush2.bf16.msra.mxu1 %v9130_v31  ;;  %4864 = vmatprep.subr.bf16.mxu0 %v9135_v32  ;;  %v9219_v31 = vld [vmem:[#allocation10 + $0x124] ss:$16 sps:$4 sm:$0xff]  }
 0x143   :  { %4905 = vmatprep.subr.bf16.mxu1 %v9138_v10  ;;  %v9222_v32 = vld [vmem:[#allocation10 + $0x324] ss:$16 sps:$4 sm:$0xff]   ;;  %v10754_v10 = vrot.slane %v2190_v28, %v10699_v49  ;;  %v9265_v28 = vld [vmem:[#allocation10 + $0x420] ss:$16 sps:$4 sm:$0xff]  }
 0x144   :  { %1603 = vmatmul.mubr.bf16.vlgmr.msra.gmra.mxu0 %v10716_v17  ;;  %v9156_v17 = vld [vmem:[#allocation10 + $0x284] ss:$16 sps:$4 sm:$0xff]  }
 0x145   :  { %1644 = vmatmul.mubr.bf16.vlgmr.msra.gmra.mxu1 %v10726_v26  ;;  %4865 = vmatpush1.bf16.msra.mxu0 %v9133_v34  ;;  %v9151_v26 = vld [vmem:[#allocation10 + $0x80] ss:$16 sps:$4 sm:$0xff]   ;;  %v2206_v18 = vcombine.high %v10754_v10, %v10754_v10 }
 0x146   :  { %4906 = vmatpush1.bf16.msra.mxu1 %v9136_v35  ;;  %4866 = vmatprep.subr.bf16.mxu0 %v9141_v36  ;;  %v9217_v34 = vld [vmem:[#allocation10 + $0x120] ss:$16 sps:$4 sm:$0xff]   ;;  %v9225_v36 = vld [vmem:[#allocation10 + $0x104] ss:$16 sps:$4 sm:$0xff]  }
 0x147   :  { %4907 = vmatprep.subr.bf16.mxu1 %v9144_v12  ;;  %4896 = vmatprep.mubr.bf16.mxu0 %v10741_v33  ;;  %v9220_v35 = vld [vmem:[#allocation10 + $0x320] ss:$16 sps:$4 sm:$0xff]   ;;  %v9228_v12 = vld [vmem:[#allocation10 + $0x304] ss:$16 sps:$4 sm:$0xff]  }
 0x148   :  { %4937 = vmatprep.mubr.bf16.mxu1 %v10745_v37 }
 0x149   :  { %4867 = vmatpush1.bf16.msra.mxu0 %v9139_v38  ;;  %v9223_v38 = vld [vmem:[#allocation10 + $0x100] ss:$16 sps:$4 sm:$0xff]  }
 0x14a   :  { %4908 = vmatpush1.bf16.msra.mxu1 %v9142_v39  ;;  %4868 = vmatprep.subr.bf16.mxu0 %v9147_v40  ;;  %v9226_v39 = vld [vmem:[#allocation10 + $0x300] ss:$16 sps:$4 sm:$0xff]   ;;  %v10760_v40 = vrot.slane %v10736_v23, %v10699_v49 }
 0x14b   :  { %4909 = vmatprep.subr.bf16.mxu1 %v9150_v41  ;;  %v10762_v41 = vld [vmem:[#allocation8] sm:$0xf] }
 0x14c   :  { %v10775_v23 = vcombine.high %v10760_v40, %v10760_v40 }
 0x14d   :  { %4869 = vmatpush1.bf16.msra.mxu0 %v9145_v0  ;;  %v10765_v0 = vsub.s32 0, %v10696_v42 }
 0x14e   :  { %4910 = vmatpush1.bf16.msra.mxu1 %v9148_v22  ;;  %4870 = vmatprep.subr.bf16.mxu0 %v9153_v43  ;;  %v9231_v22 = vld [vmem:[#allocation10 + $0x4e4] ss:$16 sps:$4 sm:$0xff]  }
 0x14f   :  { %4911 = vmatprep.subr.bf16.mxu1 %v9156_v17  ;;  %v9234_v43 = vld [vmem:[#allocation10 + $0x6e4] ss:$16 sps:$4 sm:$0xff]   ;;  %v10768_v17 = vsub.s32 1, %v10696_v42 }
 0x151   :  { %4871 = vmatpush1.bf16.msra.mxu0 %v9151_v26  ;;  %v10771_v26 = vrot.slane %v2206_v18, %v10699_v49  ;;  %v9280_v18 = vld [vmem:[#allocation10 + $0x7e0] ss:$16 sps:$4 sm:$0xff]  }
 0x152   :  { %4912 = vmatpush1.bf16.msra.mxu1 %v9154_v44  ;;  %4872 = vmatprep.subr.bf16.mxu0 %v9159_v45  ;;  %v9229_v44 = vld [vmem:[#allocation10 + $0x4e0] ss:$16 sps:$4 sm:$0xff]   ;;  %v375_v45 = vrot.slane %v10762_v41, %v10765_v0 }
 0x153   :  { %4913 = vmatprep.subr.bf16.mxu1 %v9162_v46  ;;  %v9232_v46 = vld [vmem:[#allocation10 + $0x6e0] ss:$16 sps:$4 sm:$0xff]  }
 0x155   :  { %4873 = vmatpush1.bf16.msra.mxu0 %v9157_v47  ;;  %v9237_v47 = vld [vmem:[#allocation10 + $0x4c4] ss:$16 sps:$4 sm:$0xff]  }
 0x156   :  { %4914 = vmatpush1.bf16.msra.mxu1 %v9160_v48  ;;  %4874 = vmatprep.subr.bf16.mxu0 %v9165_v50  ;;  %v9240_v48 = vld [vmem:[#allocation10 + $0x6c4] ss:$16 sps:$4 sm:$0xff]   ;;  %v379_v50 = vrot.slane %v10762_v41, %v10768_v17 }
 0x157   :  { %4915 = vmatprep.subr.bf16.mxu1 %v9168_v51  ;;  %v10783_v51 = vcombine.high %v10771_v26, %v10771_v26 }
 0x159   :  { %4875 = vmatpush1.bf16.msra.mxu0 %v9163_v52 }
 0x15a   :  { %4916 = vmatpush1.bf16.msra.mxu1 %v9166_v53  ;;  %4876 = vmatprep.subr.bf16.mxu0 %v9171_v54  ;;  %v9235_v54 = vld [vmem:[#allocation10 + $0x4c0] ss:$16 sps:$4 sm:$0xff]  }
 0x15b   :  { %4917 = vmatprep.subr.bf16.mxu1 %v9174_v55  ;;  %v9238_v55 = vld [vmem:[#allocation10 + $0x6c0] ss:$16 sps:$4 sm:$0xff]  }
 0x15d   :  { %4877 = vmatpush1.bf16.msra.mxu0 %v9169_v56 }
 0x15e   :  { %4918 = vmatpush1.bf16.msra.mxu1 %v9172_v57  ;;  %4878 = vmatprep.subr.bf16.mxu0 %v9177_v58 }
 0x15f   :  { %4919 = vmatprep.subr.bf16.mxu1 %v9180_v59  ;;  %v9243_v59 = vld [vmem:[#allocation10 + $0x4a4] ss:$16 sps:$4 sm:$0xff]  }
 0x161   :  { %4879 = vmatpush1.bf16.msra.mxu0 %v9175_v60  ;;  %v9246_v60 = vld [vmem:[#allocation10 + $0x6a4] ss:$16 sps:$4 sm:$0xff]  }
 0x162   :  { %4920 = vmatpush1.bf16.msra.mxu1 %v9178_v61  ;;  %4880 = vmatprep.subr.bf16.mxu0 %v9183_v62 }
 0x163   :  { %4921 = vmatprep.subr.bf16.mxu1 %v9186_v63  ;;  %v9241_v63 = vld [vmem:[#allocation10 + $0x4a0] ss:$16 sps:$4 sm:$0xff]  }
 0x165   :  { %4881 = vmatpush2.bf16.msra.mxu0 %v9181_v1  ;;  %v9244_v1 = vld [vmem:[#allocation10 + $0x6a0] ss:$16 sps:$4 sm:$0xff]  }
 0x166   :  { %4922 = vmatpush2.bf16.msra.mxu1 %v9184_v2  ;;  %4882 = vmatprep.subr.bf16.mxu0 %v9189_v3 }
 0x167   :  { %4923 = vmatprep.subr.bf16.mxu1 %v9192_v4 }
 0x169   :  { %4883 = vmatpush2.bf16.msra.mxu0 %v9187_v5 }
 0x16a   :  { %4924 = vmatpush2.bf16.msra.mxu1 %v9190_v6  ;;  %4884 = vmatprep.subr.bf16.mxu0 %v9195_v7  ;;  %v9249_v7 = vld [vmem:[#allocation10 + $0x484] ss:$16 sps:$4 sm:$0xff]  }
 0x16b   :  { %4925 = vmatprep.subr.bf16.mxu1 %v9198_v8  ;;  %v9252_v8 = vld [vmem:[#allocation10 + $0x684] ss:$16 sps:$4 sm:$0xff]  }
 0x16d   :  { %4885 = vmatpush2.bf16.msra.mxu0 %v9193_v9  ;;  %v9247_v9 = vld [vmem:[#allocation10 + $0x480] ss:$16 sps:$4 sm:$0xff]  }
 0x16e   :  { %4926 = vmatpush2.bf16.msra.mxu1 %v9196_v11  ;;  %4886 = vmatprep.subr.bf16.mxu0 %v9201_v13  ;;  %v9250_v11 = vld [vmem:[#allocation10 + $0x680] ss:$16 sps:$4 sm:$0xff]   ;;  %v9255_v13 = vld [vmem:[#allocation10 + $0x464] ss:$16 sps:$4 sm:$0xff]  }
 0x16f   :  { %4927 = vmatprep.subr.bf16.mxu1 %v9204_v14  ;;  %v9258_v14 = vld [vmem:[#allocation10 + $0x664] ss:$16 sps:$4 sm:$0xff]  }
 0x171   :  { %4887 = vmatpush2.bf16.msra.mxu0 %v9199_v15  ;;  %v9253_v15 = vld [vmem:[#allocation10 + $0x460] ss:$16 sps:$4 sm:$0xff]  }
 0x172   :  { %4928 = vmatpush2.bf16.msra.mxu1 %v9202_v16  ;;  %4888 = vmatprep.subr.bf16.mxu0 %v9207_v19  ;;  %v9256_v16 = vld [vmem:[#allocation10 + $0x660] ss:$16 sps:$4 sm:$0xff]   ;;  %v9261_v19 = vld [vmem:[#allocation10 + $0x444] ss:$16 sps:$4 sm:$0xff]  }
 0x173   :  { %4929 = vmatprep.subr.bf16.mxu1 %v9210_v20  ;;  %v9264_v20 = vld [vmem:[#allocation10 + $0x644] ss:$16 sps:$4 sm:$0xff]  }
 0x175   :  { %4889 = vmatpush2.bf16.msra.mxu0 %v9205_v21  ;;  %v9259_v21 = vld [vmem:[#allocation10 + $0x440] ss:$16 sps:$4 sm:$0xff]  }
 0x176   :  { %4930 = vmatpush2.bf16.msra.mxu1 %v9208_v24  ;;  %4890 = vmatprep.subr.bf16.mxu0 %v9213_v25  ;;  %v9262_v24 = vld [vmem:[#allocation10 + $0x640] ss:$16 sps:$4 sm:$0xff]   ;;  %v9267_v25 = vld [vmem:[#allocation10 + $0x424] ss:$16 sps:$4 sm:$0xff]  }
 0x177   :  { %4931 = vmatprep.subr.bf16.mxu1 %v9216_v27  ;;  %v9270_v27 = vld [vmem:[#allocation10 + $0x624] ss:$16 sps:$4 sm:$0xff]  }
 0x179   :  { %4891 = vmatpush2.bf16.msra.mxu0 %v9211_v29  ;;  %v9268_v29 = vld [vmem:[#allocation10 + $0x620] ss:$16 sps:$4 sm:$0xff]  }
 0x17a   :  { %4932 = vmatpush2.bf16.msra.mxu1 %v9214_v30  ;;  %4892 = vmatprep.subr.bf16.mxu0 %v9219_v31  ;;  %v9273_v30 = vld [vmem:[#allocation10 + $0x404] ss:$16 sps:$4 sm:$0xff]  }
 0x17b   :  { %4933 = vmatprep.subr.bf16.mxu1 %v9222_v32  ;;  %v9276_v31 = vld [vmem:[#allocation10 + $0x604] ss:$16 sps:$4 sm:$0xff]   ;;  %v9271_v32 = vld [vmem:[#allocation10 + $0x400] ss:$16 sps:$4 sm:$0xff]  }
 0x17d   :  { %4893 = vmatpush2.bf16.msra.mxu0 %v9217_v34  ;;  %v9274_v34 = vld [vmem:[#allocation10 + $0x600] ss:$16 sps:$4 sm:$0xff]  }
 0x17e   :  { %4934 = vmatpush2.bf16.msra.mxu1 %v9220_v35  ;;  %4894 = vmatprep.subr.bf16.mxu0 %v9225_v36  ;;  %v9279_v35 = vld [vmem:[#allocation10 + $0x5e4] ss:$16 sps:$4 sm:$0xff]  }
 0x17f   :  { %4935 = vmatprep.subr.bf16.mxu1 %v9228_v12  ;;  %v9282_v36 = vld [vmem:[#allocation10 + $0x7e4] ss:$16 sps:$4 sm:$0xff]   ;;  %v9277_v12 = vld [vmem:[#allocation10 + $0x5e0] ss:$16 sps:$4 sm:$0xff]  }
 0x181   :  { %4895 = vmatpush2.bf16.msra.mxu0 %v9223_v38  ;;  %v9285_v38 = vld [vmem:[#allocation10 + $0x5c4] ss:$16 sps:$4 sm:$0xff]  }
 0x182   :  { %4936 = vmatpush2.bf16.msra.mxu1 %v9226_v39  ;;  %4946 = vmatprep.subr.bf16.mxu0 %v9231_v22  ;;  %v9288_v39 = vld [vmem:[#allocation10 + $0x7c4] ss:$16 sps:$4 sm:$0xff]   ;;  %v9283_v22 = vld [vmem:[#allocation10 + $0x5c0] ss:$16 sps:$4 sm:$0xff]  }
 0x183   :  { %4987 = vmatprep.subr.bf16.mxu1 %v9234_v43  ;;  %v9286_v43 = vld [vmem:[#allocation10 + $0x7c0] ss:$16 sps:$4 sm:$0xff]  }
 0x184   :  { %v1440_v52 = vpop.f32.mrf.mxu0  ;;  %4897 = vmatmul.mubr.bf16.vlgmr.msra.gmra.mxu0 %v10760_v40 }
 0x185   :  { %v1481_v53 = vpop.f32.mrf.mxu1  ;;  %4938 = vmatmul.mubr.bf16.vlgmr.msra.gmra.mxu1 %v10775_v23  ;;  %v1441_v56 = vadd.f32 %v1440_v52, %v375_v45  ;;  %4947 = vmatpush1.bf16.msra.mxu0 %v9229_v44  ;;  %v9291_v44 = vld [vmem:[#allocation10 + $0x5a4] ss:$16 sps:$4 sm:$0xff]   ;;  %v9295_v52 = vld [vmem:[#allocation10 + $0x580] ss:$16 sps:$4 sm:$0xff]  }
 0x186   :  { %4988 = vmatpush1.bf16.msra.mxu1 %v9232_v46  ;;  %v1442_v57 = vpop.f32.mrf.mxu0  ;;  %4948 = vmatprep.subr.bf16.mxu0 %v9237_v47  ;;  %v9294_v45 = vld [vmem:[#allocation10 + $0x7a4] ss:$16 sps:$4 sm:$0xff]   ;;  %v9289_v46 = vld [vmem:[#allocation10 + $0x5a0] ss:$16 sps:$4 sm:$0xff]  }
 0x187   :  { %v1483_v58 = vpop.f32.mrf.mxu1  ;;  %4989 = vmatprep.subr.bf16.mxu1 %v9240_v48  ;;  %v10787_v61 = vadd.f32 %v1481_v53, %v1441_v56  ;;  %v1443_v62 = vadd.f32 %v1442_v57, %v379_v50  ;;  %4978 = vmatprep.mubr.bf16.mxu0 %v10771_v26  ;;  %v9292_v47 = vld [vmem:[#allocation10 + $0x7a0] ss:$16 sps:$4 sm:$0xff]   ;;  %v9297_v48 = vld [vmem:[#allocation10 + $0x584] ss:$16 sps:$4 sm:$0xff]  }
 0x188   :  { %5019 = vmatprep.mubr.bf16.mxu1 %v10783_v51  ;;  %v1444_v2 = vpop.f32.mrf.mxu0  ;;  %v9300_v50 = vld [vmem:[#allocation10 + $0x784] ss:$16 sps:$4 sm:$0xff]   ;;  %v9298_v53 = vld [vmem:[#allocation10 + $0x780] ss:$16 sps:$4 sm:$0xff]  }
 0x189   :  { %v1485_v3 = vpop.f32.mrf.mxu1  ;;  %v10791_v4 = vadd.f32 %v1483_v58, %v1443_v62  ;;  %4949 = vmatpush1.bf16.msra.mxu0 %v9235_v54  ;;  %v9303_v54 = vld [vmem:[#allocation10 + $0x564] ss:$16 sps:$4 sm:$0xff]   ;;  %v9301_v56 = vld [vmem:[#allocation10 + $0x560] ss:$16 sps:$4 sm:$0xff]  }
 0x18a   :  { %4990 = vmatpush1.bf16.msra.mxu1 %v9238_v55  ;;  %v1445_v5 = vpop.f32.mrf.mxu0  ;;  %4950 = vmatprep.subr.bf16.mxu0 %v9243_v59  ;;  %v9306_v55 = vld [vmem:[#allocation10 + $0x764] ss:$16 sps:$4 sm:$0xff]   ;;  %v9304_v57 = vld [vmem:[#allocation10 + $0x760] ss:$16 sps:$4 sm:$0xff]  }
 0x18b   :  { %v1486_v6 = vpop.f32.mrf.mxu1  ;;  %4991 = vmatprep.subr.bf16.mxu1 %v9246_v60  ;;  %v9309_v58 = vld [vmem:[#allocation10 + $0x544] ss:$16 sps:$4 sm:$0xff]   ;;  %v9307_v62 = vld [vmem:[#allocation10 + $0x540] ss:$16 sps:$4 sm:$0xff]  }
 0x18c   :  { %v9312_v59 = vld [vmem:[#allocation10 + $0x744] ss:$16 sps:$4 sm:$0xff]   ;;  %v9313_v5 = vld [vmem:[#allocation10 + $0x520] ss:$16 sps:$4 sm:$0xff]  }
 0x18d   :  { %4951 = vmatpush1.bf16.msra.mxu0 %v9241_v63  ;;  %v10793_v60 = vld [vmem:[#allocation5 + $0x8] sm:$0xff]  ;;  %v9310_v63 = vld [vmem:[#allocation10 + $0x740] ss:$16 sps:$4 sm:$0xff]  }
 0x18e   :  { %4992 = vmatpush1.bf16.msra.mxu1 %v9244_v1  ;;  %4952 = vmatprep.subr.bf16.mxu0 %v9249_v7  ;;  %v9315_v1 = vld [vmem:[#allocation10 + $0x524] ss:$16 sps:$4 sm:$0xff]   ;;  %v10797_v3 = vrot.slane %v10793_v60, %v10699_v49  ;;  %v9316_v6 = vld [vmem:[#allocation10 + $0x720] ss:$16 sps:$4 sm:$0xff]  }
 0x18f   :  { %4993 = vmatprep.subr.bf16.mxu1 %v9252_v8  ;;  %v9318_v2 = vld [vmem:[#allocation10 + $0x724] ss:$16 sps:$4 sm:$0xff]  }
 0x190   :  { %v9321_v7 = vld [vmem:[#allocation10 + $0x504] ss:$16 sps:$4 sm:$0xff]  }
 0x191   :  { %4953 = vmatpush1.bf16.msra.mxu0 %v9247_v9  ;;  %v9324_v8 = vld [vmem:[#allocation10 + $0x704] ss:$16 sps:$4 sm:$0xff]   ;;  %v2254_v9 = vcombine.high %v10797_v3, %v10797_v3 }
 0x192   :  { %4994 = vmatpush1.bf16.msra.mxu1 %v9250_v11  ;;  %4954 = vmatprep.subr.bf16.mxu0 %v9255_v13  ;;  %v10803_v11 = vrot.slane %v10754_v10, %v10699_v49  ;;  %v9319_v13 = vld [vmem:[#allocation10 + $0x500] ss:$16 sps:$4 sm:$0xff]  }
 0x193   :  { %4995 = vmatprep.subr.bf16.mxu1 %v9258_v14  ;;  %v9322_v14 = vld [vmem:[#allocation10 + $0x700] ss:$16 sps:$4 sm:$0xff]  }
 0x194   :  { %v10816_v10 = vcombine.high %v10803_v11, %v10803_v11 }
 0x195   :  { %4955 = vmatpush1.bf16.msra.mxu0 %v9253_v15  ;;  %v10806_v15 = vsub.s32 2, %v10696_v42 }
 0x196   :  { %4996 = vmatpush1.bf16.msra.mxu1 %v9256_v16  ;;  %4956 = vmatprep.subr.bf16.mxu0 %v9261_v19  ;;  %v9328_v16 = vld [vmem:[#allocation10 + $0x8e4] ss:$16 sps:$4 sm:$0xff]  }
 0x197   :  { %4997 = vmatprep.subr.bf16.mxu1 %v9264_v20  ;;  %v9331_v19 = vld [vmem:[#allocation10 + $0xae4] ss:$16 sps:$4 sm:$0xff]   ;;  %v9326_v20 = vld [vmem:[#allocation10 + $0x8e0] ss:$16 sps:$4 sm:$0xff]  }
 0x199   :  { %4957 = vmatpush1.bf16.msra.mxu0 %v9259_v21  ;;  %v10809_v21 = vsub.s32 3, %v10696_v42 }
 0x19a   :  { %4998 = vmatpush1.bf16.msra.mxu1 %v9262_v24  ;;  %4958 = vmatprep.subr.bf16.mxu0 %v9267_v25  ;;  %v10812_v24 = vrot.slane %v2254_v9, %v10699_v49  ;;  %v383_v25 = vrot.slane %v10762_v41, %v10806_v15  ;;  %v9368_v9 = vld [vmem:[#allocation10 + $0x800] ss:$16 sps:$4 sm:$0xff]  }
 0x19b   :  { %4999 = vmatprep.subr.bf16.mxu1 %v9270_v27  ;;  %v9329_v27 = vld [vmem:[#allocation10 + $0xae0] ss:$16 sps:$4 sm:$0xff]   ;;  %v387_v42 = vrot.slane %v10762_v41, %v10809_v21 }
 0x19d   :  { %4959 = vmatpush1.bf16.msra.mxu0 %v9265_v28  ;;  %v9334_v28 = vld [vmem:[#allocation10 + $0x8c4] ss:$16 sps:$4 sm:$0xff]  }
 0x19e   :  { %5000 = vmatpush1.bf16.msra.mxu1 %v9268_v29  ;;  %4960 = vmatprep.subr.bf16.mxu0 %v9273_v30  ;;  %v9337_v29 = vld [vmem:[#allocation10 + $0xac4] ss:$16 sps:$4 sm:$0xff]   ;;  %v9332_v30 = vld [vmem:[#allocation10 + $0x8c0] ss:$16 sps:$4 sm:$0xff]  }
 0x19f   :  { %5001 = vmatprep.subr.bf16.mxu1 %v9276_v31  ;;  %v9335_v31 = vld [vmem:[#allocation10 + $0xac0] ss:$16 sps:$4 sm:$0xff]  }
 0x1a1   :  { %4961 = vmatpush1.bf16.msra.mxu0 %v9271_v32  ;;  %v10824_v32 = vcombine.high %v10812_v24, %v10812_v24 }
 0x1a2   :  { %5002 = vmatpush1.bf16.msra.mxu1 %v9274_v34  ;;  %4962 = vmatprep.subr.bf16.mxu0 %v9279_v35 }
 0x1a3   :  { %5003 = vmatprep.subr.bf16.mxu1 %v9282_v36 }
 0x1a5   :  { %4963 = vmatpush2.bf16.msra.mxu0 %v9277_v12 }
 0x1a6   :  { %5004 = vmatpush2.bf16.msra.mxu1 %v9280_v18  ;;  %4964 = vmatprep.subr.bf16.mxu0 %v9285_v38  ;;  %v9340_v38 = vld [vmem:[#allocation10 + $0x8a4] ss:$16 sps:$4 sm:$0xff]  }
 0x1a7   :  { %5005 = vmatprep.subr.bf16.mxu1 %v9288_v39  ;;  %v9343_v39 = vld [vmem:[#allocation10 + $0xaa4] ss:$16 sps:$4 sm:$0xff]  }
 0x1a9   :  { %4965 = vmatpush2.bf16.msra.mxu0 %v9283_v22 }
 0x1aa   :  { %5006 = vmatpush2.bf16.msra.mxu1 %v9286_v43  ;;  %4966 = vmatprep.subr.bf16.mxu0 %v9291_v44  ;;  %v9338_v44 = vld [vmem:[#allocation10 + $0x8a0] ss:$16 sps:$4 sm:$0xff]  }
 0x1ab   :  { %5007 = vmatprep.subr.bf16.mxu1 %v9294_v45  ;;  %v9341_v45 = vld [vmem:[#allocation10 + $0xaa0] ss:$16 sps:$4 sm:$0xff]  }
 0x1ad   :  { %4967 = vmatpush2.bf16.msra.mxu0 %v9289_v46 }
 0x1ae   :  { %5008 = vmatpush2.bf16.msra.mxu1 %v9292_v47  ;;  %4968 = vmatprep.subr.bf16.mxu0 %v9297_v48 }
 0x1af   :  { %5009 = vmatprep.subr.bf16.mxu1 %v9300_v50  ;;  %v9346_v50 = vld [vmem:[#allocation10 + $0x884] ss:$16 sps:$4 sm:$0xff]  }
 0x1b1   :  { %4969 = vmatpush2.bf16.msra.mxu0 %v9295_v52  ;;  %v9349_v52 = vld [vmem:[#allocation10 + $0xa84] ss:$16 sps:$4 sm:$0xff]  }
 0x1b2   :  { %5010 = vmatpush2.bf16.msra.mxu1 %v9298_v53  ;;  %4970 = vmatprep.subr.bf16.mxu0 %v9303_v54  ;;  %v9347_v53 = vld [vmem:[#allocation10 + $0xa80] ss:$16 sps:$4 sm:$0xff]   ;;  %v9352_v54 = vld [vmem:[#allocation10 + $0x864] ss:$16 sps:$4 sm:$0xff]  }
 0x1b3   :  { %5011 = vmatprep.subr.bf16.mxu1 %v9306_v55  ;;  %v9355_v55 = vld [vmem:[#allocation10 + $0xa64] ss:$16 sps:$4 sm:$0xff]  }
 0x1b5   :  { %4971 = vmatpush2.bf16.msra.mxu0 %v9301_v56  ;;  %v9350_v56 = vld [vmem:[#allocation10 + $0x860] ss:$16 sps:$4 sm:$0xff]  }
 0x1b6   :  { %5012 = vmatpush2.bf16.msra.mxu1 %v9304_v57  ;;  %4972 = vmatprep.subr.bf16.mxu0 %v9309_v58  ;;  %v9353_v57 = vld [vmem:[#allocation10 + $0xa60] ss:$16 sps:$4 sm:$0xff]   ;;  %v9358_v58 = vld [vmem:[#allocation10 + $0x844] ss:$16 sps:$4 sm:$0xff]  }
 0x1b7   :  { %5013 = vmatprep.subr.bf16.mxu1 %v9312_v59  ;;  %v9361_v59 = vld [vmem:[#allocation10 + $0xa44] ss:$16 sps:$4 sm:$0xff]  }
 0x1b9   :  { %4973 = vmatpush2.bf16.msra.mxu0 %v9307_v62  ;;  %v9356_v62 = vld [vmem:[#allocation10 + $0x840] ss:$16 sps:$4 sm:$0xff]  }
 0x1ba   :  { %5014 = vmatpush2.bf16.msra.mxu1 %v9310_v63  ;;  %4974 = vmatprep.subr.bf16.mxu0 %v9315_v1  ;;  %v9359_v63 = vld [vmem:[#allocation10 + $0xa40] ss:$16 sps:$4 sm:$0xff]   ;;  %v9364_v1 = vld [vmem:[#allocation10 + $0x824] ss:$16 sps:$4 sm:$0xff]  }
 0x1bb   :  { %5015 = vmatprep.subr.bf16.mxu1 %v9318_v2  ;;  %v9367_v2 = vld [vmem:[#allocation10 + $0xa24] ss:$16 sps:$4 sm:$0xff]  }
 0x1bd   :  { %4975 = vmatpush2.bf16.msra.mxu0 %v9313_v5  ;;  %v9362_v5 = vld [vmem:[#allocation10 + $0x820] ss:$16 sps:$4 sm:$0xff]  }
 0x1be   :  { %5016 = vmatpush2.bf16.msra.mxu1 %v9316_v6  ;;  %4976 = vmatprep.subr.bf16.mxu0 %v9321_v7  ;;  %v9365_v6 = vld [vmem:[#allocation10 + $0xa20] ss:$16 sps:$4 sm:$0xff]   ;;  %v9370_v7 = vld [vmem:[#allocation10 + $0x804] ss:$16 sps:$4 sm:$0xff]  }
 0x1bf   :  { %5017 = vmatprep.subr.bf16.mxu1 %v9324_v8  ;;  %v9373_v8 = vld [vmem:[#allocation10 + $0xa04] ss:$16 sps:$4 sm:$0xff]  }
 0x1c1   :  { %4977 = vmatpush2.bf16.msra.mxu0 %v9319_v13  ;;  %v9371_v13 = vld [vmem:[#allocation10 + $0xa00] ss:$16 sps:$4 sm:$0xff]  }
 0x1c2   :  { %5018 = vmatpush2.bf16.msra.mxu1 %v9322_v14  ;;  %5028 = vmatprep.subr.bf16.mxu0 %v9328_v16  ;;  %v9376_v14 = vld [vmem:[#allocation10 + $0x9e4] ss:$16 sps:$4 sm:$0xff]  }
 0x1c3   :  { %5069 = vmatprep.subr.bf16.mxu1 %v9331_v19  ;;  %v9379_v16 = vld [vmem:[#allocation10 + $0xbe4] ss:$16 sps:$4 sm:$0xff]   ;;  %v9374_v19 = vld [vmem:[#allocation10 + $0x9e0] ss:$16 sps:$4 sm:$0xff]  }
 0x1c4   :  { %v1522_v34 = vpop.f32.mrf.mxu0  ;;  %4979 = vmatmul.mubr.bf16.vlgmr.msra.gmra.mxu0 %v10803_v11 }
 0x1c5   :  { %v1563_v35 = vpop.f32.mrf.mxu1  ;;  %5020 = vmatmul.mubr.bf16.vlgmr.msra.gmra.mxu1 %v10816_v10  ;;  %v10829_v36 = vadd.f32 %v1522_v34, %v10787_v61  ;;  %5029 = vmatpush1.bf16.msra.mxu0 %v9326_v20  ;;  %v9377_v20 = vld [vmem:[#allocation10 + $0xbe0] ss:$16 sps:$4 sm:$0xff]  }
 0x1c6   :  { %v10831_v12 = vadd.f32 %v1563_v35, %v383_v25  ;;  %5070 = vmatpush1.bf16.msra.mxu1 %v9329_v27  ;;  %v1524_v41 = vpop.f32.mrf.mxu0  ;;  %5030 = vmatprep.subr.bf16.mxu0 %v9334_v28  ;;  %v9382_v25 = vld [vmem:[#allocation10 + $0x9c4] ss:$16 sps:$4 sm:$0xff]   ;;  %v9380_v28 = vld [vmem:[#allocation10 + $0x9c0] ss:$16 sps:$4 sm:$0xff]  }
 0x1c7   :  { %v1565_v18 = vpop.f32.mrf.mxu1  ;;  %5071 = vmatprep.subr.bf16.mxu1 %v9337_v29  ;;  %v10834_v22 = vadd.f32 %v1524_v41, %v10791_v4  ;;  %5060 = vmatprep.mubr.bf16.mxu0 %v10812_v24  ;;  %v9344_v4 = vld [vmem:[#allocation10 + $0x880] ss:$16 sps:$4 sm:$0xff]   ;;  %v9385_v27 = vld [vmem:[#allocation10 + $0xbc4] ss:$16 sps:$4 sm:$0xff]  }
 0x1c8   :  { %v10836_v43 = vadd.f32 %v1565_v18, %v387_v42  ;;  %5101 = vmatprep.mubr.bf16.mxu1 %v10824_v32  ;;  %v1526_v61 = vpop.f32.mrf.mxu0  ;;  %v9383_v29 = vld [vmem:[#allocation10 + $0xbc0] ss:$16 sps:$4 sm:$0xff]   ;;  %v9388_v42 = vld [vmem:[#allocation10 + $0x9a4] ss:$16 sps:$4 sm:$0xff]  }
 0x1c9   :  { %v1567_v46 = vpop.f32.mrf.mxu1  ;;  %5031 = vmatpush1.bf16.msra.mxu0 %v9332_v30  ;;  %v9391_v30 = vld [vmem:[#allocation10 + $0xba4] ss:$16 sps:$4 sm:$0xff]   ;;  %v9389_v34 = vld [vmem:[#allocation10 + $0xba0] ss:$16 sps:$4 sm:$0xff]  }
 0x1ca   :  { %5072 = vmatpush1.bf16.msra.mxu1 %v9335_v31  ;;  %v1527_v47 = vpop.f32.mrf.mxu0  ;;  %5032 = vmatprep.subr.bf16.mxu0 %v9340_v38  ;;  %v9386_v31 = vld [vmem:[#allocation10 + $0x9a0] ss:$16 sps:$4 sm:$0xff]   ;;  %v9394_v35 = vld [vmem:[#allocation10 + $0x984] ss:$16 sps:$4 sm:$0xff]  }
 0x1cb   :  { %v1568_v48 = vpop.f32.mrf.mxu1  ;;  %5073 = vmatprep.subr.bf16.mxu1 %v9343_v39  ;;  %v9397_v41 = vld [vmem:[#allocation10 + $0xb84] ss:$16 sps:$4 sm:$0xff]   ;;  %v9392_v18 = vld [vmem:[#allocation10 + $0x980] ss:$16 sps:$4 sm:$0xff]  }
 0x1cc   :  { %v9395_v38 = vld [vmem:[#allocation10 + $0xb80] ss:$16 sps:$4 sm:$0xff]   ;;  %v9400_v39 = vld [vmem:[#allocation10 + $0x964] ss:$16 sps:$4 sm:$0xff]   ;;  %v2239_v48 = vcombine.high %v10793_v60, %v10793_v60 }
 0x1cd   :  { %5033 = vmatpush1.bf16.msra.mxu0 %v9338_v44  ;;  %v9403_v44 = vld [vmem:[#allocation10 + $0xb64] ss:$16 sps:$4 sm:$0xff]   ;;  %v9401_v61 = vld [vmem:[#allocation10 + $0xb60] ss:$16 sps:$4 sm:$0xff]  }
 0x1ce   :  { %5074 = vmatpush1.bf16.msra.mxu1 %v9341_v45  ;;  %5034 = vmatprep.subr.bf16.mxu0 %v9346_v50  ;;  %v9398_v45 = vld [vmem:[#allocation10 + $0x960] ss:$16 sps:$4 sm:$0xff]   ;;  %v9406_v46 = vld [vmem:[#allocation10 + $0x944] ss:$16 sps:$4 sm:$0xff]  }
 0x1cf   :  { %5075 = vmatprep.subr.bf16.mxu1 %v9349_v52  ;;  %v9409_v47 = vld [vmem:[#allocation10 + $0xb44] ss:$16 sps:$4 sm:$0xff]   ;;  %v9404_v50 = vld [vmem:[#allocation10 + $0x940] ss:$16 sps:$4 sm:$0xff]  }
 0x1d0   :  { %v9407_v52 = vld [vmem:[#allocation10 + $0xb40] ss:$16 sps:$4 sm:$0xff]  }
 0x1d1   :  { %5035 = vmatpush1.bf16.msra.mxu0 %v9344_v4  ;;  %v9412_v4 = vld [vmem:[#allocation10 + $0x924] ss:$16 sps:$4 sm:$0xff]  }
 0x1d2   :  { %5076 = vmatpush1.bf16.msra.mxu1 %v9347_v53  ;;  %5036 = vmatprep.subr.bf16.mxu0 %v9352_v54  ;;  %v9415_v53 = vld [vmem:[#allocation10 + $0xb24] ss:$16 sps:$4 sm:$0xff]   ;;  %v10843_v54 = vrot.slane %v2239_v48, %v10699_v49  ;;  %v9446_v48 = vld [vmem:[#allocation10 + $0xc60] ss:$16 sps:$4 sm:$0xff]  }
 0x1d3   :  { %5077 = vmatprep.subr.bf16.mxu1 %v9355_v55  ;;  %v9410_v55 = vld [vmem:[#allocation10 + $0x920] ss:$16 sps:$4 sm:$0xff]  }
 0x1d4   :  { %v2255_v60 = vcombine.high %v10843_v54, %v10843_v54 }
 0x1d5   :  { %5037 = vmatpush1.bf16.msra.mxu0 %v9350_v56  ;;  %v9413_v56 = vld [vmem:[#allocation10 + $0xb20] ss:$16 sps:$4 sm:$0xff]  }
 0x1d6   :  { %5078 = vmatpush1.bf16.msra.mxu1 %v9353_v57  ;;  %5038 = vmatprep.subr.bf16.mxu0 %v9358_v58  ;;  %v9418_v57 = vld [vmem:[#allocation10 + $0x904] ss:$16 sps:$4 sm:$0xff]  }
 0x1d7   :  { %5079 = vmatprep.subr.bf16.mxu1 %v9361_v59  ;;  %v9421_v58 = vld [vmem:[#allocation10 + $0xb04] ss:$16 sps:$4 sm:$0xff]   ;;  %v10849_v59 = vrot.slane %v10797_v3, %v10699_v49 }
 0x1d8   :  { %v9430_v3 = vld [vmem:[#allocation10 + $0xcc4] ss:$16 sps:$4 sm:$0xff]  }
 0x1d9   :  { %5039 = vmatpush1.bf16.msra.mxu0 %v9356_v62  ;;  %v9416_v62 = vld [vmem:[#allocation10 + $0x900] ss:$16 sps:$4 sm:$0xff]  }
 0x1da   :  { %5080 = vmatpush1.bf16.msra.mxu1 %v9359_v63  ;;  %5040 = vmatprep.subr.bf16.mxu0 %v9364_v1  ;;  %v9419_v63 = vld [vmem:[#allocation10 + $0xb00] ss:$16 sps:$4 sm:$0xff]   ;;  %v9424_v1 = vld [vmem:[#allocation10 + $0xce4] ss:$16 sps:$4 sm:$0xff]  }
 0x1db   :  { %5081 = vmatprep.subr.bf16.mxu1 %v9367_v2  ;;  %v9427_v2 = vld [vmem:[#allocation10 + $0xee4] ss:$16 sps:$4 sm:$0xff]  }
 0x1dd   :  { %5041 = vmatpush1.bf16.msra.mxu0 %v9362_v5  ;;  %v9422_v5 = vld [vmem:[#allocation10 + $0xce0] ss:$16 sps:$4 sm:$0xff]  }
 0x1de   :  { %5082 = vmatpush1.bf16.msra.mxu1 %v9365_v6  ;;  %5042 = vmatprep.subr.bf16.mxu0 %v9370_v7  ;;  %v9425_v6 = vld [vmem:[#allocation10 + $0xee0] ss:$16 sps:$4 sm:$0xff]   ;;  %v10852_v7 = vrot.slane %v2255_v60, %v10699_v49 }
 0x1df   :  { %5083 = vmatprep.subr.bf16.mxu1 %v9373_v8  ;;  %v10856_v8 = vcombine.high %v10849_v59, %v10849_v59  ;;  %v9461_v60 = vld [vmem:[#allocation10 + $0xe20] ss:$16 sps:$4 sm:$0xff]  }
 0x1e1   :  { %5043 = vmatpush1.bf16.msra.mxu0 %v9368_v9  ;;  %v9433_v9 = vld [vmem:[#allocation10 + $0xec4] ss:$16 sps:$4 sm:$0xff]  }
 0x1e2   :  { %5084 = vmatpush1.bf16.msra.mxu1 %v9371_v13  ;;  %5044 = vmatprep.subr.bf16.mxu0 %v9376_v14  ;;  %v9428_v13 = vld [vmem:[#allocation10 + $0xcc0] ss:$16 sps:$4 sm:$0xff]  }
 0x1e3   :  { %5085 = vmatprep.subr.bf16.mxu1 %v9379_v16  ;;  %v9431_v14 = vld [vmem:[#allocation10 + $0xec0] ss:$16 sps:$4 sm:$0xff]   ;;  %v10860_v16 = vcombine.high %v10852_v7, %v10852_v7 }
 0x1e5   :  { %5045 = vmatpush2.bf16.msra.mxu0 %v9374_v19 }
 0x1e6   :  { %5086 = vmatpush2.bf16.msra.mxu1 %v9377_v20  ;;  %5046 = vmatprep.subr.bf16.mxu0 %v9382_v25 }
 0x1e7   :  { %5087 = vmatprep.subr.bf16.mxu1 %v9385_v27 }
 0x1e9   :  { %5047 = vmatpush2.bf16.msra.mxu0 %v9380_v28 }
 0x1ea   :  { %5088 = vmatpush2.bf16.msra.mxu1 %v9383_v29  ;;  %5048 = vmatprep.subr.bf16.mxu0 %v9388_v42  ;;  %v9436_v29 = vld [vmem:[#allocation10 + $0xca4] ss:$16 sps:$4 sm:$0xff]  }
 0x1eb   :  { %5089 = vmatprep.subr.bf16.mxu1 %v9391_v30  ;;  %v9439_v42 = vld [vmem:[#allocation10 + $0xea4] ss:$16 sps:$4 sm:$0xff]  }
 0x1ed   :  { %5049 = vmatpush2.bf16.msra.mxu0 %v9386_v31 }
 0x1ee   :  { %5090 = vmatpush2.bf16.msra.mxu1 %v9389_v34  ;;  %5050 = vmatprep.subr.bf16.mxu0 %v9394_v35  ;;  %v9434_v34 = vld [vmem:[#allocation10 + $0xca0] ss:$16 sps:$4 sm:$0xff]  }
 0x1ef   :  { %5091 = vmatprep.subr.bf16.mxu1 %v9397_v41  ;;  %v9437_v35 = vld [vmem:[#allocation10 + $0xea0] ss:$16 sps:$4 sm:$0xff]  }
 0x1f1   :  { %5051 = vmatpush2.bf16.msra.mxu0 %v9392_v18 }
 0x1f2   :  { %5092 = vmatpush2.bf16.msra.mxu1 %v9395_v38  ;;  %5052 = vmatprep.subr.bf16.mxu0 %v9400_v39 }
 0x1f3   :  { %5093 = vmatprep.subr.bf16.mxu1 %v9403_v44  ;;  %v9442_v44 = vld [vmem:[#allocation10 + $0xc84] ss:$16 sps:$4 sm:$0xff]  }
 0x1f5   :  { %5053 = vmatpush2.bf16.msra.mxu0 %v9398_v45  ;;  %v9445_v45 = vld [vmem:[#allocation10 + $0xe84] ss:$16 sps:$4 sm:$0xff]  }
 0x1f6   :  { %5094 = vmatpush2.bf16.msra.mxu1 %v9401_v61  ;;  %5054 = vmatprep.subr.bf16.mxu0 %v9406_v46  ;;  %v9443_v61 = vld [vmem:[#allocation10 + $0xe80] ss:$16 sps:$4 sm:$0xff]   ;;  %v9448_v46 = vld [vmem:[#allocation10 + $0xc64] ss:$16 sps:$4 sm:$0xff]  }
 0x1f7   :  { %5095 = vmatprep.subr.bf16.mxu1 %v9409_v47  ;;  %v9451_v47 = vld [vmem:[#allocation10 + $0xe64] ss:$16 sps:$4 sm:$0xff]  }
 0x1f9   :  { %5055 = vmatpush2.bf16.msra.mxu0 %v9404_v50  ;;  %v9449_v50 = vld [vmem:[#allocation10 + $0xe60] ss:$16 sps:$4 sm:$0xff]  }
 0x1fa   :  { %5096 = vmatpush2.bf16.msra.mxu1 %v9407_v52  ;;  %5056 = vmatprep.subr.bf16.mxu0 %v9412_v4  ;;  %v9454_v52 = vld [vmem:[#allocation10 + $0xc44] ss:$16 sps:$4 sm:$0xff]  }
 0x1fb   :  { %5097 = vmatprep.subr.bf16.mxu1 %v9415_v53  ;;  %v9457_v4 = vld [vmem:[#allocation10 + $0xe44] ss:$16 sps:$4 sm:$0xff]   ;;  %v9452_v53 = vld [vmem:[#allocation10 + $0xc40] ss:$16 sps:$4 sm:$0xff]  }
 0x1fd   :  { %5057 = vmatpush2.bf16.msra.mxu0 %v9410_v55  ;;  %v9455_v55 = vld [vmem:[#allocation10 + $0xe40] ss:$16 sps:$4 sm:$0xff]  }
 0x1fe   :  { %5098 = vmatpush2.bf16.msra.mxu1 %v9413_v56  ;;  %5058 = vmatprep.subr.bf16.mxu0 %v9418_v57  ;;  %v9460_v56 = vld [vmem:[#allocation10 + $0xc24] ss:$16 sps:$4 sm:$0xff]  }
 0x1ff   :  { %5099 = vmatprep.subr.bf16.mxu1 %v9421_v58  ;;  %v9463_v57 = vld [vmem:[#allocation10 + $0xe24] ss:$16 sps:$4 sm:$0xff]   ;;  %v9458_v58 = vld [vmem:[#allocation10 + $0xc20] ss:$16 sps:$4 sm:$0xff]  }
 0x201   :  { %5059 = vmatpush2.bf16.msra.mxu0 %v9416_v62  ;;  %v9466_v62 = vld [vmem:[#allocation10 + $0xc04] ss:$16 sps:$4 sm:$0xff]  }
 0x202   :  { %5100 = vmatpush2.bf16.msra.mxu1 %v9419_v63  ;;  %5110 = vmatprep.subr.bf16.mxu0 %v9424_v1  ;;  %v9469_v63 = vld [vmem:[#allocation10 + $0xe04] ss:$16 sps:$4 sm:$0xff]   ;;  %v9464_v1 = vld [vmem:[#allocation10 + $0xc00] ss:$16 sps:$4 sm:$0xff]  }
 0x203   :  { %5151 = vmatprep.subr.bf16.mxu1 %v9427_v2  ;;  %v9467_v2 = vld [vmem:[#allocation10 + $0xe00] ss:$16 sps:$4 sm:$0xff]  }
 0x204   :  { %v1604_v19 = vpop.f32.mrf.mxu0  ;;  %5061 = vmatmul.mubr.bf16.vlgmr.msra.gmra.mxu0 %v10849_v59 }
 0x205   :  { %v1645_v20 = vpop.f32.mrf.mxu1  ;;  %5102 = vmatmul.mubr.bf16.vlgmr.msra.gmra.mxu1 %v10856_v8  ;;  %v1605_v25 = vadd.f32 %v1604_v19, %v10831_v12  ;;  %5111 = vmatpush1.bf16.msra.mxu0 %v9422_v5  ;;  %v9472_v5 = vld [vmem:[#allocation10 + $0xde4] ss:$16 sps:$4 sm:$0xff]   ;;  %v9476_v19 = vld [vmem:[#allocation10 + $0xdc0] ss:$16 sps:$4 sm:$0xff]  }
 0x206   :  { %5152 = vmatpush1.bf16.msra.mxu1 %v9425_v6  ;;  %v1606_v27 = vpop.f32.mrf.mxu0  ;;  %5112 = vmatprep.subr.bf16.mxu0 %v9430_v3  ;;  %v9475_v6 = vld [vmem:[#allocation10 + $0xfe4] ss:$16 sps:$4 sm:$0xff]   ;;  %v9470_v3 = vld [vmem:[#allocation10 + $0xde0] ss:$16 sps:$4 sm:$0xff]  }
 0x207   :  { %v1647_v28 = vpop.f32.mrf.mxu1  ;;  %5153 = vmatprep.subr.bf16.mxu1 %v9433_v9  ;;  %v10865_v30 = vadd.f32 %v1645_v20, %v1605_v25  ;;  %v1607_v31 = vadd.f32 %v1606_v27, %v10836_v43  ;;  %5142 = vmatprep.mubr.bf16.mxu0 %v10852_v7  ;;  %v9440_v43 = vld [vmem:[#allocation10 + $0xc80] ss:$16 sps:$4 sm:$0xff]   ;;  %v9484_v25 = vld [vmem:[#allocation10 + $0xda4] ss:$16 sps:$4 sm:$0xff]  }
 0x208   :  { %5183 = vmatprep.mubr.bf16.mxu1 %v10860_v16  ;;  %v1608_v41 = vpop.f32.mrf.mxu0  ;;  %v9473_v9 = vld [vmem:[#allocation10 + $0xfe0] ss:$16 sps:$4 sm:$0xff]   ;;  %v9487_v27 = vld [vmem:[#allocation10 + $0xfa4] ss:$16 sps:$4 sm:$0xff]  }
 0x209   :  { %v1649_v12 = vpop.f32.mrf.mxu1  ;;  %v10870_v18 = vadd.f32 %v1647_v28, %v1607_v31  ;;  %5113 = vmatpush1.bf16.msra.mxu0 %v9428_v13  ;;  %v9478_v13 = vld [vmem:[#allocation10 + $0xdc4] ss:$16 sps:$4 sm:$0xff]   ;;  %v9479_v20 = vld [vmem:[#allocation10 + $0xfc0] ss:$16 sps:$4 sm:$0xff]  }
 0x20a   :  { %5154 = vmatpush1.bf16.msra.mxu1 %v9431_v14  ;;  %v1609_v38 = vpop.f32.mrf.mxu0  ;;  %5114 = vmatprep.subr.bf16.mxu0 %v9436_v29  ;;  %v9481_v14 = vld [vmem:[#allocation10 + $0xfc4] ss:$16 sps:$4 sm:$0xff]   ;;  %v9482_v28 = vld [vmem:[#allocation10 + $0xda0] ss:$16 sps:$4 sm:$0xff]  }
 0x20b   :  { %v1650_v39 = vpop.f32.mrf.mxu1  ;;  %5155 = vmatprep.subr.bf16.mxu1 %v9439_v42  ;;  %v9485_v29 = vld [vmem:[#allocation10 + $0xfa0] ss:$16 sps:$4 sm:$0xff]   ;;  %v9490_v42 = vld [vmem:[#allocation10 + $0xd84] ss:$16 sps:$4 sm:$0xff]  }
 0x20c   :  { %v9493_v31 = vld [vmem:[#allocation10 + $0xf84] ss:$16 sps:$4 sm:$0xff]   ;;  %v9494_v38 = vld [vmem:[#allocation10 + $0xd60] ss:$16 sps:$4 sm:$0xff]  }
 0x20d   :  { %5115 = vmatpush1.bf16.msra.mxu0 %v9434_v34  ;;  %v9488_v34 = vld [vmem:[#allocation10 + $0xd80] ss:$16 sps:$4 sm:$0xff]   ;;  %v9496_v41 = vld [vmem:[#allocation10 + $0xd64] ss:$16 sps:$4 sm:$0xff]  }
 0x20e   :  { %5156 = vmatpush1.bf16.msra.mxu1 %v9437_v35  ;;  %5116 = vmatprep.subr.bf16.mxu0 %v9442_v44  ;;  %v9491_v35 = vld [vmem:[#allocation10 + $0xf80] ss:$16 sps:$4 sm:$0xff]   ;;  %v9499_v12 = vld [vmem:[#allocation10 + $0xf64] ss:$16 sps:$4 sm:$0xff]  }
 0x20f   :  { %5157 = vmatprep.subr.bf16.mxu1 %v9445_v45  ;;  %v9497_v39 = vld [vmem:[#allocation10 + $0xf60] ss:$16 sps:$4 sm:$0xff]   ;;  %v9502_v44 = vld [vmem:[#allocation10 + $0xd44] ss:$16 sps:$4 sm:$0xff]  }
 0x210   :  { %v9505_v45 = vld [vmem:[#allocation10 + $0xf44] ss:$16 sps:$4 sm:$0xff]  }
 0x211   :  { %5117 = vmatpush1.bf16.msra.mxu0 %v9440_v43  ;;  %v9500_v43 = vld [vmem:[#allocation10 + $0xd40] ss:$16 sps:$4 sm:$0xff]  }
 0x212   :  { %5158 = vmatpush1.bf16.msra.mxu1 %v9443_v61  ;;  %5118 = vmatprep.subr.bf16.mxu0 %v9448_v46  ;;  %v9503_v61 = vld [vmem:[#allocation10 + $0xf40] ss:$16 sps:$4 sm:$0xff]   ;;  %v9508_v46 = vld [vmem:[#allocation10 + $0xd24] ss:$16 sps:$4 sm:$0xff]  }
 0x213   :  { %5159 = vmatprep.subr.bf16.mxu1 %v9451_v47  ;;  %v9511_v47 = vld [vmem:[#allocation10 + $0xf24] ss:$16 sps:$4 sm:$0xff]  }
 0x215   :  { %5119 = vmatpush1.bf16.msra.mxu0 %v9446_v48  ;;  %v9506_v48 = vld [vmem:[#allocation10 + $0xd20] ss:$16 sps:$4 sm:$0xff]  }
 0x216   :  { %5160 = vmatpush1.bf16.msra.mxu1 %v9449_v50  ;;  %5120 = vmatprep.subr.bf16.mxu0 %v9454_v52  ;;  %v9509_v50 = vld [vmem:[#allocation10 + $0xf20] ss:$16 sps:$4 sm:$0xff]   ;;  %v9514_v52 = vld [vmem:[#allocation10 + $0xd04] ss:$16 sps:$4 sm:$0xff]  }
 0x217   :  { %5161 = vmatprep.subr.bf16.mxu1 %v9457_v4  ;;  %v9517_v4 = vld [vmem:[#allocation10 + $0xf04] ss:$16 sps:$4 sm:$0xff]  }
 0x219   :  { %5121 = vmatpush1.bf16.msra.mxu0 %v9452_v53  ;;  %v9512_v53 = vld [vmem:[#allocation10 + $0xd00] ss:$16 sps:$4 sm:$0xff]  }
 0x21a   :  { %5162 = vmatpush1.bf16.msra.mxu1 %v9455_v55  ;;  %5122 = vmatprep.subr.bf16.mxu0 %v9460_v56  ;;  %v10874_v55 = vrot.slane %v10843_v54, %v10699_v49  ;;  %v9515_v56 = vld [vmem:[#allocation10 + $0xf00] ss:$16 sps:$4 sm:$0xff]   ;;  %v9527_v49 = vld [vmem:[#allocation10 + $0xcc] ss:$16 sps:$4 sm:$0xff]  }
 0x21b   :  { %5163 = vmatprep.subr.bf16.mxu1 %v9463_v57  ;;  %v2166_v57 = vld [vmem:[#allocation11] sm:$0xf]  ;;  %v9530_v54 = vld [vmem:[#allocation10 + $0x2cc] ss:$16 sps:$4 sm:$0xff]  }
 0x21d   :  { %5123 = vmatpush1.bf16.msra.mxu0 %v9458_v58  ;;  %v9521_v58 = vld [vmem:[#allocation10 + $0xec] ss:$16 sps:$4 sm:$0xff]  }
 0x21e   :  { %5164 = vmatpush1.bf16.msra.mxu1 %v9461_v60  ;;  %5124 = vmatprep.subr.bf16.mxu0 %v9466_v62  ;;  %v9524_v60 = vld [vmem:[#allocation10 + $0x2ec] ss:$16 sps:$4 sm:$0xff]   ;;  %v9519_v62 = vld [vmem:[#allocation10 + $0xe8] ss:$16 sps:$4 sm:$0xff]  }
 0x21f   :  { %5165 = vmatprep.subr.bf16.mxu1 %v9469_v63  ;;  %v9522_v63 = vld [vmem:[#allocation10 + $0x2e8] ss:$16 sps:$4 sm:$0xff]  }
 0x221   :  { %5125 = vmatpush1.bf16.msra.mxu0 %v9464_v1  ;;  %v10878_v1 = vcombine.high %v10874_v55, %v10874_v55 }
 0x222   :  { %5166 = vmatpush1.bf16.msra.mxu1 %v9467_v2  ;;  %5126 = vmatprep.subr.bf16.mxu0 %v9472_v5  ;;  %v2171_v2 = vrot.slane %v2166_v57, %v10765_v0  ;;  %v2175_v5 = vrot.slane %v2166_v57, %v10768_v17  ;;  %v9558_v57 = vld [vmem:[#allocation10 + $0x228] ss:$16 sps:$4 sm:$0xff]  }
 0x223   :  { %5167 = vmatprep.subr.bf16.mxu1 %v9475_v6  ;;  %v9525_v6 = vld [vmem:[#allocation10 + $0xc8] ss:$16 sps:$4 sm:$0xff]  }
 0x225   :  { %5127 = vmatpush2.bf16.msra.mxu0 %v9470_v3  ;;  %v9528_v3 = vld [vmem:[#allocation10 + $0x2c8] ss:$16 sps:$4 sm:$0xff]  }
 0x226   :  { %5168 = vmatpush2.bf16.msra.mxu1 %v9473_v9  ;;  %5128 = vmatprep.subr.bf16.mxu0 %v9478_v13 }
 0x227   :  { %5169 = vmatprep.subr.bf16.mxu1 %v9481_v14 }
 0x229   :  { %5129 = vmatpush2.bf16.msra.mxu0 %v9476_v19 }
 0x22a   :  { %5170 = vmatpush2.bf16.msra.mxu1 %v9479_v20  ;;  %5130 = vmatprep.subr.bf16.mxu0 %v9484_v25  ;;  %v9533_v25 = vld [vmem:[#allocation10 + $0xac] ss:$16 sps:$4 sm:$0xff]  }
 0x22b   :  { %5171 = vmatprep.subr.bf16.mxu1 %v9487_v27  ;;  %v9536_v27 = vld [vmem:[#allocation10 + $0x2ac] ss:$16 sps:$4 sm:$0xff]  }
 0x22d   :  { %5131 = vmatpush2.bf16.msra.mxu0 %v9482_v28 }
 0x22e   :  { %5172 = vmatpush2.bf16.msra.mxu1 %v9485_v29  ;;  %5132 = vmatprep.subr.bf16.mxu0 %v9490_v42  ;;  %v9531_v42 = vld [vmem:[#allocation10 + $0xa8] ss:$16 sps:$4 sm:$0xff]  }
 0x22f   :  { %5173 = vmatprep.subr.bf16.mxu1 %v9493_v31  ;;  %v9534_v31 = vld [vmem:[#allocation10 + $0x2a8] ss:$16 sps:$4 sm:$0xff]  }
 0x231   :  { %5133 = vmatpush2.bf16.msra.mxu0 %v9488_v34 }
 0x232   :  { %5174 = vmatpush2.bf16.msra.mxu1 %v9491_v35  ;;  %5134 = vmatprep.subr.bf16.mxu0 %v9496_v41 }
 0x233   :  { %5175 = vmatprep.subr.bf16.mxu1 %v9499_v12 }
 0x235   :  { %5135 = vmatpush2.bf16.msra.mxu0 %v9494_v38 }
 0x236   :  { %5176 = vmatpush2.bf16.msra.mxu1 %v9497_v39  ;;  %5136 = vmatprep.subr.bf16.mxu0 %v9502_v44  ;;  %v9539_v39 = vld [vmem:[#allocation10 + $0x8c] ss:$16 sps:$4 sm:$0xff]  }
 0x237   :  { %5177 = vmatprep.subr.bf16.mxu1 %v9505_v45  ;;  %v9542_v44 = vld [vmem:[#allocation10 + $0x28c] ss:$16 sps:$4 sm:$0xff]   ;;  %v9537_v45 = vld [vmem:[#allocation10 + $0x88] ss:$16 sps:$4 sm:$0xff]  }
 0x239   :  { %5137 = vmatpush2.bf16.msra.mxu0 %v9500_v43  ;;  %v9540_v43 = vld [vmem:[#allocation10 + $0x288] ss:$16 sps:$4 sm:$0xff]  }
 0x23a   :  { %5178 = vmatpush2.bf16.msra.mxu1 %v9503_v61  ;;  %5138 = vmatprep.subr.bf16.mxu0 %v9508_v46  ;;  %v9543_v61 = vld [vmem:[#allocation10 + $0x68] ss:$16 sps:$4 sm:$0xff]  }
 0x23b   :  { %5179 = vmatprep.subr.bf16.mxu1 %v9511_v47  ;;  %v9546_v46 = vld [vmem:[#allocation10 + $0x268] ss:$16 sps:$4 sm:$0xff]   ;;  %v9551_v47 = vld [vmem:[#allocation10 + $0x4c] ss:$16 sps:$4 sm:$0xff]  }
 0x23d   :  { %5139 = vmatpush2.bf16.msra.mxu0 %v9506_v48  ;;  %v9554_v48 = vld [vmem:[#allocation10 + $0x24c] ss:$16 sps:$4 sm:$0xff]  }
 0x23e   :  { %5180 = vmatpush2.bf16.msra.mxu1 %v9509_v50  ;;  %5140 = vmatprep.subr.bf16.mxu0 %v9514_v52  ;;  %v9549_v50 = vld [vmem:[#allocation10 + $0x48] ss:$16 sps:$4 sm:$0xff]  }
 0x23f   :  { %5181 = vmatprep.subr.bf16.mxu1 %v9517_v4  ;;  %v9552_v52 = vld [vmem:[#allocation10 + $0x248] ss:$16 sps:$4 sm:$0xff]   ;;  %v9557_v4 = vld [vmem:[#allocation10 + $0x2c] ss:$16 sps:$4 sm:$0xff]  }
 0x241   :  { %5141 = vmatpush2.bf16.msra.mxu0 %v9512_v53  ;;  %v9560_v53 = vld [vmem:[#allocation10 + $0x22c] ss:$16 sps:$4 sm:$0xff]  }
 0x242   :  { %5182 = vmatpush2.bf16.msra.mxu1 %v9515_v56  ;;  %5192 = vmatprep.subr.bf16.mxu0 %v9521_v58  ;;  %v9555_v56 = vld [vmem:[#allocation10 + $0x28] ss:$16 sps:$4 sm:$0xff]   ;;  %v9563_v58 = vld [vmem:[#allocation10 + $0xc] ss:$16 sps:$4 sm:$0xff]  }
 0x243   :  { %5233 = vmatprep.subr.bf16.mxu1 %v9524_v60  ;;  %v9566_v60 = vld [vmem:[#allocation10 + $0x20c] ss:$16 sps:$4 sm:$0xff]  }
 0x244   :  { %v4898_v9 = vpop.f32.mrf.mxu0  ;;  %5143 = vmatmul.mubr.bf16.vlgmr.msra.gmra.mxu0 %v10874_v55 }
 0x245   :  { %v4939_v13 = vpop.f32.mrf.mxu1  ;;  %5184 = vmatmul.mubr.bf16.vlgmr.msra.gmra.mxu1 %v10878_v1  ;;  %v4899_v14 = vadd.f32 %v4898_v9, %v2171_v2  ;;  %5193 = vmatpush1.bf16.msra.mxu0 %v9519_v62  ;;  %v9561_v62 = vld [vmem:[#allocation10 + $0x8] ss:$16 sps:$4 sm:$0xff]   ;;  %v9569_v2 = vld [vmem:[#allocation10 + $0x1ec] ss:$16 sps:$4 sm:$0xff]  }
 0x246   :  { %5234 = vmatpush1.bf16.msra.mxu1 %v9522_v63  ;;  %v4900_v19 = vpop.f32.mrf.mxu0  ;;  %5194 = vmatprep.subr.bf16.mxu0 %v9527_v49  ;;  %v9564_v63 = vld [vmem:[#allocation10 + $0x208] ss:$16 sps:$4 sm:$0xff]   ;;  %v9572_v49 = vld [vmem:[#allocation10 + $0x3ec] ss:$16 sps:$4 sm:$0xff]  }
 0x247   :  { %v4941_v20 = vpop.f32.mrf.mxu1  ;;  %5235 = vmatprep.subr.bf16.mxu1 %v9530_v54  ;;  %v10884_v28 = vadd.f32 %v4939_v13, %v4899_v14  ;;  %v4901_v29 = vadd.f32 %v4900_v19, %v2175_v5  ;;  %5224 = vmatprep.mubr.bf16.mxu0 %v10741_v33  ;;  %v9545_v33 = vld [vmem:[#allocation10 + $0x6c] ss:$16 sps:$4 sm:$0xff]   ;;  %v9567_v54 = vld [vmem:[#allocation10 + $0x1e8] ss:$16 sps:$4 sm:$0xff]  }
 0x248   :  { %5265 = vmatprep.mubr.bf16.mxu1 %v10745_v37  ;;  %v4902_v34 = vpop.f32.mrf.mxu0  ;;  %v9548_v37 = vld [vmem:[#allocation10 + $0x26c] ss:$16 sps:$4 sm:$0xff]   ;;  %v9570_v5 = vld [vmem:[#allocation10 + $0x3e8] ss:$16 sps:$4 sm:$0xff]  }
 0x249   :  { %v4943_v35 = vpop.f32.mrf.mxu1  ;;  %v10888_v41 = vadd.f32 %v4941_v20, %v4901_v29  ;;  %5195 = vmatpush1.bf16.msra.mxu0 %v9525_v6  ;;  %v9575_v6 = vld [vmem:[#allocation10 + $0x1cc] ss:$16 sps:$4 sm:$0xff]   ;;  %v9573_v9 = vld [vmem:[#allocation10 + $0x1c8] ss:$16 sps:$4 sm:$0xff]  }
 0x24a   :  { %5236 = vmatpush1.bf16.msra.mxu1 %v9528_v3  ;;  %v4903_v12 = vpop.f32.mrf.mxu0  ;;  %5196 = vmatprep.subr.bf16.mxu0 %v9533_v25  ;;  %v9578_v3 = vld [vmem:[#allocation10 + $0x3cc] ss:$16 sps:$4 sm:$0xff]   ;;  %v9576_v13 = vld [vmem:[#allocation10 + $0x3c8] ss:$16 sps:$4 sm:$0xff]  }
 0x24b   :  { %v4944_v38 = vpop.f32.mrf.mxu1  ;;  %5237 = vmatprep.subr.bf16.mxu1 %v9536_v27  ;;  %v9581_v14 = vld [vmem:[#allocation10 + $0x1ac] ss:$16 sps:$4 sm:$0xff]   ;;  %v9579_v20 = vld [vmem:[#allocation10 + $0x1a8] ss:$16 sps:$4 sm:$0xff]  }
 0x24c   :  { %v9584_v19 = vld [vmem:[#allocation10 + $0x3ac] ss:$16 sps:$4 sm:$0xff]   ;;  %v9582_v25 = vld [vmem:[#allocation10 + $0x3a8] ss:$16 sps:$4 sm:$0xff]  }
 0x24d   :  { %5197 = vmatpush1.bf16.msra.mxu0 %v9531_v42  ;;  %v9587_v27 = vld [vmem:[#allocation10 + $0x18c] ss:$16 sps:$4 sm:$0xff]   ;;  %v9585_v42 = vld [vmem:[#allocation10 + $0x188] ss:$16 sps:$4 sm:$0xff]  }
 0x24e   :  { %5238 = vmatpush1.bf16.msra.mxu1 %v9534_v31  ;;  %5198 = vmatprep.subr.bf16.mxu0 %v9539_v39  ;;  %v9590_v29 = vld [vmem:[#allocation10 + $0x38c] ss:$16 sps:$4 sm:$0xff]   ;;  %v9588_v31 = vld [vmem:[#allocation10 + $0x388] ss:$16 sps:$4 sm:$0xff]  }
 0x24f   :  { %5239 = vmatprep.subr.bf16.mxu1 %v9542_v44  ;;  %v9593_v34 = vld [vmem:[#allocation10 + $0x16c] ss:$16 sps:$4 sm:$0xff]   ;;  %v9591_v12 = vld [vmem:[#allocation10 + $0x168] ss:$16 sps:$4 sm:$0xff]  }
 0x250   :  { %v9596_v35 = vld [vmem:[#allocation10 + $0x36c] ss:$16 sps:$4 sm:$0xff]   ;;  %v9594_v38 = vld [vmem:[#allocation10 + $0x368] ss:$16 sps:$4 sm:$0xff]  }
 0x251   :  { %5199 = vmatpush1.bf16.msra.mxu0 %v9537_v45  ;;  %v9599_v39 = vld [vmem:[#allocation10 + $0x14c] ss:$16 sps:$4 sm:$0xff]   ;;  %v9597_v45 = vld [vmem:[#allocation10 + $0x148] ss:$16 sps:$4 sm:$0xff]  }
 0x252   :  { %5240 = vmatpush1.bf16.msra.mxu1 %v9540_v43  ;;  %5200 = vmatprep.subr.bf16.mxu0 %v9545_v33  ;;  %v9602_v44 = vld [vmem:[#allocation10 + $0x34c] ss:$16 sps:$4 sm:$0xff]   ;;  %v9600_v43 = vld [vmem:[#allocation10 + $0x348] ss:$16 sps:$4 sm:$0xff]  }
 0x253   :  { %5241 = vmatprep.subr.bf16.mxu1 %v9548_v37  ;;  %v9605_v33 = vld [vmem:[#allocation10 + $0x12c] ss:$16 sps:$4 sm:$0xff]  }
 0x254   :  { %v9608_v37 = vld [vmem:[#allocation10 + $0x32c] ss:$16 sps:$4 sm:$0xff]  }
 0x255   :  { %5201 = vmatpush1.bf16.msra.mxu0 %v9543_v61  ;;  %v9603_v61 = vld [vmem:[#allocation10 + $0x128] ss:$16 sps:$4 sm:$0xff]  }
 0x256   :  { %5242 = vmatpush1.bf16.msra.mxu1 %v9546_v46  ;;  %5202 = vmatprep.subr.bf16.mxu0 %v9551_v47  ;;  %v9606_v46 = vld [vmem:[#allocation10 + $0x328] ss:$16 sps:$4 sm:$0xff]   ;;  %v9611_v47 = vld [vmem:[#allocation10 + $0x10c] ss:$16 sps:$4 sm:$0xff]  }
 0x257   :  { %5243 = vmatprep.subr.bf16.mxu1 %v9554_v48  ;;  %v9614_v48 = vld [vmem:[#allocation10 + $0x30c] ss:$16 sps:$4 sm:$0xff]  }
 0x259   :  { %5203 = vmatpush1.bf16.msra.mxu0 %v9549_v50  ;;  %v9609_v50 = vld [vmem:[#allocation10 + $0x108] ss:$16 sps:$4 sm:$0xff]  }
 0x25a   :  { %5244 = vmatpush1.bf16.msra.mxu1 %v9552_v52  ;;  %5204 = vmatprep.subr.bf16.mxu0 %v9557_v4  ;;  %v9612_v52 = vld [vmem:[#allocation10 + $0x308] ss:$16 sps:$4 sm:$0xff]   ;;  %v9617_v4 = vld [vmem:[#allocation10 + $0x4ec] ss:$16 sps:$4 sm:$0xff]  }
 0x25b   :  { %5245 = vmatprep.subr.bf16.mxu1 %v9560_v53  ;;  %v9620_v53 = vld [vmem:[#allocation10 + $0x6ec] ss:$16 sps:$4 sm:$0xff]  }
 0x25d   :  { %5205 = vmatpush1.bf16.msra.mxu0 %v9555_v56  ;;  %v9615_v56 = vld [vmem:[#allocation10 + $0x4e8] ss:$16 sps:$4 sm:$0xff]  }
 0x25e   :  { %5246 = vmatpush1.bf16.msra.mxu1 %v9558_v57  ;;  %5206 = vmatprep.subr.bf16.mxu0 %v9563_v58  ;;  %v9618_v57 = vld [vmem:[#allocation10 + $0x6e8] ss:$16 sps:$4 sm:$0xff]   ;;  %v9623_v58 = vld [vmem:[#allocation10 + $0x4cc] ss:$16 sps:$4 sm:$0xff]  }
 0x25f   :  { %5247 = vmatprep.subr.bf16.mxu1 %v9566_v60  ;;  %v9626_v60 = vld [vmem:[#allocation10 + $0x6cc] ss:$16 sps:$4 sm:$0xff]  }
 0x261   :  { %5207 = vmatpush1.bf16.msra.mxu0 %v9561_v62  ;;  %v9621_v62 = vld [vmem:[#allocation10 + $0x4c8] ss:$16 sps:$4 sm:$0xff]  }
 0x262   :  { %5248 = vmatpush1.bf16.msra.mxu1 %v9564_v63  ;;  %5208 = vmatprep.subr.bf16.mxu0 %v9569_v2  ;;  %v9624_v63 = vld [vmem:[#allocation10 + $0x6c8] ss:$16 sps:$4 sm:$0xff]  }
 0x263   :  { %5249 = vmatprep.subr.bf16.mxu1 %v9572_v49 }
 0x265   :  { %5209 = vmatpush2.bf16.msra.mxu0 %v9567_v54 }
 0x266   :  { %5250 = vmatpush2.bf16.msra.mxu1 %v9570_v5  ;;  %5210 = vmatprep.subr.bf16.mxu0 %v9575_v6 }
 0x267   :  { %5251 = vmatprep.subr.bf16.mxu1 %v9578_v3  ;;  %v9629_v3 = vld [vmem:[#allocation10 + $0x4ac] ss:$16 sps:$4 sm:$0xff]  }
 0x269   :  { %5211 = vmatpush2.bf16.msra.mxu0 %v9573_v9  ;;  %v9632_v9 = vld [vmem:[#allocation10 + $0x6ac] ss:$16 sps:$4 sm:$0xff]  }
 0x26a   :  { %5252 = vmatpush2.bf16.msra.mxu1 %v9576_v13  ;;  %5212 = vmatprep.subr.bf16.mxu0 %v9581_v14 }
 0x26b   :  { %5253 = vmatprep.subr.bf16.mxu1 %v9584_v19  ;;  %v9627_v19 = vld [vmem:[#allocation10 + $0x4a8] ss:$16 sps:$4 sm:$0xff]  }
 0x26d   :  { %5213 = vmatpush2.bf16.msra.mxu0 %v9579_v20  ;;  %v9630_v20 = vld [vmem:[#allocation10 + $0x6a8] ss:$16 sps:$4 sm:$0xff]  }
 0x26e   :  { %5254 = vmatpush2.bf16.msra.mxu1 %v9582_v25  ;;  %5214 = vmatprep.subr.bf16.mxu0 %v9587_v27 }
 0x26f   :  { %5255 = vmatprep.subr.bf16.mxu1 %v9590_v29  ;;  %v9635_v29 = vld [vmem:[#allocation10 + $0x48c] ss:$16 sps:$4 sm:$0xff]  }
 0x271   :  { %5215 = vmatpush2.bf16.msra.mxu0 %v9585_v42  ;;  %v9638_v42 = vld [vmem:[#allocation10 + $0x68c] ss:$16 sps:$4 sm:$0xff]  }
 0x272   :  { %5256 = vmatpush2.bf16.msra.mxu1 %v9588_v31  ;;  %5216 = vmatprep.subr.bf16.mxu0 %v9593_v34  ;;  %v9636_v31 = vld [vmem:[#allocation10 + $0x688] ss:$16 sps:$4 sm:$0xff]  }
 0x273   :  { %5257 = vmatprep.subr.bf16.mxu1 %v9596_v35  ;;  %v9639_v34 = vld [vmem:[#allocation10 + $0x468] ss:$16 sps:$4 sm:$0xff]  }
 0x274   :  { %v9642_v35 = vld [vmem:[#allocation10 + $0x668] ss:$16 sps:$4 sm:$0xff]  }
 0x275   :  { %5217 = vmatpush2.bf16.msra.mxu0 %v9591_v12  ;;  %v9647_v12 = vld [vmem:[#allocation10 + $0x44c] ss:$16 sps:$4 sm:$0xff]  }
 0x276   :  { %5258 = vmatpush2.bf16.msra.mxu1 %v9594_v38  ;;  %5218 = vmatprep.subr.bf16.mxu0 %v9599_v39  ;;  %v9650_v38 = vld [vmem:[#allocation10 + $0x64c] ss:$16 sps:$4 sm:$0xff]   ;;  %v9645_v39 = vld [vmem:[#allocation10 + $0x448] ss:$16 sps:$4 sm:$0xff]  }
 0x277   :  { %5259 = vmatprep.subr.bf16.mxu1 %v9602_v44  ;;  %v9648_v44 = vld [vmem:[#allocation10 + $0x648] ss:$16 sps:$4 sm:$0xff]  }
 0x279   :  { %5219 = vmatpush2.bf16.msra.mxu0 %v9597_v45  ;;  %v9653_v45 = vld [vmem:[#allocation10 + $0x42c] ss:$16 sps:$4 sm:$0xff]  }
 0x27a   :  { %5260 = vmatpush2.bf16.msra.mxu1 %v9600_v43  ;;  %5220 = vmatprep.subr.bf16.mxu0 %v9605_v33  ;;  %v9656_v43 = vld [vmem:[#allocation10 + $0x62c] ss:$16 sps:$4 sm:$0xff]   ;;  %v9651_v33 = vld [vmem:[#allocation10 + $0x428] ss:$16 sps:$4 sm:$0xff]  }
 0x27b   :  { %5261 = vmatprep.subr.bf16.mxu1 %v9608_v37  ;;  %v9654_v37 = vld [vmem:[#allocation10 + $0x628] ss:$16 sps:$4 sm:$0xff]  }
 0x27d   :  { %5221 = vmatpush2.bf16.msra.mxu0 %v9603_v61  ;;  %v9659_v61 = vld [vmem:[#allocation10 + $0x40c] ss:$16 sps:$4 sm:$0xff]  }
 0x27e   :  { %5262 = vmatpush2.bf16.msra.mxu1 %v9606_v46  ;;  %5222 = vmatprep.subr.bf16.mxu0 %v9611_v47  ;;  %v9662_v46 = vld [vmem:[#allocation10 + $0x60c] ss:$16 sps:$4 sm:$0xff]   ;;  %v9657_v47 = vld [vmem:[#allocation10 + $0x408] ss:$16 sps:$4 sm:$0xff]  }
 0x27f   :  { %5263 = vmatprep.subr.bf16.mxu1 %v9614_v48  ;;  %v9660_v48 = vld [vmem:[#allocation10 + $0x608] ss:$16 sps:$4 sm:$0xff]  }
 0x281   :  { %5223 = vmatpush2.bf16.msra.mxu0 %v9609_v50  ;;  %v9665_v50 = vld [vmem:[#allocation10 + $0x5ec] ss:$16 sps:$4 sm:$0xff]  }
 0x282   :  { %5264 = vmatpush2.bf16.msra.mxu1 %v9612_v52  ;;  %5274 = vmatprep.subr.bf16.mxu0 %v9617_v4  ;;  %v9668_v52 = vld [vmem:[#allocation10 + $0x7ec] ss:$16 sps:$4 sm:$0xff]   ;;  %v9663_v4 = vld [vmem:[#allocation10 + $0x5e8] ss:$16 sps:$4 sm:$0xff]  }
 0x283   :  { %5315 = vmatprep.subr.bf16.mxu1 %v9620_v53  ;;  %v9666_v53 = vld [vmem:[#allocation10 + $0x7e8] ss:$16 sps:$4 sm:$0xff]  }
 0x284   :  { %v4980_v2 = vpop.f32.mrf.mxu0  ;;  %5225 = vmatmul.mubr.bf16.vlgmr.msra.gmra.mxu0 %v10760_v40 }
 0x285   :  { %v5021_v49 = vpop.f32.mrf.mxu1  ;;  %5266 = vmatmul.mubr.bf16.vlgmr.msra.gmra.mxu1 %v10775_v23  ;;  %v4981_v54 = vadd.f32 %v4980_v2, %v10884_v28  ;;  %5275 = vmatpush1.bf16.msra.mxu0 %v9615_v56  ;;  %v9671_v56 = vld [vmem:[#allocation10 + $0x5cc] ss:$16 sps:$4 sm:$0xff]   ;;  %v9675_v2 = vld [vmem:[#allocation10 + $0x5a8] ss:$16 sps:$4 sm:$0xff]  }
 0x286   :  { %5316 = vmatpush1.bf16.msra.mxu1 %v9618_v57  ;;  %v4982_v5 = vpop.f32.mrf.mxu0  ;;  %5276 = vmatprep.subr.bf16.mxu0 %v9623_v58  ;;  %v9674_v57 = vld [vmem:[#allocation10 + $0x7cc] ss:$16 sps:$4 sm:$0xff]   ;;  %v9669_v58 = vld [vmem:[#allocation10 + $0x5c8] ss:$16 sps:$4 sm:$0xff]  }
 0x287   :  { %v5023_v6 = vpop.f32.mrf.mxu1  ;;  %5317 = vmatprep.subr.bf16.mxu1 %v9626_v60  ;;  %v10893_v13 = vadd.f32 %v5021_v49, %v4981_v54  ;;  %v4983_v14 = vadd.f32 %v4982_v5, %v10888_v41  ;;  %5306 = vmatprep.mubr.bf16.mxu0 %v10771_v26  ;;  %v9633_v41 = vld [vmem:[#allocation10 + $0x488] ss:$16 sps:$4 sm:$0xff]   ;;  %v9641_v26 = vld [vmem:[#allocation10 + $0x46c] ss:$16 sps:$4 sm:$0xff]  }
 0x288   :  { %5347 = vmatprep.mubr.bf16.mxu1 %v10783_v51  ;;  %v4984_v40 = vpop.f32.mrf.mxu0  ;;  %v9644_v51 = vld [vmem:[#allocation10 + $0x66c] ss:$16 sps:$4 sm:$0xff]   ;;  %v9672_v60 = vld [vmem:[#allocation10 + $0x7c8] ss:$16 sps:$4 sm:$0xff]  }
 0x289   :  { %v5025_v23 = vpop.f32.mrf.mxu1  ;;  %v10898_v28 = vadd.f32 %v5023_v6, %v4983_v14  ;;  %5277 = vmatpush1.bf16.msra.mxu0 %v9621_v62  ;;  %v9677_v62 = vld [vmem:[#allocation10 + $0x5ac] ss:$16 sps:$4 sm:$0xff]   ;;  %v9678_v49 = vld [vmem:[#allocation10 + $0x7a8] ss:$16 sps:$4 sm:$0xff]  }
 0x28a   :  { %5318 = vmatpush1.bf16.msra.mxu1 %v9624_v63  ;;  %v4985_v25 = vpop.f32.mrf.mxu0  ;;  %5278 = vmatprep.subr.bf16.mxu0 %v9629_v3  ;;  %v9680_v63 = vld [vmem:[#allocation10 + $0x7ac] ss:$16 sps:$4 sm:$0xff]   ;;  %v9681_v6 = vld [vmem:[#allocation10 + $0x588] ss:$16 sps:$4 sm:$0xff]  }
 0x28b   :  { %v5026_v27 = vpop.f32.mrf.mxu1  ;;  %5319 = vmatprep.subr.bf16.mxu1 %v9632_v9  ;;  %v9683_v54 = vld [vmem:[#allocation10 + $0x58c] ss:$16 sps:$4 sm:$0xff]   ;;  %v9684_v3 = vld [vmem:[#allocation10 + $0x788] ss:$16 sps:$4 sm:$0xff]  }
 0x28c   :  { %v9686_v5 = vld [vmem:[#allocation10 + $0x78c] ss:$16 sps:$4 sm:$0xff]   ;;  %v9693_v25 = vld [vmem:[#allocation10 + $0x548] ss:$16 sps:$4 sm:$0xff]  }
 0x28d   :  { %5279 = vmatpush1.bf16.msra.mxu0 %v9627_v19  ;;  %v9689_v9 = vld [vmem:[#allocation10 + $0x56c] ss:$16 sps:$4 sm:$0xff]   ;;  %v9687_v19 = vld [vmem:[#allocation10 + $0x568] ss:$16 sps:$4 sm:$0xff]  }
 0x28e   :  { %5320 = vmatpush1.bf16.msra.mxu1 %v9630_v20  ;;  %5280 = vmatprep.subr.bf16.mxu0 %v9635_v29  ;;  %v9692_v14 = vld [vmem:[#allocation10 + $0x76c] ss:$16 sps:$4 sm:$0xff]   ;;  %v9690_v20 = vld [vmem:[#allocation10 + $0x768] ss:$16 sps:$4 sm:$0xff]  }
 0x28f   :  { %5321 = vmatprep.subr.bf16.mxu1 %v9638_v42  ;;  %v9695_v40 = vld [vmem:[#allocation10 + $0x54c] ss:$16 sps:$4 sm:$0xff]   ;;  %v9696_v27 = vld [vmem:[#allocation10 + $0x748] ss:$16 sps:$4 sm:$0xff]  }
 0x290   :  { %v9698_v23 = vld [vmem:[#allocation10 + $0x74c] ss:$16 sps:$4 sm:$0xff]  }
 0x291   :  { %5281 = vmatpush1.bf16.msra.mxu0 %v9633_v41  ;;  %v9701_v29 = vld [vmem:[#allocation10 + $0x52c] ss:$16 sps:$4 sm:$0xff]   ;;  %v9699_v41 = vld [vmem:[#allocation10 + $0x528] ss:$16 sps:$4 sm:$0xff]  }
 0x292   :  { %5322 = vmatpush1.bf16.msra.mxu1 %v9636_v31  ;;  %5282 = vmatprep.subr.bf16.mxu0 %v9641_v26  ;;  %v9704_v42 = vld [vmem:[#allocation10 + $0x72c] ss:$16 sps:$4 sm:$0xff]   ;;  %v9702_v31 = vld [vmem:[#allocation10 + $0x728] ss:$16 sps:$4 sm:$0xff]  }
 0x293   :  { %5323 = vmatprep.subr.bf16.mxu1 %v9644_v51  ;;  %v9707_v26 = vld [vmem:[#allocation10 + $0x50c] ss:$16 sps:$4 sm:$0xff]  }
 0x294   :  { %v9710_v51 = vld [vmem:[#allocation10 + $0x70c] ss:$16 sps:$4 sm:$0xff]  }
 0x295   :  { %5283 = vmatpush1.bf16.msra.mxu0 %v9639_v34  ;;  %v9705_v34 = vld [vmem:[#allocation10 + $0x508] ss:$16 sps:$4 sm:$0xff]  }
 0x296   :  { %5324 = vmatpush1.bf16.msra.mxu1 %v9642_v35  ;;  %5284 = vmatprep.subr.bf16.mxu0 %v9647_v12  ;;  %v9708_v35 = vld [vmem:[#allocation10 + $0x708] ss:$16 sps:$4 sm:$0xff]   ;;  %v9713_v12 = vld [vmem:[#allocation10 + $0x8ec] ss:$16 sps:$4 sm:$0xff]  }
 0x297   :  { %5325 = vmatprep.subr.bf16.mxu1 %v9650_v38  ;;  %v9716_v38 = vld [vmem:[#allocation10 + $0xaec] ss:$16 sps:$4 sm:$0xff]  }
 0x299   :  { %5285 = vmatpush1.bf16.msra.mxu0 %v9645_v39  ;;  %v9711_v39 = vld [vmem:[#allocation10 + $0x8e8] ss:$16 sps:$4 sm:$0xff]  }
 0x29a   :  { %5326 = vmatpush1.bf16.msra.mxu1 %v9648_v44  ;;  %5286 = vmatprep.subr.bf16.mxu0 %v9653_v45  ;;  %v9714_v44 = vld [vmem:[#allocation10 + $0xae8] ss:$16 sps:$4 sm:$0xff]   ;;  %v9719_v45 = vld [vmem:[#allocation10 + $0x8cc] ss:$16 sps:$4 sm:$0xff]  }
 0x29b   :  { %5327 = vmatprep.subr.bf16.mxu1 %v9656_v43  ;;  %v9722_v43 = vld [vmem:[#allocation10 + $0xacc] ss:$16 sps:$4 sm:$0xff]  }
 0x29d   :  { %5287 = vmatpush1.bf16.msra.mxu0 %v9651_v33 }
 0x29e   :  { %5328 = vmatpush1.bf16.msra.mxu1 %v9654_v37  ;;  %5288 = vmatprep.subr.bf16.mxu0 %v9659_v61 }
 0x29f   :  { %5329 = vmatprep.subr.bf16.mxu1 %v9662_v46  ;;  %v9717_v46 = vld [vmem:[#allocation10 + $0x8c8] ss:$16 sps:$4 sm:$0xff]  }
 0x2a1   :  { %5289 = vmatpush1.bf16.msra.mxu0 %v9657_v47  ;;  %v9720_v47 = vld [vmem:[#allocation10 + $0xac8] ss:$16 sps:$4 sm:$0xff]  }
 0x2a2   :  { %5330 = vmatpush1.bf16.msra.mxu1 %v9660_v48  ;;  %5290 = vmatprep.subr.bf16.mxu0 %v9665_v50 }
 0x2a3   :  { %5331 = vmatprep.subr.bf16.mxu1 %v9668_v52  ;;  %v9725_v52 = vld [vmem:[#allocation10 + $0x8ac] ss:$16 sps:$4 sm:$0xff]  }
 0x2a5   :  { %5291 = vmatpush2.bf16.msra.mxu0 %v9663_v4  ;;  %v9728_v4 = vld [vmem:[#allocation10 + $0xaac] ss:$16 sps:$4 sm:$0xff]  }
 0x2a6   :  { %5332 = vmatpush2.bf16.msra.mxu1 %v9666_v53  ;;  %5292 = vmatprep.subr.bf16.mxu0 %v9671_v56 }
 0x2a7   :  { %5333 = vmatprep.subr.bf16.mxu1 %v9674_v57  ;;  %v9723_v57 = vld [vmem:[#allocation10 + $0x8a8] ss:$16 sps:$4 sm:$0xff]  }
 0x2a9   :  { %5293 = vmatpush2.bf16.msra.mxu0 %v9669_v58  ;;  %v9726_v58 = vld [vmem:[#allocation10 + $0xaa8] ss:$16 sps:$4 sm:$0xff]  }
 0x2aa   :  { %5334 = vmatpush2.bf16.msra.mxu1 %v9672_v60  ;;  %5294 = vmatprep.subr.bf16.mxu0 %v9677_v62 }
 0x2ab   :  { %5335 = vmatprep.subr.bf16.mxu1 %v9680_v63  ;;  %v9731_v63 = vld [vmem:[#allocation10 + $0x88c] ss:$16 sps:$4 sm:$0xff]  }
 0x2ad   :  { %5295 = vmatpush2.bf16.msra.mxu0 %v9675_v2  ;;  %v9734_v2 = vld [vmem:[#allocation10 + $0xa8c] ss:$16 sps:$4 sm:$0xff]  }
 0x2ae   :  { %5336 = vmatpush2.bf16.msra.mxu1 %v9678_v49  ;;  %5296 = vmatprep.subr.bf16.mxu0 %v9683_v54  ;;  %v9740_v49 = vld [vmem:[#allocation10 + $0xa6c] ss:$16 sps:$4 sm:$0xff]   ;;  %v9735_v54 = vld [vmem:[#allocation10 + $0x868] ss:$16 sps:$4 sm:$0xff]  }
 0x2af   :  { %5337 = vmatprep.subr.bf16.mxu1 %v9686_v5  ;;  %v9738_v5 = vld [vmem:[#allocation10 + $0xa68] ss:$16 sps:$4 sm:$0xff]  }
 0x2b1   :  { %5297 = vmatpush2.bf16.msra.mxu0 %v9681_v6  ;;  %v9743_v6 = vld [vmem:[#allocation10 + $0x84c] ss:$16 sps:$4 sm:$0xff]  }
 0x2b2   :  { %5338 = vmatpush2.bf16.msra.mxu1 %v9684_v3  ;;  %5298 = vmatprep.subr.bf16.mxu0 %v9689_v9  ;;  %v9746_v3 = vld [vmem:[#allocation10 + $0xa4c] ss:$16 sps:$4 sm:$0xff]   ;;  %v9741_v9 = vld [vmem:[#allocation10 + $0x848] ss:$16 sps:$4 sm:$0xff]  }
 0x2b3   :  { %5339 = vmatprep.subr.bf16.mxu1 %v9692_v14  ;;  %v9744_v14 = vld [vmem:[#allocation10 + $0xa48] ss:$16 sps:$4 sm:$0xff]  }
 0x2b5   :  { %5299 = vmatpush2.bf16.msra.mxu0 %v9687_v19  ;;  %v9749_v19 = vld [vmem:[#allocation10 + $0x82c] ss:$16 sps:$4 sm:$0xff]  }
 0x2b6   :  { %5340 = vmatpush2.bf16.msra.mxu1 %v9690_v20  ;;  %5300 = vmatprep.subr.bf16.mxu0 %v9695_v40  ;;  %v9752_v20 = vld [vmem:[#allocation10 + $0xa2c] ss:$16 sps:$4 sm:$0xff]   ;;  %v9747_v40 = vld [vmem:[#allocation10 + $0x828] ss:$16 sps:$4 sm:$0xff]  }
 0x2b7   :  { %5341 = vmatprep.subr.bf16.mxu1 %v9698_v23  ;;  %v9750_v23 = vld [vmem:[#allocation10 + $0xa28] ss:$16 sps:$4 sm:$0xff]  }
 0x2b9   :  { %5301 = vmatpush2.bf16.msra.mxu0 %v9693_v25  ;;  %v9755_v25 = vld [vmem:[#allocation10 + $0x80c] ss:$16 sps:$4 sm:$0xff]  }
 0x2ba   :  { %5342 = vmatpush2.bf16.msra.mxu1 %v9696_v27  ;;  %5302 = vmatprep.subr.bf16.mxu0 %v9701_v29  ;;  %v9758_v27 = vld [vmem:[#allocation10 + $0xa0c] ss:$16 sps:$4 sm:$0xff]   ;;  %v9753_v29 = vld [vmem:[#allocation10 + $0x808] ss:$16 sps:$4 sm:$0xff]  }
 0x2bb   :  { %5343 = vmatprep.subr.bf16.mxu1 %v9704_v42  ;;  %v9756_v42 = vld [vmem:[#allocation10 + $0xa08] ss:$16 sps:$4 sm:$0xff]  }
 0x2bd   :  { %5303 = vmatpush2.bf16.msra.mxu0 %v9699_v41  ;;  %v9761_v41 = vld [vmem:[#allocation10 + $0x9ec] ss:$16 sps:$4 sm:$0xff]  }
 0x2be   :  { %5344 = vmatpush2.bf16.msra.mxu1 %v9702_v31  ;;  %5304 = vmatprep.subr.bf16.mxu0 %v9707_v26  ;;  %v9764_v31 = vld [vmem:[#allocation10 + $0xbec] ss:$16 sps:$4 sm:$0xff]   ;;  %v9759_v26 = vld [vmem:[#allocation10 + $0x9e8] ss:$16 sps:$4 sm:$0xff]  }
 0x2bf   :  { %5345 = vmatprep.subr.bf16.mxu1 %v9710_v51  ;;  %v9762_v51 = vld [vmem:[#allocation10 + $0xbe8] ss:$16 sps:$4 sm:$0xff]  }
 0x2c1   :  { %5305 = vmatpush2.bf16.msra.mxu0 %v9705_v34  ;;  %v9767_v34 = vld [vmem:[#allocation10 + $0x9cc] ss:$16 sps:$4 sm:$0xff]  }
 0x2c2   :  { %5346 = vmatpush2.bf16.msra.mxu1 %v9708_v35  ;;  %5356 = vmatprep.subr.bf16.mxu0 %v9713_v12  ;;  %v9770_v35 = vld [vmem:[#allocation10 + $0xbcc] ss:$16 sps:$4 sm:$0xff]   ;;  %v9765_v12 = vld [vmem:[#allocation10 + $0x9c8] ss:$16 sps:$4 sm:$0xff]  }
 0x2c3   :  { %5397 = vmatprep.subr.bf16.mxu1 %v9716_v38  ;;  %v9768_v38 = vld [vmem:[#allocation10 + $0xbc8] ss:$16 sps:$4 sm:$0xff]  }
 0x2c4   :  { %v5062_v33 = vpop.f32.mrf.mxu0  ;;  %5307 = vmatmul.mubr.bf16.vlgmr.msra.gmra.mxu0 %v10803_v11 }
 0x2c5   :  { %v5103_v37 = vpop.f32.mrf.mxu1  ;;  %5348 = vmatmul.mubr.bf16.vlgmr.msra.gmra.mxu1 %v10816_v10  ;;  %v5063_v61 = vadd.f32 %v5062_v33, %v10893_v13  ;;  %5357 = vmatpush1.bf16.msra.mxu0 %v9711_v39  ;;  %v9773_v39 = vld [vmem:[#allocation10 + $0x9ac] ss:$16 sps:$4 sm:$0xff]  }
 0x2c6   :  { %5398 = vmatpush1.bf16.msra.mxu1 %v9714_v44  ;;  %v5064_v48 = vpop.f32.mrf.mxu0  ;;  %5358 = vmatprep.subr.bf16.mxu0 %v9719_v45  ;;  %v9776_v44 = vld [vmem:[#allocation10 + $0xbac] ss:$16 sps:$4 sm:$0xff]   ;;  %v9771_v45 = vld [vmem:[#allocation10 + $0x9a8] ss:$16 sps:$4 sm:$0xff]  }
 0x2c7   :  { %v5105_v50 = vpop.f32.mrf.mxu1  ;;  %5399 = vmatprep.subr.bf16.mxu1 %v9722_v43  ;;  %v10903_v53 = vadd.f32 %v5103_v37, %v5063_v61  ;;  %v5065_v56 = vadd.f32 %v5064_v48, %v10898_v28  ;;  %5388 = vmatprep.mubr.bf16.mxu0 %v10812_v24  ;;  %v9729_v28 = vld [vmem:[#allocation10 + $0x888] ss:$16 sps:$4 sm:$0xff]   ;;  %v9779_v33 = vld [vmem:[#allocation10 + $0x98c] ss:$16 sps:$4 sm:$0xff]  }
 0x2c8   :  { %5429 = vmatprep.mubr.bf16.mxu1 %v10824_v32  ;;  %v5066_v11 = vpop.f32.mrf.mxu0  ;;  %v9732_v24 = vld [vmem:[#allocation10 + $0xa88] ss:$16 sps:$4 sm:$0xff]   ;;  %v9737_v32 = vld [vmem:[#allocation10 + $0x86c] ss:$16 sps:$4 sm:$0xff]  }
 0x2c9   :  { %v5107_v10 = vpop.f32.mrf.mxu1  ;;  %v10908_v13 = vadd.f32 %v5105_v50, %v5065_v56  ;;  %5359 = vmatpush1.bf16.msra.mxu0 %v9717_v46  ;;  %v9774_v43 = vld [vmem:[#allocation10 + $0xba8] ss:$16 sps:$4 sm:$0xff]   ;;  %v9782_v37 = vld [vmem:[#allocation10 + $0xb8c] ss:$16 sps:$4 sm:$0xff]  }
 0x2ca   :  { %5400 = vmatpush1.bf16.msra.mxu1 %v9720_v47  ;;  %v5067_v60 = vpop.f32.mrf.mxu0  ;;  %5360 = vmatprep.subr.bf16.mxu0 %v9725_v52  ;;  %v9777_v61 = vld [vmem:[#allocation10 + $0x988] ss:$16 sps:$4 sm:$0xff]   ;;  %v9785_v47 = vld [vmem:[#allocation10 + $0x96c] ss:$16 sps:$4 sm:$0xff]  }
 0x2cb   :  { %v5108_v62 = vpop.f32.mrf.mxu1  ;;  %5401 = vmatprep.subr.bf16.mxu1 %v9728_v4  ;;  %v9780_v46 = vld [vmem:[#allocation10 + $0xb88] ss:$16 sps:$4 sm:$0xff]   ;;  %v9788_v48 = vld [vmem:[#allocation10 + $0xb6c] ss:$16 sps:$4 sm:$0xff]  }
 0x2cc   :  { %v9783_v50 = vld [vmem:[#allocation10 + $0x968] ss:$16 sps:$4 sm:$0xff]   ;;  %v9791_v4 = vld [vmem:[#allocation10 + $0x94c] ss:$16 sps:$4 sm:$0xff]  }
 0x2cd   :  { %5361 = vmatpush1.bf16.msra.mxu0 %v9723_v57  ;;  %v9786_v52 = vld [vmem:[#allocation10 + $0xb68] ss:$16 sps:$4 sm:$0xff]   ;;  %v9794_v56 = vld [vmem:[#allocation10 + $0xb4c] ss:$16 sps:$4 sm:$0xff]  }
 0x2ce   :  { %5402 = vmatpush1.bf16.msra.mxu1 %v9726_v58  ;;  %5362 = vmatprep.subr.bf16.mxu0 %v9731_v63  ;;  %v9789_v11 = vld [vmem:[#allocation10 + $0x948] ss:$16 sps:$4 sm:$0xff]   ;;  %v9797_v57 = vld [vmem:[#allocation10 + $0x92c] ss:$16 sps:$4 sm:$0xff]  }
 0x2cf   :  { %5403 = vmatprep.subr.bf16.mxu1 %v9734_v2  ;;  %v9792_v10 = vld [vmem:[#allocation10 + $0xb48] ss:$16 sps:$4 sm:$0xff]   ;;  %v9800_v58 = vld [vmem:[#allocation10 + $0xb2c] ss:$16 sps:$4 sm:$0xff]  }
 0x2d0   :  { %v9795_v60 = vld [vmem:[#allocation10 + $0x928] ss:$16 sps:$4 sm:$0xff]   ;;  %v9803_v63 = vld [vmem:[#allocation10 + $0x90c] ss:$16 sps:$4 sm:$0xff]  }
 0x2d1   :  { %5363 = vmatpush1.bf16.msra.mxu0 %v9729_v28  ;;  %v9798_v62 = vld [vmem:[#allocation10 + $0xb28] ss:$16 sps:$4 sm:$0xff]   ;;  %v9806_v2 = vld [vmem:[#allocation10 + $0xb0c] ss:$16 sps:$4 sm:$0xff]  }
 0x2d2   :  { %5404 = vmatpush1.bf16.msra.mxu1 %v9732_v24  ;;  %5364 = vmatprep.subr.bf16.mxu0 %v9737_v32  ;;  %v9801_v28 = vld [vmem:[#allocation10 + $0x908] ss:$16 sps:$4 sm:$0xff]   ;;  %v9809_v32 = vld [vmem:[#allocation10 + $0xcec] ss:$16 sps:$4 sm:$0xff]  }
 0x2d3   :  { %5405 = vmatprep.subr.bf16.mxu1 %v9740_v49  ;;  %v9804_v24 = vld [vmem:[#allocation10 + $0xb08] ss:$16 sps:$4 sm:$0xff]   ;;  %v9812_v49 = vld [vmem:[#allocation10 + $0xeec] ss:$16 sps:$4 sm:$0xff]  }
 0x2d5   :  { %5365 = vmatpush1.bf16.msra.mxu0 %v9735_v54  ;;  %v9807_v54 = vld [vmem:[#allocation10 + $0xce8] ss:$16 sps:$4 sm:$0xff]  }
 0x2d6   :  { %5406 = vmatpush1.bf16.msra.mxu1 %v9738_v5  ;;  %5366 = vmatprep.subr.bf16.mxu0 %v9743_v6  ;;  %v9810_v5 = vld [vmem:[#allocation10 + $0xee8] ss:$16 sps:$4 sm:$0xff]   ;;  %v9815_v6 = vld [vmem:[#allocation10 + $0xccc] ss:$16 sps:$4 sm:$0xff]  }
 0x2d7   :  { %5407 = vmatprep.subr.bf16.mxu1 %v9746_v3  ;;  %v9818_v3 = vld [vmem:[#allocation10 + $0xecc] ss:$16 sps:$4 sm:$0xff]  }
 0x2d9   :  { %5367 = vmatpush1.bf16.msra.mxu0 %v9741_v9 }
 0x2da   :  { %5408 = vmatpush1.bf16.msra.mxu1 %v9744_v14  ;;  %5368 = vmatprep.subr.bf16.mxu0 %v9749_v19 }
 0x2db   :  { %5409 = vmatprep.subr.bf16.mxu1 %v9752_v20  ;;  %v9813_v20 = vld [vmem:[#allocation10 + $0xcc8] ss:$16 sps:$4 sm:$0xff]  }
 0x2dd   :  { %5369 = vmatpush1.bf16.msra.mxu0 %v9747_v40  ;;  %v9816_v40 = vld [vmem:[#allocation10 + $0xec8] ss:$16 sps:$4 sm:$0xff]  }
 0x2de   :  { %5410 = vmatpush1.bf16.msra.mxu1 %v9750_v23  ;;  %5370 = vmatprep.subr.bf16.mxu0 %v9755_v25 }
 0x2df   :  { %5411 = vmatprep.subr.bf16.mxu1 %v9758_v27  ;;  %v9821_v27 = vld [vmem:[#allocation10 + $0xcac] ss:$16 sps:$4 sm:$0xff]  }
 0x2e1   :  { %5371 = vmatpush1.bf16.msra.mxu0 %v9753_v29  ;;  %v9824_v29 = vld [vmem:[#allocation10 + $0xeac] ss:$16 sps:$4 sm:$0xff]  }
 0x2e2   :  { %5412 = vmatpush1.bf16.msra.mxu1 %v9756_v42  ;;  %5372 = vmatprep.subr.bf16.mxu0 %v9761_v41  ;;  %v9822_v41 = vld [vmem:[#allocation10 + $0xea8] ss:$16 sps:$4 sm:$0xff]  }
 0x2e3   :  { %5413 = vmatprep.subr.bf16.mxu1 %v9764_v31 }
 0x2e5   :  { %5373 = vmatpush2.bf16.msra.mxu0 %v9759_v26 }
 0x2e6   :  { %5414 = vmatpush2.bf16.msra.mxu1 %v9762_v51  ;;  %5374 = vmatprep.subr.bf16.mxu0 %v9767_v34  ;;  %v9827_v51 = vld [vmem:[#allocation10 + $0xc8c] ss:$16 sps:$4 sm:$0xff]  }
 0x2e7   :  { %5415 = vmatprep.subr.bf16.mxu1 %v9770_v35  ;;  %v9830_v34 = vld [vmem:[#allocation10 + $0xe8c] ss:$16 sps:$4 sm:$0xff]   ;;  %v9825_v35 = vld [vmem:[#allocation10 + $0xc88] ss:$16 sps:$4 sm:$0xff]  }
 0x2e9   :  { %5375 = vmatpush2.bf16.msra.mxu0 %v9765_v12  ;;  %v9828_v12 = vld [vmem:[#allocation10 + $0xe88] ss:$16 sps:$4 sm:$0xff]  }
 0x2ea   :  { %5416 = vmatpush2.bf16.msra.mxu1 %v9768_v38  ;;  %5376 = vmatprep.subr.bf16.mxu0 %v9773_v39  ;;  %v9831_v38 = vld [vmem:[#allocation10 + $0xc68] ss:$16 sps:$4 sm:$0xff]  }
 0x2eb   :  { %5417 = vmatprep.subr.bf16.mxu1 %v9776_v44  ;;  %v9834_v39 = vld [vmem:[#allocation10 + $0xe68] ss:$16 sps:$4 sm:$0xff]   ;;  %v9839_v44 = vld [vmem:[#allocation10 + $0xc4c] ss:$16 sps:$4 sm:$0xff]  }
 0x2ed   :  { %5377 = vmatpush2.bf16.msra.mxu0 %v9771_v45  ;;  %v9842_v45 = vld [vmem:[#allocation10 + $0xe4c] ss:$16 sps:$4 sm:$0xff]  }
 0x2ee   :  { %5418 = vmatpush2.bf16.msra.mxu1 %v9774_v43  ;;  %5378 = vmatprep.subr.bf16.mxu0 %v9779_v33  ;;  %v9837_v43 = vld [vmem:[#allocation10 + $0xc48] ss:$16 sps:$4 sm:$0xff]  }
 0x2ef   :  { %5419 = vmatprep.subr.bf16.mxu1 %v9782_v37  ;;  %v9840_v33 = vld [vmem:[#allocation10 + $0xe48] ss:$16 sps:$4 sm:$0xff]   ;;  %v9845_v37 = vld [vmem:[#allocation10 + $0xc2c] ss:$16 sps:$4 sm:$0xff]  }
 0x2f1   :  { %5379 = vmatpush2.bf16.msra.mxu0 %v9777_v61  ;;  %v9848_v61 = vld [vmem:[#allocation10 + $0xe2c] ss:$16 sps:$4 sm:$0xff]  }
 0x2f2   :  { %5420 = vmatpush2.bf16.msra.mxu1 %v9780_v46  ;;  %5380 = vmatprep.subr.bf16.mxu0 %v9785_v47  ;;  %v9843_v46 = vld [vmem:[#allocation10 + $0xc28] ss:$16 sps:$4 sm:$0xff]  }
 0x2f3   :  { %5421 = vmatprep.subr.bf16.mxu1 %v9788_v48  ;;  %v9846_v47 = vld [vmem:[#allocation10 + $0xe28] ss:$16 sps:$4 sm:$0xff]   ;;  %v9851_v48 = vld [vmem:[#allocation10 + $0xc0c] ss:$16 sps:$4 sm:$0xff]  }
 0x2f5   :  { %5381 = vmatpush2.bf16.msra.mxu0 %v9783_v50  ;;  %v9854_v50 = vld [vmem:[#allocation10 + $0xe0c] ss:$16 sps:$4 sm:$0xff]  }
 0x2f6   :  { %5422 = vmatpush2.bf16.msra.mxu1 %v9786_v52  ;;  %5382 = vmatprep.subr.bf16.mxu0 %v9791_v4  ;;  %v9849_v52 = vld [vmem:[#allocation10 + $0xc08] ss:$16 sps:$4 sm:$0xff]  }
 0x2f7   :  { %5423 = vmatprep.subr.bf16.mxu1 %v9794_v56  ;;  %v9852_v4 = vld [vmem:[#allocation10 + $0xe08] ss:$16 sps:$4 sm:$0xff]   ;;  %v9857_v56 = vld [vmem:[#allocation10 + $0xdec] ss:$16 sps:$4 sm:$0xff]  }
 0x2f9   :  { %5383 = vmatpush2.bf16.msra.mxu0 %v9789_v11  ;;  %v9860_v11 = vld [vmem:[#allocation10 + $0xfec] ss:$16 sps:$4 sm:$0xff]  }
 0x2fa   :  { %5424 = vmatpush2.bf16.msra.mxu1 %v9792_v10  ;;  %5384 = vmatprep.subr.bf16.mxu0 %v9797_v57  ;;  %v9855_v10 = vld [vmem:[#allocation10 + $0xde8] ss:$16 sps:$4 sm:$0xff]  }
 0x2fb   :  { %5425 = vmatprep.subr.bf16.mxu1 %v9800_v58  ;;  %v9858_v57 = vld [vmem:[#allocation10 + $0xfe8] ss:$16 sps:$4 sm:$0xff]   ;;  %v9863_v58 = vld [vmem:[#allocation10 + $0xdcc] ss:$16 sps:$4 sm:$0xff]  }
 0x2fd   :  { %5385 = vmatpush2.bf16.msra.mxu0 %v9795_v60  ;;  %v9866_v60 = vld [vmem:[#allocation10 + $0xfcc] ss:$16 sps:$4 sm:$0xff]  }
 0x2fe   :  { %5426 = vmatpush2.bf16.msra.mxu1 %v9798_v62  ;;  %5386 = vmatprep.subr.bf16.mxu0 %v9803_v63  ;;  %v9861_v62 = vld [vmem:[#allocation10 + $0xdc8] ss:$16 sps:$4 sm:$0xff]  }
 0x2ff   :  { %5427 = vmatprep.subr.bf16.mxu1 %v9806_v2  ;;  %v9864_v63 = vld [vmem:[#allocation10 + $0xfc8] ss:$16 sps:$4 sm:$0xff]   ;;  %v9869_v2 = vld [vmem:[#allocation10 + $0xdac] ss:$16 sps:$4 sm:$0xff]  }
 0x301   :  { %5387 = vmatpush2.bf16.msra.mxu0 %v9801_v28  ;;  %v9872_v28 = vld [vmem:[#allocation10 + $0xfac] ss:$16 sps:$4 sm:$0xff]  }
 0x302   :  { %5428 = vmatpush2.bf16.msra.mxu1 %v9804_v24  ;;  %5438 = vmatprep.subr.bf16.mxu0 %v9809_v32  ;;  %v9867_v24 = vld [vmem:[#allocation10 + $0xda8] ss:$16 sps:$4 sm:$0xff]  }
 0x303   :  { %5479 = vmatprep.subr.bf16.mxu1 %v9812_v49  ;;  %v9870_v32 = vld [vmem:[#allocation10 + $0xfa8] ss:$16 sps:$4 sm:$0xff]   ;;  %v9875_v49 = vld [vmem:[#allocation10 + $0xd8c] ss:$16 sps:$4 sm:$0xff]  }
 0x304   :  { %v5144_v9 = vpop.f32.mrf.mxu0  ;;  %5389 = vmatmul.mubr.bf16.vlgmr.msra.gmra.mxu0 %v10849_v59 }
 0x305   :  { %v5185_v14 = vpop.f32.mrf.mxu1  ;;  %5430 = vmatmul.mubr.bf16.vlgmr.msra.gmra.mxu1 %v10856_v8  ;;  %v5145_v19 = vadd.f32 %v5144_v9, %v10903_v53  ;;  %5439 = vmatpush1.bf16.msra.mxu0 %v9807_v54  ;;  %v9819_v53 = vld [vmem:[#allocation10 + $0xca8] ss:$16 sps:$4 sm:$0xff]   ;;  %v9878_v54 = vld [vmem:[#allocation10 + $0xf8c] ss:$16 sps:$4 sm:$0xff]  }
 0x306   :  { %5480 = vmatpush1.bf16.msra.mxu1 %v9810_v5  ;;  %v10913_v23 = vpop.f32.mrf.mxu0  ;;  %5440 = vmatprep.subr.bf16.mxu0 %v9815_v6  ;;  %v9873_v5 = vld [vmem:[#allocation10 + $0xd88] ss:$16 sps:$4 sm:$0xff]   ;;  %v9884_v9 = vld [vmem:[#allocation10 + $0xf6c] ss:$16 sps:$4 sm:$0xff]  }
 0x307   :  { %v10915_v25 = vpop.f32.mrf.mxu1  ;;  %5481 = vmatprep.subr.bf16.mxu1 %v9818_v3  ;;  %v10917_v42 = vadd.f32 %v5185_v14, %v5145_v19  ;;  %5470 = vmatprep.mubr.bf16.mxu0 %v10852_v7  ;;  %v9833_v7 = vld [vmem:[#allocation10 + $0xc6c] ss:$16 sps:$4 sm:$0xff]   ;;  %v9876_v6 = vld [vmem:[#allocation10 + $0xf88] ss:$16 sps:$4 sm:$0xff]  }
 0x308   :  { %5511 = vmatprep.mubr.bf16.mxu1 %v10860_v16  ;;  %v5148_v59 = vpop.f32.mrf.mxu0  ;;  %v9836_v16 = vld [vmem:[#allocation10 + $0xe6c] ss:$16 sps:$4 sm:$0xff]   ;;  %v9879_v14 = vld [vmem:[#allocation10 + $0xd68] ss:$16 sps:$4 sm:$0xff]  }
 0x309   :  { %v5189_v8 = vpop.f32.mrf.mxu1  ;;  %5441 = vmatpush1.bf16.msra.mxu0 %v9813_v20  ;;  %v9881_v3 = vld [vmem:[#allocation10 + $0xd6c] ss:$16 sps:$4 sm:$0xff]   ;;  %v9882_v19 = vld [vmem:[#allocation10 + $0xf68] ss:$16 sps:$4 sm:$0xff]  }
 0x30a   :  { %5482 = vmatpush1.bf16.msra.mxu1 %v9816_v40  ;;  %v5149_v31 = vpop.f32.mrf.mxu0  ;;  %5442 = vmatprep.subr.bf16.mxu0 %v9821_v27  ;;  %v9887_v20 = vld [vmem:[#allocation10 + $0xd4c] ss:$16 sps:$4 sm:$0xff]   ;;  %v9885_v27 = vld [vmem:[#allocation10 + $0xd48] ss:$16 sps:$4 sm:$0xff]  }
 0x30b   :  { %v5190_v26 = vpop.f32.mrf.mxu1  ;;  %5483 = vmatprep.subr.bf16.mxu1 %v9824_v29  ;;  %v9890_v40 = vld [vmem:[#allocation10 + $0xf4c] ss:$16 sps:$4 sm:$0xff]   ;;  %v9888_v29 = vld [vmem:[#allocation10 + $0xf48] ss:$16 sps:$4 sm:$0xff]  }
 0x30c   :  { %v9893_v59 = vld [vmem:[#allocation10 + $0xd2c] ss:$16 sps:$4 sm:$0xff]  }
 0x30d   :  { %5443 = vmatpush1.bf16.msra.mxu0 %v9819_v53  ;;  %v9896_v8 = vld [vmem:[#allocation10 + $0xf2c] ss:$16 sps:$4 sm:$0xff]   ;;  %v9891_v53 = vld [vmem:[#allocation10 + $0xd28] ss:$16 sps:$4 sm:$0xff]  }
 0x30e   :  { %5484 = vmatpush1.bf16.msra.mxu1 %v9822_v41  ;;  %5444 = vmatprep.subr.bf16.mxu0 %v9827_v51  ;;  %v9894_v41 = vld [vmem:[#allocation10 + $0xf28] ss:$16 sps:$4 sm:$0xff]   ;;  %v9899_v31 = vld [vmem:[#allocation10 + $0xd0c] ss:$16 sps:$4 sm:$0xff]   ;;  %v5147_v51 = vadd.f32 %v10913_v23, %v10908_v13 }
 0x30f   :  { %5485 = vmatprep.subr.bf16.mxu1 %v9830_v34  ;;  %v9902_v26 = vld [vmem:[#allocation10 + $0xf0c] ss:$16 sps:$4 sm:$0xff]   ;;  %v9897_v34 = vld [vmem:[#allocation10 + $0xd08] ss:$16 sps:$4 sm:$0xff]  }
 0x311   :  { %5445 = vmatpush1.bf16.msra.mxu0 %v9825_v35  ;;  %v9900_v35 = vld [vmem:[#allocation10 + $0xf08] ss:$16 sps:$4 sm:$0xff]  }
 0x312   :  { %5486 = vmatpush1.bf16.msra.mxu1 %v9828_v12  ;;  %5446 = vmatprep.subr.bf16.mxu0 %v9833_v7  ;;  %v9905_v12 = vld [vmem:[#allocation14 + $0xe4] ss:$16 sps:$4 sm:$0xff]   ;;  %v5188_v7 = vadd.f32 %v10915_v25, %v5147_v51  ;;  %v9906_v25 = vld [vmem:[#allocation14 + $0xc0] ss:$16 sps:$4 sm:$0xff]  }
 0x313   :  { %5487 = vmatprep.subr.bf16.mxu1 %v9836_v16  ;;  %v10319_v16 = vld [vmem:[#allocation11] sm:$0xf]  ;;  %v10050_v51 = vld [vmem:[#allocation14 + $0x200] ss:$16 sps:$4 sm:$0xff]  }
 0x314   :  { %v2183_v13 = vrot.slane %v10319_v16, %v10809_v21 }
 0x315   :  { %5447 = vmatpush1.bf16.msra.mxu0 %v9831_v38  ;;  %v2179_v38 = vrot.slane %v10319_v16, %v10806_v15  ;;  %v10058_v16 = vld [vmem:[#allocation14 + $0x3e4] ss:$16 sps:$4 sm:$0xff]  }
 0x316   :  { %5488 = vmatpush1.bf16.msra.mxu1 %v9834_v39  ;;  %5448 = vmatprep.subr.bf16.mxu0 %v9839_v44  ;;  %v9903_v39 = vld [vmem:[#allocation14 + $0xe0] ss:$16 sps:$4 sm:$0xff]   ;;  %v9908_v44 = vld [vmem:[#allocation14 + $0xc4] ss:$16 sps:$4 sm:$0xff]  }
 0x317   :  { %5489 = vmatprep.subr.bf16.mxu1 %v9842_v45  ;;  %v10925_v45 = vpack.c.bf16 %v5188_v7, %v5188_v7  ;;  %v10056_v7 = vld [vmem:[#allocation14 + $0x3e0] ss:$16 sps:$4 sm:$0xff]  }
 0x319   :  { %5449 = vmatpush1.bf16.msra.mxu0 %v9837_v43 }
 0x31a   :  { %5490 = vmatpush1.bf16.msra.mxu1 %v9840_v33  ;;  %5450 = vmatprep.subr.bf16.mxu0 %v9845_v37 }
 0x31b   :  { %5491 = vmatprep.subr.bf16.mxu1 %v9848_v61 }
 0x31d   :  { %5451 = vmatpush1.bf16.msra.mxu0 %v9843_v46  ;;  %v9911_v46 = vld [vmem:[#allocation14 + $0xa4] ss:$16 sps:$4 sm:$0xff]  }
 0x31e   :  { %5492 = vmatpush1.bf16.msra.mxu1 %v9846_v47  ;;  %5452 = vmatprep.subr.bf16.mxu0 %v9851_v48 }
 0x31f   :  { %5493 = vmatprep.subr.bf16.mxu1 %v9854_v50 }
 0x321   :  { %5453 = vmatpush1.bf16.msra.mxu0 %v9849_v52 }
 0x322   :  { %5494 = vmatpush1.bf16.msra.mxu1 %v9852_v4  ;;  %5454 = vmatprep.subr.bf16.mxu0 %v9857_v56 }
 0x323   :  { %5495 = vmatprep.subr.bf16.mxu1 %v9860_v11  ;;  %v9914_v11 = vld [vmem:[#allocation14 + $0x84] ss:$16 sps:$4 sm:$0xff]  }
 0x325   :  { %5455 = vmatpush2.bf16.msra.mxu0 %v9855_v10  ;;  %v10008_v10 = vld [vmem:[#allocation14 + $0x2e0] ss:$16 sps:$4 sm:$0xff]  }
 0x326   :  { %5496 = vmatpush2.bf16.msra.mxu1 %v9858_v57  ;;  %5456 = vmatprep.subr.bf16.mxu0 %v9863_v58  ;;  %v10010_v57 = vld [vmem:[#allocation14 + $0x2e4] ss:$16 sps:$4 sm:$0xff]   ;;  %v9912_v58 = vld [vmem:[#allocation14 + $0x80] ss:$16 sps:$4 sm:$0xff]  }
 0x327   :  { %5497 = vmatprep.subr.bf16.mxu1 %v9866_v60  ;;  %v9917_v60 = vld [vmem:[#allocation14 + $0x64] ss:$16 sps:$4 sm:$0xff]  }
 0x329   :  { %5457 = vmatpush2.bf16.msra.mxu0 %v9861_v62  ;;  %v10014_v62 = vld [vmem:[#allocation14 + $0x2c0] ss:$16 sps:$4 sm:$0xff]  }
 0x32a   :  { %5498 = vmatpush2.bf16.msra.mxu1 %v9864_v63  ;;  %5458 = vmatprep.subr.bf16.mxu0 %v9869_v2  ;;  %v10016_v63 = vld [vmem:[#allocation14 + $0x2c4] ss:$16 sps:$4 sm:$0xff]   ;;  %v9915_v2 = vld [vmem:[#allocation14 + $0x60] ss:$16 sps:$4 sm:$0xff]  }
 0x32b   :  { %5499 = vmatprep.subr.bf16.mxu1 %v9872_v28  ;;  %v9920_v28 = vld [vmem:[#allocation14 + $0x44] ss:$16 sps:$4 sm:$0xff]  }
 0x32d   :  { %5459 = vmatpush2.bf16.msra.mxu0 %v9867_v24  ;;  %v10020_v24 = vld [vmem:[#allocation14 + $0x2a0] ss:$16 sps:$4 sm:$0xff]  }
 0x32e   :  { %5500 = vmatpush2.bf16.msra.mxu1 %v9870_v32  ;;  %5460 = vmatprep.subr.bf16.mxu0 %v9875_v49  ;;  %v10022_v32 = vld [vmem:[#allocation14 + $0x2a4] ss:$16 sps:$4 sm:$0xff]   ;;  %v9918_v49 = vld [vmem:[#allocation14 + $0x40] ss:$16 sps:$4 sm:$0xff]  }
 0x32f   :  { %5501 = vmatprep.subr.bf16.mxu1 %v9878_v54  ;;  %v9923_v54 = vld [vmem:[#allocation14 + $0x24] ss:$16 sps:$4 sm:$0xff]  }
 0x331   :  { %5461 = vmatpush2.bf16.msra.mxu0 %v9873_v5  ;;  %v10026_v5 = vld [vmem:[#allocation14 + $0x280] ss:$16 sps:$4 sm:$0xff]  }
 0x332   :  { %5502 = vmatpush2.bf16.msra.mxu1 %v9876_v6  ;;  %5462 = vmatprep.subr.bf16.mxu0 %v9881_v3  ;;  %v10028_v6 = vld [vmem:[#allocation14 + $0x284] ss:$16 sps:$4 sm:$0xff]   ;;  %v9921_v3 = vld [vmem:[#allocation14 + $0x20] ss:$16 sps:$4 sm:$0xff]  }
 0x333   :  { %5503 = vmatprep.subr.bf16.mxu1 %v9884_v9  ;;  %v9926_v9 = vld [vmem:[#allocation14 + $0x4] ss:$16 sps:$4 sm:$0xff]  }
 0x335   :  { %5463 = vmatpush2.bf16.msra.mxu0 %v9879_v14  ;;  %v10032_v14 = vld [vmem:[#allocation14 + $0x260] ss:$16 sps:$4 sm:$0xff]  }
 0x336   :  { %5504 = vmatpush2.bf16.msra.mxu1 %v9882_v19  ;;  %5464 = vmatprep.subr.bf16.mxu0 %v9887_v20  ;;  %v10034_v19 = vld [vmem:[#allocation14 + $0x264] ss:$16 sps:$4 sm:$0xff]   ;;  %v9924_v20 = vld [vmem:[#allocation14] ss:$16 sps:$4 sm:$0xff]  }
 0x337   :  { %5505 = vmatprep.subr.bf16.mxu1 %v9890_v40  ;;  %v9929_v40 = vld [vmem:[#allocation14 + $0x1e4] ss:$16 sps:$4 sm:$0xff]  }
 0x339   :  { %5465 = vmatpush2.bf16.msra.mxu0 %v9885_v27  ;;  %v10038_v27 = vld [vmem:[#allocation14 + $0x240] ss:$16 sps:$4 sm:$0xff]  }
 0x33a   :  { %5506 = vmatpush2.bf16.msra.mxu1 %v9888_v29  ;;  %5466 = vmatprep.subr.bf16.mxu0 %v9893_v59  ;;  %v10040_v29 = vld [vmem:[#allocation14 + $0x244] ss:$16 sps:$4 sm:$0xff]   ;;  %v9927_v59 = vld [vmem:[#allocation14 + $0x1e0] ss:$16 sps:$4 sm:$0xff]  }
 0x33b   :  { %5507 = vmatprep.subr.bf16.mxu1 %v9896_v8  ;;  %v9932_v8 = vld [vmem:[#allocation14 + $0x1c4] ss:$16 sps:$4 sm:$0xff]  }
 0x33d   :  { %5467 = vmatpush2.bf16.msra.mxu0 %v9891_v53  ;;  %v10044_v53 = vld [vmem:[#allocation14 + $0x220] ss:$16 sps:$4 sm:$0xff]  }
 0x33e   :  { %5508 = vmatpush2.bf16.msra.mxu1 %v9894_v41  ;;  %5468 = vmatprep.subr.bf16.mxu0 %v9899_v31  ;;  %v10046_v41 = vld [vmem:[#allocation14 + $0x224] ss:$16 sps:$4 sm:$0xff]   ;;  %v9930_v31 = vld [vmem:[#allocation14 + $0x1c0] ss:$16 sps:$4 sm:$0xff]  }
 0x33f   :  { %5509 = vmatprep.subr.bf16.mxu1 %v9902_v26  ;;  %v9935_v26 = vld [vmem:[#allocation14 + $0x1a4] ss:$16 sps:$4 sm:$0xff]  }
 0x341   :  { %5469 = vmatpush2.bf16.msra.mxu0 %v9897_v34  ;;  %v10052_v34 = vld [vmem:[#allocation14 + $0x204] ss:$16 sps:$4 sm:$0xff]  }
 0x342   :  { %5510 = vmatpush2.bf16.msra.mxu1 %v9900_v35  ;;  %6424 = vmatprep.subr.bf16.mxu0 %v9905_v12  ;;  %v9933_v35 = vld [vmem:[#allocation14 + $0x1a0] ss:$16 sps:$4 sm:$0xff]   ;;  %v9938_v12 = vld [vmem:[#allocation14 + $0x184] ss:$16 sps:$4 sm:$0xff]  }
 0x343   :  { %6465 = vmatprep.subr.bf16.mxu1 %v10010_v57  ;;  %v10088_v57 = vld [vmem:[#allocation14 + $0x344] ss:$16 sps:$4 sm:$0xff]  }
 0x344   :  { %v5226_v23 = vpop.f32.mrf.mxu0  ;;  %5471 = vmatmul.mubr.bf16.vlgmr.msra.gmra.mxu0 %v10874_v55  ;;  %v9909_v55 = vld [vmem:[#allocation14 + $0xa0] ss:$16 sps:$4 sm:$0xff]  }
 0x345   :  { %v5267_v43 = vpop.f32.mrf.mxu1  ;;  %5512 = vmatmul.mubr.bf16.vlgmr.msra.gmra.mxu1 %v10878_v1  ;;  %v5227_v33 = vadd.f32 %v5226_v23, %v2179_v38  ;;  %6425 = vmatpush1.bf16.msra.mxu0 %v9903_v39  ;;  %v9936_v38 = vld [vmem:[#allocation14 + $0x180] ss:$16 sps:$4 sm:$0xff]   ;;  %v9941_v39 = vld [vmem:[#allocation14 + $0x164] ss:$16 sps:$4 sm:$0xff]  }
 0x346   :  { %6456 = vmatprep.mubr.bf16.mxu0 %v10925_v45  ;;  %v5228_v37 = vpop.f32.mrf.mxu0  ;;  %6426 = vmatprep.subr.bf16.mxu0 %v9908_v44  ;;  %v10062_v44 = vld [vmem:[#allocation14 + $0x3c0] ss:$16 sps:$4 sm:$0xff]  }
 0x347   :  { %v5269_v61 = vpop.f32.mrf.mxu1  ;;  %v10931_v47 = vadd.f32 %v5267_v43, %v5227_v33  ;;  %v5229_v48 = vadd.f32 %v5228_v37, %v2183_v13  ;;  %6466 = vmatpush1.bf16.msra.mxu1 %v10008_v10  ;;  %v10064_v13 = vld [vmem:[#allocation14 + $0x3c4] ss:$16 sps:$4 sm:$0xff]   ;;  %v9939_v23 = vld [vmem:[#allocation14 + $0x160] ss:$16 sps:$4 sm:$0xff]  }
 0x348   :  { %v5230_v50 = vpop.f32.mrf.mxu0  ;;  %6467 = vmatprep.subr.bf16.mxu1 %v10016_v63  ;;  %v9944_v43 = vld [vmem:[#allocation14 + $0x144] ss:$16 sps:$4 sm:$0xff]   ;;  %v10068_v33 = vld [vmem:[#allocation14 + $0x3a0] ss:$16 sps:$4 sm:$0xff]  }
 0x349   :  { %v5271_v52 = vpop.f32.mrf.mxu1  ;;  %v10933_v4 = vadd.f32 %v5269_v61, %v5229_v48  ;;  %6427 = vmatpush1.bf16.msra.mxu0 %v9906_v25  ;;  %v10070_v25 = vld [vmem:[#allocation14 + $0x3a4] ss:$16 sps:$4 sm:$0xff]   ;;  %v9942_v37 = vld [vmem:[#allocation14 + $0x140] ss:$16 sps:$4 sm:$0xff]  }
 0x34a   :  { %v5231_v56 = vpop.f32.mrf.mxu0  ;;  %6428 = vmatprep.subr.bf16.mxu0 %v9911_v46  ;;  %v9947_v61 = vld [vmem:[#allocation14 + $0x124] ss:$16 sps:$4 sm:$0xff]   ;;  %v10074_v46 = vld [vmem:[#allocation14 + $0x380] ss:$16 sps:$4 sm:$0xff]  }
 0x34b   :  { %v5272_v1 = vpop.f32.mrf.mxu1  ;;  %6468 = vmatpush1.bf16.msra.mxu1 %v10014_v62  ;;  %v10076_v48 = vld [vmem:[#allocation14 + $0x384] ss:$16 sps:$4 sm:$0xff]   ;;  %v9945_v50 = vld [vmem:[#allocation14 + $0x120] ss:$16 sps:$4 sm:$0xff]   ;;  %v9956_v62 = vld [vmem:[#allocation14 + $0xcc] ss:$16 sps:$4 sm:$0xff]  }
 0x34c   :  { %6469 = vmatprep.subr.bf16.mxu1 %v10022_v32  ;;  %v9950_v52 = vld [vmem:[#allocation14 + $0x104] ss:$16 sps:$4 sm:$0xff]   ;;  %v9948_v1 = vld [vmem:[#allocation14 + $0x100] ss:$16 sps:$4 sm:$0xff]  }
 0x34d   :  { %6429 = vmatpush1.bf16.msra.mxu0 %v9909_v55  ;;  %v10080_v55 = vld [vmem:[#allocation14 + $0x360] ss:$16 sps:$4 sm:$0xff]   ;;  %v10082_v56 = vld [vmem:[#allocation14 + $0x364] ss:$16 sps:$4 sm:$0xff]  }
 0x34e   :  { %6430 = vmatprep.subr.bf16.mxu0 %v9914_v11  ;;  %v9953_v11 = vld [vmem:[#allocation14 + $0xec] ss:$16 sps:$4 sm:$0xff]   ;;  %v10086_v10 = vld [vmem:[#allocation14 + $0x340] ss:$16 sps:$4 sm:$0xff]   ;;  %v10094_v63 = vld [vmem:[#allocation14 + $0x324] ss:$16 sps:$4 sm:$0xff]  }
 0x34f   :  { %6470 = vmatpush1.bf16.msra.mxu1 %v10020_v24  ;;  %v10092_v24 = vld [vmem:[#allocation14 + $0x320] ss:$16 sps:$4 sm:$0xff]  }
 0x350   :  { %6471 = vmatprep.subr.bf16.mxu1 %v10028_v6 }
 0x351   :  { %6431 = vmatpush1.bf16.msra.mxu0 %v9912_v58  ;;  %v9951_v58 = vld [vmem:[#allocation14 + $0xe8] ss:$16 sps:$4 sm:$0xff]  }
 0x352   :  { %6432 = vmatprep.subr.bf16.mxu0 %v9917_v60  ;;  %v10937_v60 = vpack.c.bf16 %v10917_v42, %v10917_v42  ;;  %v9959_v42 = vld [vmem:[#allocation14 + $0xac] ss:$16 sps:$4 sm:$0xff]  }
 0x353   :  { %6472 = vmatpush1.bf16.msra.mxu1 %v10026_v5 }
 0x354   :  { %6473 = vmatprep.subr.bf16.mxu1 %v10034_v19 }
 0x355   :  { %6433 = vmatpush1.bf16.msra.mxu0 %v9915_v2 }
 0x356   :  { %6434 = vmatprep.subr.bf16.mxu0 %v9920_v28 }
 0x357   :  { %6474 = vmatpush1.bf16.msra.mxu1 %v10032_v14 }
 0x358   :  { %6475 = vmatprep.subr.bf16.mxu1 %v10040_v29  ;;  %v9962_v29 = vld [vmem:[#allocation14 + $0x8c] ss:$16 sps:$4 sm:$0xff]  }
 0x359   :  { %6435 = vmatpush1.bf16.msra.mxu0 %v9918_v49  ;;  %v9954_v49 = vld [vmem:[#allocation14 + $0xc8] ss:$16 sps:$4 sm:$0xff]  }
 0x35a   :  { %6436 = vmatprep.subr.bf16.mxu0 %v9923_v54 }
 0x35b   :  { %6476 = vmatpush1.bf16.msra.mxu1 %v10038_v27 }
 0x35c   :  { %6477 = vmatprep.subr.bf16.mxu1 %v10046_v41  ;;  %v9968_v41 = vld [vmem:[#allocation14 + $0x4c] ss:$16 sps:$4 sm:$0xff]  }
 0x35d   :  { %6437 = vmatpush1.bf16.msra.mxu0 %v9921_v3 }
 0x35e   :  { %6438 = vmatprep.subr.bf16.mxu0 %v9926_v9  ;;  %v10100_v9 = vld [vmem:[#allocation14 + $0x304] ss:$16 sps:$4 sm:$0xff]  }
 0x35f   :  { %6478 = vmatpush1.bf16.msra.mxu1 %v10044_v53  ;;  %v9963_v53 = vld [vmem:[#allocation14 + $0x68] ss:$16 sps:$4 sm:$0xff]  }
 0x360   :  { %6479 = vmatprep.subr.bf16.mxu1 %v10052_v34  ;;  %v9974_v34 = vld [vmem:[#allocation14 + $0xc] ss:$16 sps:$4 sm:$0xff]  }
 0x361   :  { %6439 = vmatpush1.bf16.msra.mxu0 %v9924_v20  ;;  %v10098_v20 = vld [vmem:[#allocation14 + $0x300] ss:$16 sps:$4 sm:$0xff]  }
 0x362   :  { %6440 = vmatprep.subr.bf16.mxu0 %v9929_v40 }
 0x363   :  { %6480 = vmatpush1.bf16.msra.mxu1 %v10050_v51  ;;  %v9969_v51 = vld [vmem:[#allocation14 + $0x28] ss:$16 sps:$4 sm:$0xff]  }
 0x364   :  { %6481 = vmatprep.subr.bf16.mxu1 %v10058_v16  ;;  %v9980_v16 = vld [vmem:[#allocation14 + $0x1cc] ss:$16 sps:$4 sm:$0xff]  }
 0x365   :  { %6441 = vmatpush2.bf16.msra.mxu0 %v9927_v59  ;;  %v10106_v59 = vld [vmem:[#allocation14 + $0x2ec] ss:$16 sps:$4 sm:$0xff]  }
 0x366   :  { %6442 = vmatprep.subr.bf16.mxu0 %v9932_v8  ;;  %v9960_v8 = vld [vmem:[#allocation14 + $0x88] ss:$16 sps:$4 sm:$0xff]  }
 0x367   :  { %6482 = vmatpush2.bf16.msra.mxu1 %v10056_v7  ;;  %v9975_v7 = vld [vmem:[#allocation14 + $0x1e8] ss:$16 sps:$4 sm:$0xff]  }
 0x368   :  { %6483 = vmatprep.subr.bf16.mxu1 %v10064_v13  ;;  %v9986_v13 = vld [vmem:[#allocation14 + $0x18c] ss:$16 sps:$4 sm:$0xff]  }
 0x369   :  { %6443 = vmatpush2.bf16.msra.mxu0 %v9930_v31  ;;  %v9966_v31 = vld [vmem:[#allocation14 + $0x48] ss:$16 sps:$4 sm:$0xff]  }
 0x36a   :  { %6444 = vmatprep.subr.bf16.mxu0 %v9935_v26  ;;  %v9971_v26 = vld [vmem:[#allocation14 + $0x2c] ss:$16 sps:$4 sm:$0xff]  }
 0x36b   :  { %6484 = vmatpush2.bf16.msra.mxu1 %v10062_v44  ;;  %v9981_v44 = vld [vmem:[#allocation14 + $0x1a8] ss:$16 sps:$4 sm:$0xff]  }
 0x36c   :  { %6485 = vmatprep.subr.bf16.mxu1 %v10070_v25  ;;  %v9992_v25 = vld [vmem:[#allocation14 + $0x14c] ss:$16 sps:$4 sm:$0xff]  }
 0x36d   :  { %6445 = vmatpush2.bf16.msra.mxu0 %v9933_v35  ;;  %v9972_v35 = vld [vmem:[#allocation14 + $0x8] ss:$16 sps:$4 sm:$0xff]  }
 0x36e   :  { %6446 = vmatprep.subr.bf16.mxu0 %v9938_v12  ;;  %v9977_v12 = vld [vmem:[#allocation14 + $0x1ec] ss:$16 sps:$4 sm:$0xff]  }
 0x36f   :  { %6486 = vmatpush2.bf16.msra.mxu1 %v10068_v33  ;;  %v9987_v33 = vld [vmem:[#allocation14 + $0x168] ss:$16 sps:$4 sm:$0xff]  }
 0x370   :  { %6487 = vmatprep.subr.bf16.mxu1 %v10076_v48  ;;  %v9998_v48 = vld [vmem:[#allocation14 + $0x10c] ss:$16 sps:$4 sm:$0xff]  }
 0x371   :  { %6447 = vmatpush2.bf16.msra.mxu0 %v9936_v38  ;;  %v9978_v38 = vld [vmem:[#allocation14 + $0x1c8] ss:$16 sps:$4 sm:$0xff]  }
 0x372   :  { %6448 = vmatprep.subr.bf16.mxu0 %v9941_v39  ;;  %v9983_v39 = vld [vmem:[#allocation14 + $0x1ac] ss:$16 sps:$4 sm:$0xff]  }
 0x373   :  { %6488 = vmatpush2.bf16.msra.mxu1 %v10074_v46  ;;  %v9993_v46 = vld [vmem:[#allocation14 + $0x128] ss:$16 sps:$4 sm:$0xff]  }
 0x374   :  { %6489 = vmatprep.subr.bf16.mxu1 %v10082_v56  ;;  %v10004_v56 = vld [vmem:[#allocation13 + $0xc4] ss:$16 sps:$4 sm:$0xff]  }
 0x375   :  { %6449 = vmatpush2.bf16.msra.mxu0 %v9939_v23  ;;  %v9984_v23 = vld [vmem:[#allocation14 + $0x188] ss:$16 sps:$4 sm:$0xff]  }
 0x376   :  { %6450 = vmatprep.subr.bf16.mxu0 %v9944_v43  ;;  %v9989_v43 = vld [vmem:[#allocation14 + $0x16c] ss:$16 sps:$4 sm:$0xff]  }
 0x377   :  { %6490 = vmatpush2.bf16.msra.mxu1 %v10080_v55  ;;  %v9999_v55 = vld [vmem:[#allocation13 + $0xe0] ss:$16 sps:$4 sm:$0xff]  }
 0x378   :  { %6491 = vmatprep.subr.bf16.mxu1 %v10088_v57 }
 0x379   :  { %6451 = vmatpush2.bf16.msra.mxu0 %v9942_v37  ;;  %v9990_v37 = vld [vmem:[#allocation14 + $0x148] ss:$16 sps:$4 sm:$0xff]  }
 0x37a   :  { %6452 = vmatprep.subr.bf16.mxu0 %v9947_v61  ;;  %v9995_v61 = vld [vmem:[#allocation14 + $0x12c] ss:$16 sps:$4 sm:$0xff]  }
 0x37b   :  { %6492 = vmatpush2.bf16.msra.mxu1 %v10086_v10 }
 0x37c   :  { %6493 = vmatprep.subr.bf16.mxu1 %v10094_v63 }
 0x37d   :  { %6453 = vmatpush2.bf16.msra.mxu0 %v9945_v50  ;;  %v9996_v50 = vld [vmem:[#allocation14 + $0x108] ss:$16 sps:$4 sm:$0xff]  }
 0x37e   :  { %6454 = vmatprep.subr.bf16.mxu0 %v9950_v52  ;;  %v10001_v52 = vld [vmem:[#allocation13 + $0xe4] ss:$16 sps:$4 sm:$0xff]  }
 0x37f   :  { %6494 = vmatpush2.bf16.msra.mxu1 %v10092_v24 }
 0x380   :  { %6495 = vmatprep.subr.bf16.mxu1 %v10100_v9  ;;  %v10023_v9 = vld [vmem:[#allocation13 + $0x40] ss:$16 sps:$4 sm:$0xff]  }
 0x381   :  { %6455 = vmatpush2.bf16.msra.mxu0 %v9948_v1  ;;  %v10949_v1 = vpack.c.bf16 %v10834_v22, %v10834_v22 }
 0x382   :  { %6506 = vmatprep.subr.bf16.mxu0 %v9953_v11 }
 0x383   :  { %6496 = vmatpush2.bf16.msra.mxu1 %v10098_v20  ;;  %v10037_v20 = vld [vmem:[#allocation13 + $0x4] ss:$16 sps:$4 sm:$0xff]  }
 0x384   :  { %v5308_v2 = vpop.f32.mrf.mxu0  ;;  %6457 = vmatmul.mubr.bf16.vlgmr.msra.gmra.mxu0 %v10937_v60  ;;  %6547 = vmatprep.subr.bf16.mxu1 %v10106_v59  ;;  %v10047_v59 = vld [vmem:[#allocation13 + $0x1c0] ss:$16 sps:$4 sm:$0xff]  }
 0x385   :  { %v5349_v28 = vpop.f32.mrf.mxu1  ;;  %v5309_v32 = vadd.f32 %v5308_v2, %v10931_v47  ;;  %6507 = vmatpush1.bf16.msra.mxu0 %v9951_v58  ;;  %6538 = vmatprep.mubr.bf16.mxu0 %v10925_v45  ;;  %v9957_v47 = vld [vmem:[#allocation14 + $0xa8] ss:$16 sps:$4 sm:$0xff]   ;;  %v10002_v58 = vld [vmem:[#allocation13 + $0xc0] ss:$16 sps:$4 sm:$0xff]   ;;  %v10007_v2 = vld [vmem:[#allocation13 + $0xa4] ss:$16 sps:$4 sm:$0xff]  }
 0x386   :  { %v5310_v54 = vpop.f32.mrf.mxu0  ;;  %6508 = vmatprep.subr.bf16.mxu0 %v9956_v62 }
 0x387   :  { %v5351_v5 = vpop.f32.mrf.mxu1  ;;  %v10942_v6 = vadd.f32 %v5349_v28, %v5309_v32  ;;  %v5311_v3 = vadd.f32 %v5310_v54, %v10933_v4  ;;  %v9965_v4 = vld [vmem:[#allocation14 + $0x6c] ss:$16 sps:$4 sm:$0xff]   ;;  %v10005_v32 = vld [vmem:[#allocation13 + $0xa0] ss:$16 sps:$4 sm:$0xff]   ;;  %v10013_v54 = vld [vmem:[#allocation13 + $0x84] ss:$16 sps:$4 sm:$0xff]  }
 0x388   :  { %v5312_v14 = vpop.f32.mrf.mxu0 }
 0x389   :  { %v5353_v19 = vpop.f32.mrf.mxu1  ;;  %v10945_v40 = vadd.f32 %v5351_v5, %v5311_v3  ;;  %6509 = vmatpush1.bf16.msra.mxu0 %v9954_v49  ;;  %v10011_v5 = vld [vmem:[#allocation13 + $0x80] ss:$16 sps:$4 sm:$0xff]   ;;  %v10025_v3 = vld [vmem:[#allocation13 + $0x44] ss:$16 sps:$4 sm:$0xff]  }
 0x38a   :  { %v5313_v45 = vpop.f32.mrf.mxu0  ;;  %6510 = vmatprep.subr.bf16.mxu0 %v9959_v42  ;;  %v10019_v42 = vld [vmem:[#allocation13 + $0x64] ss:$16 sps:$4 sm:$0xff]   ;;  %v10029_v19 = vld [vmem:[#allocation13 + $0x20] ss:$16 sps:$4 sm:$0xff]  }
 0x38b   :  { %v5354_v27 = vpop.f32.mrf.mxu1  ;;  %v10031_v14 = vld [vmem:[#allocation13 + $0x24] ss:$16 sps:$4 sm:$0xff]  }
 0x38c   :  { %v10043_v45 = vld [vmem:[#allocation13 + $0x1e4] ss:$16 sps:$4 sm:$0xff]   ;;  %v10041_v27 = vld [vmem:[#allocation13 + $0x1e0] ss:$16 sps:$4 sm:$0xff]  }
 0x38d   :  { %6511 = vmatpush1.bf16.msra.mxu0 %v9957_v47  ;;  %v10035_v47 = vld [vmem:[#allocation13] ss:$16 sps:$4 sm:$0xff]  }
 0x38e   :  { %6512 = vmatprep.subr.bf16.mxu0 %v9962_v29  ;;  %v10049_v29 = vld [vmem:[#allocation13 + $0x1c4] ss:$16 sps:$4 sm:$0xff]  }
 0x391   :  { %6513 = vmatpush1.bf16.msra.mxu0 %v9960_v8  ;;  %v10055_v8 = vld [vmem:[#allocation13 + $0x1a4] ss:$16 sps:$4 sm:$0xff]  }
 0x392   :  { %6514 = vmatprep.subr.bf16.mxu0 %v9965_v4  ;;  %v10053_v4 = vld [vmem:[#allocation13 + $0x1a0] ss:$16 sps:$4 sm:$0xff]  }
 0x395   :  { %6515 = vmatpush1.bf16.msra.mxu0 %v9963_v53  ;;  %v10061_v53 = vld [vmem:[#allocation13 + $0x184] ss:$16 sps:$4 sm:$0xff]  }
 0x396   :  { %6516 = vmatprep.subr.bf16.mxu0 %v9968_v41  ;;  %v10059_v41 = vld [vmem:[#allocation13 + $0x180] ss:$16 sps:$4 sm:$0xff]  }
 0x399   :  { %6517 = vmatpush1.bf16.msra.mxu0 %v9966_v31  ;;  %v10067_v31 = vld [vmem:[#allocation13 + $0x164] ss:$16 sps:$4 sm:$0xff]  }
 0x39a   :  { %6518 = vmatprep.subr.bf16.mxu0 %v9971_v26  ;;  %v10065_v26 = vld [vmem:[#allocation13 + $0x160] ss:$16 sps:$4 sm:$0xff]  }
 0x39d   :  { %6519 = vmatpush1.bf16.msra.mxu0 %v9969_v51  ;;  %v10073_v51 = vld [vmem:[#allocation13 + $0x144] ss:$16 sps:$4 sm:$0xff]  }
 0x39e   :  { %6520 = vmatprep.subr.bf16.mxu0 %v9974_v34  ;;  %v10071_v34 = vld [vmem:[#allocation13 + $0x140] ss:$16 sps:$4 sm:$0xff]  }
 0x3a1   :  { %6521 = vmatpush1.bf16.msra.mxu0 %v9972_v35  ;;  %v10079_v35 = vld [vmem:[#allocation13 + $0x124] ss:$16 sps:$4 sm:$0xff]  }
 0x3a2   :  { %6522 = vmatprep.subr.bf16.mxu0 %v9977_v12  ;;  %v10077_v12 = vld [vmem:[#allocation13 + $0x120] ss:$16 sps:$4 sm:$0xff]  }
 0x3a5   :  { %6523 = vmatpush2.bf16.msra.mxu0 %v9975_v7  ;;  %v10085_v7 = vld [vmem:[#allocation13 + $0x104] ss:$16 sps:$4 sm:$0xff]  }
 0x3a6   :  { %6524 = vmatprep.subr.bf16.mxu0 %v9980_v16  ;;  %v10083_v16 = vld [vmem:[#allocation13 + $0x100] ss:$16 sps:$4 sm:$0xff]  }
 0x3a9   :  { %6525 = vmatpush2.bf16.msra.mxu0 %v9978_v38  ;;  %v10091_v38 = vld [vmem:[#allocation13 + $0xec] ss:$16 sps:$4 sm:$0xff]  }
 0x3aa   :  { %6526 = vmatprep.subr.bf16.mxu0 %v9983_v39 }
 0x3ad   :  { %6527 = vmatpush2.bf16.msra.mxu0 %v9981_v44  ;;  %v10089_v44 = vld [vmem:[#allocation13 + $0xe8] ss:$16 sps:$4 sm:$0xff]  }
 0x3ae   :  { %6528 = vmatprep.subr.bf16.mxu0 %v9986_v13  ;;  %v10964_v13 = vpack.c.bf16 %v10829_v36, %v10829_v36 }
 0x3b1   :  { %6529 = vmatpush2.bf16.msra.mxu0 %v9984_v23  ;;  %v10097_v23 = vld [vmem:[#allocation13 + $0xcc] ss:$16 sps:$4 sm:$0xff]  }
 0x3b2   :  { %6530 = vmatprep.subr.bf16.mxu0 %v9989_v43 }
 0x3b5   :  { %6531 = vmatpush2.bf16.msra.mxu0 %v9987_v33 }
 0x3b6   :  { %6532 = vmatprep.subr.bf16.mxu0 %v9992_v25 }
 0x3b9   :  { %6533 = vmatpush2.bf16.msra.mxu0 %v9990_v37 }
 0x3ba   :  { %6534 = vmatprep.subr.bf16.mxu0 %v9995_v61 }
 0x3bd   :  { %6535 = vmatpush2.bf16.msra.mxu0 %v9993_v46 }
 0x3be   :  { %6536 = vmatprep.subr.bf16.mxu0 %v9998_v48  ;;  %v10103_v48 = vld [vmem:[#allocation13 + $0xac] ss:$16 sps:$4 sm:$0xff]  }
 0x3c1   :  { %6537 = vmatpush2.bf16.msra.mxu0 %v9996_v50 }
 0x3c2   :  { %7228 = vmatprep.subr.bf16.mxu0 %v10001_v52 }
 0x3c4   :  { %v5390_v11 = vpop.f32.mrf.mxu0  ;;  %6539 = vmatmul.mubr.bf16.vlgmr.msra.gmra.mxu0 %v10937_v60 }
 0x3c5   :  { %v5431_v10 = vpop.f32.mrf.mxu1  ;;  %v5391_v57 = vadd.f32 %v5390_v11, %v10942_v6  ;;  %7229 = vmatpush1.bf16.msra.mxu0 %v9999_v55  ;;  %7260 = vmatprep.mubr.bf16.mxu0 %v10949_v1  ;;  %v10017_v6 = vld [vmem:[#allocation13 + $0x60] ss:$16 sps:$4 sm:$0xff]   ;;  %v10101_v11 = vld [vmem:[#allocation13 + $0xa8] ss:$16 sps:$4 sm:$0xff]  }
 0x3c6   :  { %v10954_v62 = vpop.f32.mrf.mxu0  ;;  %7230 = vmatprep.subr.bf16.mxu0 %v10004_v56 }
 0x3c7   :  { %v10956_v63 = vpop.f32.mrf.mxu1  ;;  %v10958_v28 = vadd.f32 %v5431_v10, %v5391_v57  ;;  %v5393_v39 = vadd.f32 %v10954_v62, %v10945_v40  ;;  %v10095_v40 = vld [vmem:[#allocation13 + $0xc8] ss:$16 sps:$4 sm:$0xff]  }
 0x3c8   :  { %v5394_v22 = vpop.f32.mrf.mxu0 }
 0x3c9   :  { %v5435_v24 = vpop.f32.mrf.mxu1  ;;  %7231 = vmatpush1.bf16.msra.mxu0 %v10002_v58  ;;  %v5434_v25 = vadd.f32 %v10956_v63, %v5393_v39  ;;  %v10109_v58 = vld [vmem:[#allocation13 + $0x8c] ss:$16 sps:$4 sm:$0xff]   ;;  %v10104_v63 = vld [vmem:[#allocation14 + $0x2e8] ss:$16 sps:$4 sm:$0xff]  }
 0x3ca   :  { %v5395_v49 = vpop.f32.mrf.mxu0  ;;  %7232 = vmatprep.subr.bf16.mxu0 %v10007_v2  ;;  %v10115_v22 = vld [vmem:[#allocation13 + $0x6c] ss:$16 sps:$4 sm:$0xff]   ;;  %v10110_v24 = vld [vmem:[#allocation14 + $0x2c8] ss:$16 sps:$4 sm:$0xff]  }
 0x3cb   :  { %v5436_v60 = vpop.f32.mrf.mxu1  ;;  %v10113_v49 = vld [vmem:[#allocation13 + $0x68] ss:$16 sps:$4 sm:$0xff]   ;;  %v10163_v39 = vld [vmem:[#allocation13 + $0x16c] ss:$16 sps:$4 sm:$0xff]  }
 0x3cc   :  { %v10121_v60 = vld [vmem:[#allocation13 + $0x4c] ss:$16 sps:$4 sm:$0xff]  }
 0x3cd   :  { %7233 = vmatpush1.bf16.msra.mxu0 %v10005_v32  ;;  %v10118_v32 = vld [vmem:[#allocation14 + $0x2ac] ss:$16 sps:$4 sm:$0xff]  }
 0x3ce   :  { %7234 = vmatprep.subr.bf16.mxu0 %v10013_v54  ;;  %v10116_v54 = vld [vmem:[#allocation14 + $0x2a8] ss:$16 sps:$4 sm:$0xff]  }
 0x3d1   :  { %7235 = vmatpush1.bf16.msra.mxu0 %v10011_v5  ;;  %v10124_v5 = vld [vmem:[#allocation14 + $0x28c] ss:$16 sps:$4 sm:$0xff]  }
 0x3d2   :  { %7236 = vmatprep.subr.bf16.mxu0 %v10019_v42  ;;  %v10119_v42 = vld [vmem:[#allocation13 + $0x48] ss:$16 sps:$4 sm:$0xff]  }
 0x3d5   :  { %7237 = vmatpush1.bf16.msra.mxu0 %v10017_v6  ;;  %v10127_v6 = vld [vmem:[#allocation13 + $0x2c] ss:$16 sps:$4 sm:$0xff]  }
 0x3d6   :  { %7238 = vmatprep.subr.bf16.mxu0 %v10025_v3  ;;  %v10122_v3 = vld [vmem:[#allocation14 + $0x288] ss:$16 sps:$4 sm:$0xff]  }
 0x3d9   :  { %7239 = vmatpush1.bf16.msra.mxu0 %v10023_v9  ;;  %v10130_v9 = vld [vmem:[#allocation14 + $0x26c] ss:$16 sps:$4 sm:$0xff]  }
 0x3da   :  { %7240 = vmatprep.subr.bf16.mxu0 %v10031_v14  ;;  %v10125_v14 = vld [vmem:[#allocation13 + $0x28] ss:$16 sps:$4 sm:$0xff]  }
 0x3dd   :  { %7241 = vmatpush1.bf16.msra.mxu0 %v10029_v19  ;;  %v10133_v19 = vld [vmem:[#allocation13 + $0xc] ss:$16 sps:$4 sm:$0xff]  }
 0x3de   :  { %7242 = vmatprep.subr.bf16.mxu0 %v10037_v20  ;;  %v10128_v20 = vld [vmem:[#allocation14 + $0x268] ss:$16 sps:$4 sm:$0xff]  }
 0x3e1   :  { %7243 = vmatpush1.bf16.msra.mxu0 %v10035_v47  ;;  %v10136_v47 = vld [vmem:[#allocation14 + $0x24c] ss:$16 sps:$4 sm:$0xff]  }
 0x3e2   :  { %7244 = vmatprep.subr.bf16.mxu0 %v10043_v45  ;;  %v10131_v45 = vld [vmem:[#allocation13 + $0x8] ss:$16 sps:$4 sm:$0xff]  }
 0x3e5   :  { %7245 = vmatpush2.bf16.msra.mxu0 %v10041_v27  ;;  %v10139_v27 = vld [vmem:[#allocation13 + $0x1ec] ss:$16 sps:$4 sm:$0xff]  }
 0x3e6   :  { %7246 = vmatprep.subr.bf16.mxu0 %v10049_v29  ;;  %v10134_v29 = vld [vmem:[#allocation14 + $0x248] ss:$16 sps:$4 sm:$0xff]  }
 0x3e9   :  { %7247 = vmatpush2.bf16.msra.mxu0 %v10047_v59  ;;  %v10142_v59 = vld [vmem:[#allocation14 + $0x22c] ss:$16 sps:$4 sm:$0xff]  }
 0x3ea   :  { %7248 = vmatprep.subr.bf16.mxu0 %v10055_v8  ;;  %v10137_v8 = vld [vmem:[#allocation13 + $0x1e8] ss:$16 sps:$4 sm:$0xff]  }
 0x3ed   :  { %7249 = vmatpush2.bf16.msra.mxu0 %v10053_v4  ;;  %v10145_v4 = vld [vmem:[#allocation13 + $0x1cc] ss:$16 sps:$4 sm:$0xff]  }
 0x3ee   :  { %7250 = vmatprep.subr.bf16.mxu0 %v10061_v53  ;;  %v10140_v53 = vld [vmem:[#allocation14 + $0x228] ss:$16 sps:$4 sm:$0xff]  }
 0x3f1   :  { %7251 = vmatpush2.bf16.msra.mxu0 %v10059_v41  ;;  %v10148_v41 = vld [vmem:[#allocation14 + $0x20c] ss:$16 sps:$4 sm:$0xff]  }
 0x3f2   :  { %7252 = vmatprep.subr.bf16.mxu0 %v10067_v31  ;;  %v10143_v31 = vld [vmem:[#allocation13 + $0x1c8] ss:$16 sps:$4 sm:$0xff]  }
 0x3f5   :  { %7253 = vmatpush2.bf16.msra.mxu0 %v10065_v26  ;;  %v10151_v26 = vld [vmem:[#allocation13 + $0x1ac] ss:$16 sps:$4 sm:$0xff]  }
 0x3f6   :  { %7254 = vmatprep.subr.bf16.mxu0 %v10073_v51  ;;  %v10146_v51 = vld [vmem:[#allocation14 + $0x208] ss:$16 sps:$4 sm:$0xff]  }
 0x3f9   :  { %7255 = vmatpush2.bf16.msra.mxu0 %v10071_v34  ;;  %v10154_v34 = vld [vmem:[#allocation14 + $0x3ec] ss:$16 sps:$4 sm:$0xff]  }
 0x3fa   :  { %7256 = vmatprep.subr.bf16.mxu0 %v10079_v35  ;;  %v10149_v35 = vld [vmem:[#allocation13 + $0x1a8] ss:$16 sps:$4 sm:$0xff]  }
 0x3fd   :  { %7257 = vmatpush2.bf16.msra.mxu0 %v10077_v12  ;;  %v10157_v12 = vld [vmem:[#allocation13 + $0x18c] ss:$16 sps:$4 sm:$0xff]  }
 0x3fe   :  { %7258 = vmatprep.subr.bf16.mxu0 %v10085_v7  ;;  %v10152_v7 = vld [vmem:[#allocation14 + $0x3e8] ss:$16 sps:$4 sm:$0xff]  }
 0x401   :  { %7259 = vmatpush2.bf16.msra.mxu0 %v10083_v16  ;;  %v10160_v16 = vld [vmem:[#allocation14 + $0x3cc] ss:$16 sps:$4 sm:$0xff]  }
 0x402   :  { %7310 = vmatprep.subr.bf16.mxu0 %v10091_v38  ;;  %v10155_v38 = vld [vmem:[#allocation13 + $0x188] ss:$16 sps:$4 sm:$0xff]  }
 0x404   :  { %v5472_v43 = vpop.f32.mrf.mxu0  ;;  %7261 = vmatmul.mubr.bf16.vlgmr.msra.gmra.mxu0 %v10964_v13 }
 0x405   :  { %v5513_v33 = vpop.f32.mrf.mxu1  ;;  %v5473_v37 = vadd.f32 %v5472_v43, %v10958_v28  ;;  %7311 = vmatpush1.bf16.msra.mxu0 %v10089_v44  ;;  %7342 = vmatprep.mubr.bf16.mxu0 %v10949_v1  ;;  %v10112_v1 = vld [vmem:[#allocation14 + $0x2cc] ss:$16 sps:$4 sm:$0xff]   ;;  %v10107_v28 = vld [vmem:[#allocation13 + $0x88] ss:$16 sps:$4 sm:$0xff]  }
 0x406   :  { %v5474_v61 = vpop.f32.mrf.mxu0  ;;  %7312 = vmatprep.subr.bf16.mxu0 %v10097_v23  ;;  %v10158_v44 = vld [vmem:[#allocation14 + $0x3c8] ss:$16 sps:$4 sm:$0xff]   ;;  %v10166_v23 = vld [vmem:[#allocation14 + $0x3ac] ss:$16 sps:$4 sm:$0xff]  }
 0x407   :  { %v5515_v46 = vpop.f32.mrf.mxu1  ;;  %v5475_v36 = vadd.f32 %v5474_v61, %v5434_v25  ;;  %v5514_v50 = vadd.f32 %v5513_v33, %v5473_v37  ;;  %v10161_v43 = vld [vmem:[#allocation13 + $0x168] ss:$16 sps:$4 sm:$0xff]   ;;  %v10169_v33 = vld [vmem:[#allocation13 + $0x14c] ss:$16 sps:$4 sm:$0xff]  }
 0x408   :  { %v5476_v52 = vpop.f32.mrf.mxu0  ;;  %v10164_v25 = vld [vmem:[#allocation14 + $0x3a8] ss:$16 sps:$4 sm:$0xff]   ;;  %v10172_v37 = vld [vmem:[#allocation14 + $0x38c] ss:$16 sps:$4 sm:$0xff]  }
 0x409   :  { %v5517_v55 = vpop.f32.mrf.mxu1  ;;  %v5516_v56 = vadd.f32 %v5515_v46, %v5475_v36  ;;  %7313 = vmatpush1.bf16.msra.mxu0 %v10095_v40  ;;  %v10970_v2 = vpack.c.bf16 %v5514_v50, %v5514_v50  ;;  %v10167_v40 = vld [vmem:[#allocation13 + $0x148] ss:$16 sps:$4 sm:$0xff]   ;;  %v10175_v61 = vld [vmem:[#allocation13 + $0x12c] ss:$16 sps:$4 sm:$0xff]  }
 0x40a   :  { %v5477_v10 = vpop.f32.mrf.mxu0  ;;  %7314 = vmatprep.subr.bf16.mxu0 %v10103_v48  ;;  %v10170_v46 = vld [vmem:[#allocation14 + $0x388] ss:$16 sps:$4 sm:$0xff]   ;;  %v10178_v48 = vld [vmem:[#allocation14 + $0x36c] ss:$16 sps:$4 sm:$0xff]  }
 0x40b   :  { %v5518_v57 = vpop.f32.mrf.mxu1  ;;  %v5655_v62 = vpack.c.bf16 %v5516_v56, %v5516_v56  ;;  %v10173_v36 = vld [vmem:[#allocation13 + $0x128] ss:$16 sps:$4 sm:$0xff]   ;;  %v10181_v50 = vld [vmem:[#allocation13 + $0x10c] ss:$16 sps:$4 sm:$0xff]  }
 0x40c   :  { %v10176_v52 = vld [vmem:[#allocation14 + $0x368] ss:$16 sps:$4 sm:$0xff]   ;;  %v10184_v55 = vld [vmem:[#allocation14 + $0x34c] ss:$16 sps:$4 sm:$0xff]  }
 0x40d   :  { %6497 = vmatprep.mubr.bf16.mxu1 %v5655_v62  ;;  %7315 = vmatpush1.bf16.msra.mxu0 %v10101_v11  ;;  %v10179_v56 = vld [vmem:[#allocation13 + $0x108] ss:$16 sps:$4 sm:$0xff]   ;;  %v10187_v10 = vld [vmem:[#allocation14 + $0x32c] ss:$16 sps:$4 sm:$0xff]  }
 0x40e   :  { %6498 = vmatmul.mubr.bf16.vlgmr.msra.gmra.mxu1 %v10970_v2  ;;  %7316 = vmatprep.subr.bf16.mxu0 %v10109_v58  ;;  %v10182_v11 = vld [vmem:[#allocation14 + $0x348] ss:$16 sps:$4 sm:$0xff]  }
 0x40f   :  { %6548 = vmatpush1.bf16.msra.mxu1 %v10104_v63  ;;  %6579 = vmatprep.mubr.bf16.mxu1 %v5655_v62  ;;  %v10185_v57 = vld [vmem:[#allocation14 + $0x328] ss:$16 sps:$4 sm:$0xff]   ;;  %v10190_v62 = vld [vmem:[#allocation14 + $0x30c] ss:$16 sps:$4 sm:$0xff]  }
 0x410   :  { %6549 = vmatprep.subr.bf16.mxu1 %v10112_v1  ;;  %v10188_v1 = vld [vmem:[#allocation14 + $0x308] ss:$16 sps:$4 sm:$0xff]  }
 0x411   :  { %7317 = vmatpush1.bf16.msra.mxu0 %v10107_v28 }
 0x412   :  { %7318 = vmatprep.subr.bf16.mxu0 %v10115_v22  ;;  %v10193_v22 = vld [vmem:[#allocation13 + $0x2e4] ss:$16 sps:$4 sm:$0xff]  }
 0x413   :  { %6550 = vmatpush1.bf16.msra.mxu1 %v10110_v24 }
 0x414   :  { %6551 = vmatprep.subr.bf16.mxu1 %v10118_v32  ;;  %v10191_v32 = vld [vmem:[#allocation13 + $0x2e0] ss:$16 sps:$4 sm:$0xff]  }
 0x415   :  { %7319 = vmatpush1.bf16.msra.mxu0 %v10113_v49  ;;  %v10196_v49 = vld [vmem:[#allocation13 + $0x2c4] ss:$16 sps:$4 sm:$0xff]  }
 0x416   :  { %7320 = vmatprep.subr.bf16.mxu0 %v10121_v60  ;;  %v10980_v60 = vpack.c.bf16 %v10870_v18, %v10870_v18  ;;  %v10208_v18 = vld [vmem:[#allocation13 + $0x244] ss:$16 sps:$4 sm:$0xff]  }
 0x417   :  { %6552 = vmatpush1.bf16.msra.mxu1 %v10116_v54  ;;  %v10199_v54 = vld [vmem:[#allocation13 + $0x2a4] ss:$16 sps:$4 sm:$0xff]  }
 0x418   :  { %6553 = vmatprep.subr.bf16.mxu1 %v10124_v5  ;;  %v10197_v5 = vld [vmem:[#allocation13 + $0x2a0] ss:$16 sps:$4 sm:$0xff]  }
 0x419   :  { %7321 = vmatpush1.bf16.msra.mxu0 %v10119_v42  ;;  %v10202_v42 = vld [vmem:[#allocation13 + $0x284] ss:$16 sps:$4 sm:$0xff]  }
 0x41a   :  { %7322 = vmatprep.subr.bf16.mxu0 %v10127_v6  ;;  %v10200_v6 = vld [vmem:[#allocation13 + $0x280] ss:$16 sps:$4 sm:$0xff]  }
 0x41b   :  { %6554 = vmatpush1.bf16.msra.mxu1 %v10122_v3  ;;  %v10205_v3 = vld [vmem:[#allocation13 + $0x264] ss:$16 sps:$4 sm:$0xff]  }
 0x41c   :  { %6555 = vmatprep.subr.bf16.mxu1 %v10130_v9  ;;  %v10203_v9 = vld [vmem:[#allocation13 + $0x260] ss:$16 sps:$4 sm:$0xff]  }
 0x41d   :  { %7323 = vmatpush1.bf16.msra.mxu0 %v10125_v14  ;;  %v10211_v14 = vld [vmem:[#allocation13 + $0x224] ss:$16 sps:$4 sm:$0xff]  }
 0x41e   :  { %7324 = vmatprep.subr.bf16.mxu0 %v10133_v19  ;;  %v10209_v19 = vld [vmem:[#allocation13 + $0x220] ss:$16 sps:$4 sm:$0xff]  }
 0x41f   :  { %6556 = vmatpush1.bf16.msra.mxu1 %v10128_v20  ;;  %v10214_v20 = vld [vmem:[#allocation13 + $0x204] ss:$16 sps:$4 sm:$0xff]  }
 0x420   :  { %6557 = vmatprep.subr.bf16.mxu1 %v10136_v47  ;;  %v10212_v47 = vld [vmem:[#allocation13 + $0x200] ss:$16 sps:$4 sm:$0xff]  }
 0x421   :  { %7325 = vmatpush1.bf16.msra.mxu0 %v10131_v45  ;;  %v10217_v45 = vld [vmem:[#allocation13 + $0x3e4] ss:$16 sps:$4 sm:$0xff]  }
 0x422   :  { %7326 = vmatprep.subr.bf16.mxu0 %v10139_v27  ;;  %v10215_v27 = vld [vmem:[#allocation13 + $0x3e0] ss:$16 sps:$4 sm:$0xff]  }
 0x423   :  { %6558 = vmatpush1.bf16.msra.mxu1 %v10134_v29  ;;  %v10220_v29 = vld [vmem:[#allocation13 + $0x3c4] ss:$16 sps:$4 sm:$0xff]  }
 0x424   :  { %6559 = vmatprep.subr.bf16.mxu1 %v10142_v59  ;;  %v10218_v59 = vld [vmem:[#allocation13 + $0x3c0] ss:$16 sps:$4 sm:$0xff]  }
 0x425   :  { %7327 = vmatpush2.bf16.msra.mxu0 %v10137_v8  ;;  %v10223_v8 = vld [vmem:[#allocation13 + $0x3a4] ss:$16 sps:$4 sm:$0xff]  }
 0x426   :  { %7328 = vmatprep.subr.bf16.mxu0 %v10145_v4  ;;  %v10221_v4 = vld [vmem:[#allocation13 + $0x3a0] ss:$16 sps:$4 sm:$0xff]  }
 0x427   :  { %6560 = vmatpush1.bf16.msra.mxu1 %v10140_v53  ;;  %v10226_v53 = vld [vmem:[#allocation13 + $0x384] ss:$16 sps:$4 sm:$0xff]  }
 0x428   :  { %6561 = vmatprep.subr.bf16.mxu1 %v10148_v41  ;;  %v10224_v41 = vld [vmem:[#allocation13 + $0x380] ss:$16 sps:$4 sm:$0xff]  }
 0x429   :  { %7329 = vmatpush2.bf16.msra.mxu0 %v10143_v31  ;;  %v10229_v31 = vld [vmem:[#allocation13 + $0x364] ss:$16 sps:$4 sm:$0xff]  }
 0x42a   :  { %7330 = vmatprep.subr.bf16.mxu0 %v10151_v26  ;;  %v10227_v26 = vld [vmem:[#allocation13 + $0x360] ss:$16 sps:$4 sm:$0xff]  }
 0x42b   :  { %6562 = vmatpush1.bf16.msra.mxu1 %v10146_v51  ;;  %v10232_v51 = vld [vmem:[#allocation13 + $0x344] ss:$16 sps:$4 sm:$0xff]  }
 0x42c   :  { %6563 = vmatprep.subr.bf16.mxu1 %v10154_v34  ;;  %v10230_v34 = vld [vmem:[#allocation13 + $0x340] ss:$16 sps:$4 sm:$0xff]  }
 0x42d   :  { %7331 = vmatpush2.bf16.msra.mxu0 %v10149_v35  ;;  %v10235_v35 = vld [vmem:[#allocation13 + $0x324] ss:$16 sps:$4 sm:$0xff]  }
 0x42e   :  { %7332 = vmatprep.subr.bf16.mxu0 %v10157_v12  ;;  %v10233_v12 = vld [vmem:[#allocation13 + $0x320] ss:$16 sps:$4 sm:$0xff]  }
 0x42f   :  { %6564 = vmatpush2.bf16.msra.mxu1 %v10152_v7 }
 0x430   :  { %6565 = vmatprep.subr.bf16.mxu1 %v10160_v16  ;;  %v10238_v16 = vld [vmem:[#allocation13 + $0x304] ss:$16 sps:$4 sm:$0xff]  }
 0x431   :  { %7333 = vmatpush2.bf16.msra.mxu0 %v10155_v38 }
 0x432   :  { %7334 = vmatprep.subr.bf16.mxu0 %v10163_v39  ;;  %v10236_v39 = vld [vmem:[#allocation13 + $0x300] ss:$16 sps:$4 sm:$0xff]  }
 0x433   :  { %6566 = vmatpush2.bf16.msra.mxu1 %v10158_v44 }
 0x434   :  { %6567 = vmatprep.subr.bf16.mxu1 %v10166_v23  ;;  %v10241_v23 = vld [vmem:[#allocation13 + $0x2ec] ss:$16 sps:$4 sm:$0xff]  }
 0x435   :  { %7335 = vmatpush2.bf16.msra.mxu0 %v10161_v43 }
 0x436   :  { %7336 = vmatprep.subr.bf16.mxu0 %v10169_v33  ;;  %v10239_v33 = vld [vmem:[#allocation13 + $0x2e8] ss:$16 sps:$4 sm:$0xff]  }
 0x437   :  { %6568 = vmatpush2.bf16.msra.mxu1 %v10164_v25  ;;  %v10990_v25 = vpack.c.bf16 %v10865_v30, %v10865_v30  ;;  %v10248_v30 = vld [vmem:[#allocation13 + $0x288] ss:$16 sps:$4 sm:$0xff]  }
 0x438   :  { %6569 = vmatprep.subr.bf16.mxu1 %v10172_v37  ;;  %v10244_v37 = vld [vmem:[#allocation13 + $0x2cc] ss:$16 sps:$4 sm:$0xff]  }
 0x439   :  { %7337 = vmatpush2.bf16.msra.mxu0 %v10167_v40  ;;  %v10242_v40 = vld [vmem:[#allocation13 + $0x2c8] ss:$16 sps:$4 sm:$0xff]  }
 0x43a   :  { %7338 = vmatprep.subr.bf16.mxu0 %v10175_v61  ;;  %v10247_v61 = vld [vmem:[#allocation13 + $0x2ac] ss:$16 sps:$4 sm:$0xff]  }
 0x43b   :  { %6570 = vmatpush2.bf16.msra.mxu1 %v10170_v46  ;;  %v10245_v46 = vld [vmem:[#allocation13 + $0x2a8] ss:$16 sps:$4 sm:$0xff]  }
 0x43c   :  { %6571 = vmatprep.subr.bf16.mxu1 %v10178_v48  ;;  %v10250_v48 = vld [vmem:[#allocation13 + $0x28c] ss:$16 sps:$4 sm:$0xff]  }
 0x43d   :  { %7339 = vmatpush2.bf16.msra.mxu0 %v10173_v36  ;;  %v10287_v36 = vld [vmem:[#allocation17 + $0x78] sm:$0xff]  }
 0x43e   :  { %7340 = vmatprep.subr.bf16.mxu0 %v10181_v50  ;;  %v10288_v50 = vld [vmem:[#allocation17 + $0x38] sm:$0xff]  }
 0x43f   :  { %6572 = vmatpush2.bf16.msra.mxu1 %v10176_v52  ;;  %v10289_v52 = vld [vmem:[#allocation17 + $0x70] sm:$0xff]  }
 0x440   :  { %6573 = vmatprep.subr.bf16.mxu1 %v10184_v55  ;;  %v10290_v55 = vld [vmem:[#allocation17 + $0x30] sm:$0xff]  }
 0x441   :  { %7341 = vmatpush2.bf16.msra.mxu0 %v10179_v56  ;;  %v10253_v56 = vld [vmem:[#allocation13 + $0x26c] ss:$16 sps:$4 sm:$0xff]  }
 0x442   :  { %8783 = vmatprep.subr.bf16.mxu0 %v10287_v36  ;;  %v10307_v36 = vld [vmem:[#allocation17 + $0xe8] sm:$0xff]  }
 0x443   :  { %6574 = vmatpush2.bf16.msra.mxu1 %v10182_v11  ;;  %v10291_v11 = vld [vmem:[#allocation17 + $0x68] sm:$0xff]  }
 0x444   :  { %v10973_v58 = vpop.f32.mrf.mxu0  ;;  %7343 = vmatmul.mubr.bf16.vlgmr.msra.gmra.mxu0 %v10964_v13  ;;  %6575 = vmatprep.subr.bf16.mxu1 %v10187_v10  ;;  %v10194_v13 = vld [vmem:[#allocation13 + $0x2c0] ss:$16 sps:$4 sm:$0xff]   ;;  %v10251_v10 = vld [vmem:[#allocation13 + $0x268] ss:$16 sps:$4 sm:$0xff]  }
 0x445   :  { %8784 = vmatpush3.bf16.msra.mxu0 %v10288_v50  ;;  %v10309_v50 = vld [vmem:[#allocation17 + $0xe0] sm:$0xff]  }
 0x446   :  { %v10976_v63 = vpop.f32.mrf.mxu0  ;;  %8785 = vmatprep.subr.bf16.mxu0 %v10289_v52  ;;  %v10310_v52 = vld [vmem:[#allocation17 + $0xa0] sm:$0xff]  }
 0x447   :  { %6576 = vmatpush2.bf16.msra.mxu1 %v10185_v57  ;;  %v10292_v57 = vld [vmem:[#allocation17 + $0x28] sm:$0xff]  }
 0x448   :  { %v6462_v28 = vpop.f32.mrf.mxu0  ;;  %6577 = vmatprep.subr.bf16.mxu1 %v10190_v62  ;;  %v10256_v62 = vld [vmem:[#allocation13 + $0x24c] ss:$16 sps:$4 sm:$0xff]  }
 0x449   :  { %8786 = vmatpush3.bf16.msra.mxu0 %v10290_v55  ;;  %v10254_v28 = vld [vmem:[#allocation13 + $0x248] ss:$16 sps:$4 sm:$0xff]   ;;  %v10312_v55 = vld [vmem:[#allocation17 + $0x98] sm:$0xff]  }
 0x44a   :  { %v6463_v24 = vpop.f32.mrf.mxu0  ;;  %8787 = vmatprep.subr.bf16.mxu0 %v10291_v11 }
 0x44b   :  { %6578 = vmatpush2.bf16.msra.mxu1 %v10188_v1  ;;  %v10293_v1 = vld [vmem:[#allocation17 + $0x60] sm:$0xff]   ;;  %v10259_v24 = vld [vmem:[#allocation13 + $0x22c] ss:$16 sps:$4 sm:$0xff]  }
 0x44c   :  { %7269 = vmatprep.subr.bf16.mxu1 %v10193_v22  ;;  %v10294_v22 = vld [vmem:[#allocation17 + $0x20] sm:$0xff]  }
 0x44d   :  { %8788 = vmatpush3.bf16.msra.mxu0 %v10292_v57 }
 0x44e   :  { %6580 = vmatmul.mubr.bf16.vlgmr.msra.gmra.mxu1 %v10970_v2  ;;  %v10206_v2 = vld [vmem:[#allocation13 + $0x240] ss:$16 sps:$4 sm:$0xff]   ;;  %8789 = vmatprep.subr.bf16.mxu0 %v10293_v1  ;;  %v10314_v1 = vld [vmem:[#allocation17 + $0x90] sm:$0xff]  }
 0x44f   :  { %7270 = vmatpush1.bf16.msra.mxu1 %v10191_v32  ;;  %7301 = vmatprep.mubr.bf16.mxu1 %v10980_v60  ;;  %v10295_v32 = vld [vmem:[#allocation17 + $0x58] sm:$0xff]  }
 0x450   :  { %7271 = vmatprep.subr.bf16.mxu1 %v10196_v49  ;;  %v10257_v49 = vld [vmem:[#allocation13 + $0x228] ss:$16 sps:$4 sm:$0xff]  }
 0x451   :  { %8790 = vmatpush3.bf16.msra.mxu0 %v10294_v22 }
 0x452   :  { %8791 = vmatprep.subr.bf16.mxu0 %v10295_v32  ;;  %v10315_v32 = vld [vmem:[#allocation17 + $0xc8] sm:$0xff]  }
 0x453   :  { %7272 = vmatpush1.bf16.msra.mxu1 %v10194_v13  ;;  %v10262_v13 = vld [vmem:[#allocation13 + $0x20c] ss:$16 sps:$4 sm:$0xff]  }
 0x454   :  { %7273 = vmatprep.subr.bf16.mxu1 %v10199_v54  ;;  %v10260_v54 = vld [vmem:[#allocation13 + $0x208] ss:$16 sps:$4 sm:$0xff]  }
 0x457   :  { %7274 = vmatpush1.bf16.msra.mxu1 %v10197_v5  ;;  %v10265_v5 = vld [vmem:[#allocation13 + $0x3ec] ss:$16 sps:$4 sm:$0xff]  }
 0x458   :  { %7275 = vmatprep.subr.bf16.mxu1 %v10202_v42  ;;  %v10263_v42 = vld [vmem:[#allocation13 + $0x3e8] ss:$16 sps:$4 sm:$0xff]  }
 0x45b   :  { %7276 = vmatpush1.bf16.msra.mxu1 %v10200_v6  ;;  %v10268_v6 = vld [vmem:[#allocation13 + $0x3cc] ss:$16 sps:$4 sm:$0xff]  }
 0x45c   :  { %7277 = vmatprep.subr.bf16.mxu1 %v10205_v3  ;;  %v10266_v3 = vld [vmem:[#allocation13 + $0x3c8] ss:$16 sps:$4 sm:$0xff]  }
 0x45f   :  { %7278 = vmatpush1.bf16.msra.mxu1 %v10203_v9  ;;  %v10271_v9 = vld [vmem:[#allocation13 + $0x3ac] ss:$16 sps:$4 sm:$0xff]  }
 0x460   :  { %7279 = vmatprep.subr.bf16.mxu1 %v10208_v18  ;;  %v10269_v18 = vld [vmem:[#allocation13 + $0x3a8] ss:$16 sps:$4 sm:$0xff]  }
 0x463   :  { %7280 = vmatpush1.bf16.msra.mxu1 %v10206_v2  ;;  %v10274_v2 = vld [vmem:[#allocation13 + $0x38c] ss:$16 sps:$4 sm:$0xff]  }
 0x464   :  { %7281 = vmatprep.subr.bf16.mxu1 %v10211_v14  ;;  %v10272_v14 = vld [vmem:[#allocation13 + $0x388] ss:$16 sps:$4 sm:$0xff]  }
 0x467   :  { %7282 = vmatpush1.bf16.msra.mxu1 %v10209_v19  ;;  %v10277_v19 = vld [vmem:[#allocation13 + $0x36c] ss:$16 sps:$4 sm:$0xff]  }
 0x468   :  { %7283 = vmatprep.subr.bf16.mxu1 %v10214_v20  ;;  %v10275_v20 = vld [vmem:[#allocation13 + $0x368] ss:$16 sps:$4 sm:$0xff]  }
 0x46b   :  { %7284 = vmatpush1.bf16.msra.mxu1 %v10212_v47  ;;  %v10280_v47 = vld [vmem:[#allocation13 + $0x34c] ss:$16 sps:$4 sm:$0xff]  }
 0x46c   :  { %7285 = vmatprep.subr.bf16.mxu1 %v10217_v45  ;;  %v10278_v45 = vld [vmem:[#allocation13 + $0x348] ss:$16 sps:$4 sm:$0xff]  }
 0x46f   :  { %7286 = vmatpush2.bf16.msra.mxu1 %v10215_v27  ;;  %v10283_v27 = vld [vmem:[#allocation13 + $0x32c] ss:$16 sps:$4 sm:$0xff]  }
 0x470   :  { %7287 = vmatprep.subr.bf16.mxu1 %v10220_v29  ;;  %v10281_v29 = vld [vmem:[#allocation13 + $0x328] ss:$16 sps:$4 sm:$0xff]  }
 0x473   :  { %7288 = vmatpush2.bf16.msra.mxu1 %v10218_v59 }
 0x474   :  { %7289 = vmatprep.subr.bf16.mxu1 %v10223_v8  ;;  %v10286_v8 = vld [vmem:[#allocation13 + $0x30c] ss:$16 sps:$4 sm:$0xff]  }
 0x477   :  { %7290 = vmatpush2.bf16.msra.mxu1 %v10221_v4 }
 0x478   :  { %7291 = vmatprep.subr.bf16.mxu1 %v10226_v53  ;;  %v10284_v53 = vld [vmem:[#allocation13 + $0x308] ss:$16 sps:$4 sm:$0xff]  }
 0x47b   :  { %7292 = vmatpush2.bf16.msra.mxu1 %v10224_v41 }
 0x47c   :  { %7293 = vmatprep.subr.bf16.mxu1 %v10229_v31 }
 0x47f   :  { %7294 = vmatpush2.bf16.msra.mxu1 %v10227_v26  ;;  %v10297_v26 = vld [vmem:[#allocation17 + $0x50] sm:$0xff]  }
 0x480   :  { %7295 = vmatprep.subr.bf16.mxu1 %v10232_v51  ;;  %v10298_v51 = vld [vmem:[#allocation17 + $0x10] sm:$0xff]  }
 0x483   :  { %7296 = vmatpush2.bf16.msra.mxu1 %v10230_v34 }
 0x484   :  { %v10984_v7 = vpop.f32.mrf.mxu0  ;;  %7297 = vmatprep.subr.bf16.mxu1 %v10235_v35 }
 0x486   :  { %v10986_v38 = vpop.f32.mrf.mxu0 }
 0x487   :  { %7298 = vmatpush2.bf16.msra.mxu1 %v10233_v12 }
 0x488   :  { %v6544_v44 = vpop.f32.mrf.mxu0  ;;  %7299 = vmatprep.subr.bf16.mxu1 %v10238_v16  ;;  %v10299_v16 = vld [vmem:[#allocation17 + $0x48] sm:$0xff]  }
 0x48a   :  { %v6545_v43 = vpop.f32.mrf.mxu0 }
 0x48b   :  { %7300 = vmatpush2.bf16.msra.mxu1 %v10236_v39 }
 0x48c   :  { %7351 = vmatprep.subr.bf16.mxu1 %v10241_v23  ;;  %v10300_v23 = vld [vmem:[#allocation17 + $0x8] sm:$0xff]  }
 0x48e   :  { %7302 = vmatmul.mubr.bf16.vlgmr.msra.gmra.mxu1 %v10990_v25 }
 0x48f   :  { %7352 = vmatpush1.bf16.msra.mxu1 %v10239_v33  ;;  %7383 = vmatprep.mubr.bf16.mxu1 %v10980_v60  ;;  %v10296_v60 = vld [vmem:[#allocation17 + $0x18] sm:$0xff]  }
 0x490   :  { %7353 = vmatprep.subr.bf16.mxu1 %v10244_v37  ;;  %8792 = vmatpush3.bf16.msra.mxu0 %v10296_v60 }
 0x491   :  { %8793 = vmatprep.subr.bf16.mxu0 %v10297_v26 }
 0x493   :  { %7354 = vmatpush1.bf16.msra.mxu1 %v10242_v40  ;;  %v10301_v40 = vld [vmem:[#allocation17 + $0x40] sm:$0xff]  }
 0x494   :  { %7355 = vmatprep.subr.bf16.mxu1 %v10247_v61  ;;  %8794 = vmatpush3.bf16.msra.mxu0 %v10298_v51  ;;  %v10302_v61 = vld [vmem:[#allocation17] sm:$0xff]  }
 0x495   :  { %8795 = vmatprep.subr.bf16.mxu0 %v10299_v16 }
 0x497   :  { %7356 = vmatpush1.bf16.msra.mxu1 %v10245_v46  ;;  %v10304_v46 = vld [vmem:[#allocation17 + $0xb8] sm:$0xff]  }
 0x498   :  { %7357 = vmatprep.subr.bf16.mxu1 %v10250_v48  ;;  %8796 = vmatpush3.bf16.msra.mxu0 %v10300_v23  ;;  %v10305_v48 = vld [vmem:[#allocation17 + $0xf0] sm:$0xff]  }
 0x499   :  { %8797 = vmatprep.subr.bf16.mxu0 %v10301_v40 }
 0x49b   :  { %7358 = vmatpush1.bf16.msra.mxu1 %v10248_v30  ;;  %v10311_v30 = vld [vmem:[#allocation17 + $0xd8] sm:$0xff]  }
 0x49c   :  { %7359 = vmatprep.subr.bf16.mxu1 %v10253_v56  ;;  %8798 = vmatpush3.bf16.msra.mxu0 %v10302_v61  ;;  %v8750_v61 = vld [vmem:[#allocation19] ss:$0 sm:$0xff] }
 0x49f   :  { %7360 = vmatpush1.bf16.msra.mxu1 %v10251_v10 }
 0x4a0   :  { %7361 = vmatprep.subr.bf16.mxu1 %v10256_v62  ;;  %v10313_v62 = vld [vmem:[#allocation17 + $0xd0] sm:$0xff]  }
 0x4a3   :  { %7362 = vmatpush1.bf16.msra.mxu1 %v10254_v28 }
 0x4a4   :  { %7363 = vmatprep.subr.bf16.mxu1 %v10259_v24 }
 0x4a7   :  { %7364 = vmatpush1.bf16.msra.mxu1 %v10257_v49 }
 0x4a8   :  { %7365 = vmatprep.subr.bf16.mxu1 %v10262_v13  ;;  %v10316_v13 = vld [vmem:[#allocation17 + $0x88] sm:$0xff]  }
 0x4ab   :  { %7366 = vmatpush1.bf16.msra.mxu1 %v10260_v54 }
 0x4ac   :  { %7367 = vmatprep.subr.bf16.mxu1 %v10265_v5 }
 0x4af   :  { %7368 = vmatpush2.bf16.msra.mxu1 %v10263_v42 }
 0x4b0   :  { %7369 = vmatprep.subr.bf16.mxu1 %v10268_v6  ;;  %v10317_v6 = vld [vmem:[#allocation17 + $0xc0] sm:$0xff]  }
 0x4b3   :  { %7370 = vmatpush2.bf16.msra.mxu1 %v10266_v3  ;;  %v10318_v3 = vld [vmem:[#allocation17 + $0x80] sm:$0xff]  }
 0x4b4   :  { %7371 = vmatprep.subr.bf16.mxu1 %v10271_v9  ;;  %v7392_v9 = vld [vmem:[#allocation16] sm:$0xf] }
 0x4b7   :  { %7372 = vmatpush2.bf16.msra.mxu1 %v10269_v18  ;;  %v7397_v18 = vrot.slane %v7392_v9, %v10765_v0 }
 0x4b8   :  { %7373 = vmatprep.subr.bf16.mxu1 %v10274_v2 }
 0x4bb   :  { %7374 = vmatpush2.bf16.msra.mxu1 %v10272_v14  ;;  %v7401_v14 = vrot.slane %v7392_v9, %v10768_v17 }
 0x4bc   :  { %7375 = vmatprep.subr.bf16.mxu1 %v10277_v19 }
 0x4bf   :  { %7376 = vmatpush2.bf16.msra.mxu1 %v10275_v20 }
 0x4c0   :  { %7377 = vmatprep.subr.bf16.mxu1 %v10280_v47 }
 0x4c3   :  { %7378 = vmatpush2.bf16.msra.mxu1 %v10278_v45 }
 0x4c4   :  { %v7262_v59 = vpop.f32.mrf.mxu0  ;;  %7379 = vmatprep.subr.bf16.mxu1 %v10283_v27 }
 0x4c6   :  { %v7264_v4 = vpop.f32.mrf.mxu0 }
 0x4c7   :  { %7380 = vmatpush2.bf16.msra.mxu1 %v10281_v29 }
 0x4c8   :  { %v7266_v41 = vpop.f32.mrf.mxu0  ;;  %7381 = vmatprep.subr.bf16.mxu1 %v10286_v8 }
 0x4ca   :  { %v7267_v31 = vpop.f32.mrf.mxu0 }
 0x4cb   :  { %7382 = vmatpush2.bf16.msra.mxu1 %v10284_v53  ;;  %v7405_v53 = vrot.slane %v7392_v9, %v10806_v15  ;;  %v7409_v31 = vrot.slane %v7392_v9, %v10809_v21 }
 0x4ce   :  { %7384 = vmatmul.mubr.bf16.vlgmr.msra.gmra.mxu1 %v10990_v25  ;;  %v6499_v34 = vpop.f32.mrf.mxu1  ;;  %v10303_v25 = vld [vmem:[#allocation17 + $0xf8] sm:$0xff]  }
 0x4cf   :  { %v6500_v35 = vadd.f32 %v6499_v34, %v10973_v58  ;;  %8805 = vmatprep.subr.bf16.mxu1 %v10303_v25  ;;  %v10306_v58 = vld [vmem:[#allocation17 + $0xb0] sm:$0xff]  }
 0x4d0   :  { %v6501_v12 = vpop.f32.mrf.mxu1  ;;  %8806 = vmatpush3.bf16.msra.mxu1 %v10304_v46 }
 0x4d1   :  { %v6502_v39 = vadd.f32 %v6501_v12, %v10976_v63  ;;  %v7263_v44 = vadd.f32 %v7262_v59, %v6500_v35  ;;  %8807 = vmatprep.subr.bf16.mxu1 %v10305_v48  ;;  %v10308_v63 = vld [vmem:[#allocation17 + $0xa8] sm:$0xff]  }
 0x4d2   :  { %v6503_v43 = vpop.f32.mrf.mxu1 }
 0x4d3   :  { %v7265_v33 = vadd.f32 %v7264_v4, %v6502_v39 }
 0x4d4   :  { %v6504_v37 = vpop.f32.mrf.mxu1  ;;  %8808 = vmatpush3.bf16.msra.mxu1 %v10306_v58 }
 0x4d5   :  { %8809 = vmatprep.subr.bf16.mxu1 %v10307_v36 }
 0x4d8   :  { %8810 = vmatpush3.bf16.msra.mxu1 %v10308_v63 }
 0x4d9   :  { %8811 = vmatprep.subr.bf16.mxu1 %v10309_v50 }
 0x4dc   :  { %8812 = vmatpush3.bf16.msra.mxu1 %v10310_v52 }
 0x4dd   :  { %8813 = vmatprep.subr.bf16.mxu1 %v10311_v30 }
 0x4e0   :  { %8814 = vmatpush3.bf16.msra.mxu1 %v10312_v55 }
 0x4e1   :  { %8815 = vmatprep.subr.bf16.mxu1 %v10313_v62 }
 0x4e4   :  { %8816 = vmatpush3.bf16.msra.mxu1 %v10314_v1 }
 0x4e5   :  { %8817 = vmatprep.subr.bf16.mxu1 %v10315_v32 }
 0x4e8   :  { %8818 = vmatpush3.bf16.msra.mxu1 %v10316_v13 }
 0x4e9   :  { %8819 = vmatprep.subr.bf16.mxu1 %v10317_v6 }
 0x4ec   :  { %8820 = vmatpush3.bf16.msra.mxu1 %v10318_v3 }
 0x504   :  { %v7344_v56 = vpop.f32.mrf.mxu0 }
 0x506   :  { %v7346_v11 = vpop.f32.mrf.mxu0 }
 0x508   :  { %v7348_v10 = vpop.f32.mrf.mxu0 }
 0x50a   :  { %v7349_v57 = vpop.f32.mrf.mxu0 }
 0x50e   :  { %v6581_v28 = vpop.f32.mrf.mxu1 }
 0x50f   :  { %v6582_v22 = vadd.f32 %v6581_v28, %v10984_v7 }
 0x510   :  { %v6583_v24 = vpop.f32.mrf.mxu1 }
 0x511   :  { %v6584_v49 = vadd.f32 %v6583_v24, %v10986_v38  ;;  %v7345_v60 = vadd.f32 %v7344_v56, %v6582_v22 }
 0x512   :  { %v6585_v54 = vpop.f32.mrf.mxu1 }
 0x513   :  { %v7347_v5 = vadd.f32 %v7346_v11, %v6584_v49 }
 0x514   :  { %v6586_v42 = vpop.f32.mrf.mxu1 }
 0x54e   :  { %v7303_v7 = vpop.f32.mrf.mxu1 }
 0x54f   :  { %v7304_v2 = vadd.f32 %v7303_v7, %v7263_v44 }
 0x550   :  { %v7305_v19 = vpop.f32.mrf.mxu1 }
 0x551   :  { %v7414_v38 = vadd.f32 %v7397_v18, %v7304_v2  ;;  %v7306_v20 = vadd.f32 %v7305_v19, %v7265_v33 }
 0x552   :  { %v7307_v47 = vpop.f32.mrf.mxu1 }
 0x553   :  { %v7415_v45 = vadd.f32 %v7401_v14, %v7306_v20  ;;  %v7418_v27 = vmax.f32 %v7414_v38, 0.0 }
 0x554   :  { %v7308_v29 = vpop.f32.mrf.mxu1 }
 0x555   :  { %v7419_v59 = vmax.f32 %v7415_v45, 0.0  ;;  %v7422_v4 = vpack.c.bf16 %v7418_v27, %v7418_v27 }
 0x557   :  { %v7423_v8 = vpack.c.bf16 %v7419_v59, %v7419_v59 }
 0x559   :  { %7721 = vmatprep.mubr.bf16.mxu0 %v7423_v8 }
 0x55a   :  { %7722 = vmatmul.mubr.bf16.vlgmr.msra.gmra.mxu0 %v7422_v4 }
 0x58e   :  { %v7385_v41 = vpop.f32.mrf.mxu1 }
 0x58f   :  { %v7386_v0 = vadd.f32 %v7385_v41, %v7345_v60 }
 0x590   :  { %v7387_v26 = vpop.f32.mrf.mxu1 }
 0x591   :  { %v7416_v17 = vadd.f32 %v7405_v53, %v7386_v0  ;;  %v7388_v51 = vadd.f32 %v7387_v26, %v7347_v5 }
 0x592   :  { %v7389_v34 = vpop.f32.mrf.mxu1 }
 0x593   :  { %v7417_v35 = vadd.f32 %v7409_v31, %v7388_v51  ;;  %v7420_v12 = vmax.f32 %v7416_v17, 0.0 }
 0x594   :  { %v7390_v16 = vpop.f32.mrf.mxu1 }
 0x595   :  { %v7421_v39 = vmax.f32 %v7417_v35, 0.0  ;;  %v7424_v23 = vpack.c.bf16 %v7420_v12, %v7420_v12 }
 0x597   :  { %v7425_v44 = vpack.c.bf16 %v7421_v39, %v7421_v39 }
 0x599   :  { %7761 = vmatprep.mubr.bf16.mxu1 %v7425_v44 }
 0x59a   :  { %7762 = vmatmul.mubr.bf16.vlgmr.msra.gmra.mxu1 %v7424_v23 }
 0x61a   :  { %v8799_v43 = vpop.f32.mrf.mxu0 }
 0x61c   :  { %v8800_v33 = vpop.f32.mrf.mxu0 }
 0x61d   :  { %v8801_v40 = vadd.f32 %v8800_v33, %v8799_v43 }
 0x61e   :  { %v8802_v37 = vpop.f32.mrf.mxu0 }
 0x61f   :  { %v7724_v46 = vadd.f32 %v8801_v40, %v8750_v61 }
 0x620   :  { %v8803_v15 = vpop.f32.mrf.mxu0 }
 0x65a   :  { %v8821_v25 = vpop.f32.mrf.mxu1 }
 0x65c   :  { %v8822_v21 = vpop.f32.mrf.mxu1 }
 0x65d   :  { %v8823_v48 = vadd.f32 %v8822_v21, %v8821_v25 }
 0x65e   :  { %v8824_v58 = vpop.f32.mrf.mxu1 }
 0x65f   :  { %v7764_v36 = vadd.f32 %v8823_v48, %v7724_v46 }
 0x660   :  { %v8825_v63 = vpop.f32.mrf.mxu1 }
 0x661   :  { %7769 = vst [vmem:[#allocation20] sm:$0x3] %v7764_v36 }
 0x662   :  { %10551 = shalt.err (!%p10548_p3)
}
 0x663   :  { %7779 = dma.vmem_to_hbm [thread:$0]  %s7777_s10, 32, %s11017_s11, [#allocation4]  }
 0x664   :  { %10572 = dma.done.wait [#allocation4], 32  }
 0x665   :  { %10573 = vsyncadd [#allocation4], 4294967264 }
 0x666   :  { %7783 = vsyncpa [#allocation3], 1 }
 0x667   :  { %7784 = vsyncpa [#allocation6], 1 }
 0x668   :  { %7785 = vsyncpa [#allocation9], 1 }
 0x669   :  { %7786 = vsyncpa [#allocation12], 1 }
 0x66a   :  { %7787 = vsyncpa [#allocation15], 1 }
 0x66b   :  { %7788 = vsyncpa [#allocation18], 1 }
 0x66c   :  { %7789 = vsyncpa [#allocation4], 1 }

</bundles_post_ra>
